<compile_context>
chip_gen: v5e
topology: v5e:2x2
jax: 0.10.0
libtpu: 0.0.40
codegen_flags: <defaults>
</compile_context>

<pallas_src>
import jax
import jax.numpy as jnp
from jax.experimental import pallas as pl
from jax.experimental.pallas import tpu as pltpu

BN_EPS = 1e-5
NEG_SLOPE = 0.2
EMB_DIMS = 1024          # conv8 hard-codes 1280 = 1024 + 64 + 192
SEG_NUM_ALL = 8
K_NN = 4
VMEM_LIMIT = 32 * 1024 * 1024   # safe on v5e/v6e (128 MiB) and v7x (64 MiB)


def _lrelu(y):
    return jnp.where(y > 0, y, NEG_SLOPE * y)


# ---------------------------------------------------------------------------
# Tile pickers
# ---------------------------------------------------------------------------
def _pick_row_tile(m, cap=2048):
    # sublane-axis tile: biggest divisor of m out of {cap,...,8}, else m
    for cand in (4096, 2048, 1024, 512, 256, 128, 64, 32, 16, 8):
        if cand <= cap and m % cand == 0 and m >= cand:
            return cand
    return m


def _pick_lane_tile(n):
    # lane-axis tile for the (B, seg, N) output: multiple of 128 or full N
    for cand in (1024, 512, 256, 128):
        if n % cand == 0:
            return cand
    return n


# ---------------------------------------------------------------------------
# Pallas kernels
# ---------------------------------------------------------------------------
def _edgeconv2_kernel(nbr_ref, ctr_ref, wa_ref, wc_ref, b1_ref,
                      w2_ref, b2_ref, o_ref):
    """conv(2C->C1)+lrelu -> conv(C1->C2)+lrelu -> max over k neighbours.

    The 2C graph feature [nbr - ctr, ctr] is never formed:
        y = nbr @ Wa + ctr @ (Wb - Wa) + b
    The k axis is folded into one big (k*tm, C) matmul per conv.
    """
    k, tm, c = nbr_ref.shape
    base = jnp.dot(ctr_ref[...], wc_ref[...],
                   preferred_element_type=jnp.float32) + b1_ref[...]     # (tm, C1) f32
    y = jnp.dot(nbr_ref[...].reshape(k * tm, c), wa_ref[...],
                preferred_element_type=jnp.float32)                      # (k*tm, C1) f32
    c1 = y.shape[1]
    y = _lrelu(y.reshape(k, tm, c1) + base).astype(jnp.bfloat16)
    y = jnp.dot(y.reshape(k * tm, c1), w2_ref[...],
                preferred_element_type=jnp.float32) + b2_ref[...]        # (k*tm, C2) f32
    y = _lrelu(y)
    c2 = y.shape[1]
    o_ref[...] = jnp.max(y.reshape(k, tm, c2), axis=0).astype(o_ref.dtype)


def _edgeconv1_kernel(nbr_ref, ctr_ref, wa_ref, wc_ref, b1_ref, o_ref):
    """conv(2C->C1)+lrelu -> max over k neighbours (single conv variant)."""
    k, tm, c = nbr_ref.shape
    base = jnp.dot(ctr_ref[...], wc_ref[...],
                   preferred_element_type=jnp.float32) + b1_ref[...]
    y = jnp.dot(nbr_ref[...].reshape(k * tm, c), wa_ref[...],
                preferred_element_type=jnp.float32)
    c1 = y.shape[1]
    y = _lrelu(y.reshape(k, tm, c1) + base)
    o_ref[...] = jnp.max(y, axis=0).astype(o_ref.dtype)


def _make_conv_gmax_kernel(n_in):
    """conv(sum_i Ci -> Cout)+lrelu, running max over N chunks (grid axis 2).

    Keeps an (8, Cout) f32 accumulator in scratch; the cross-sublane reduce and
    the 1-sublane store happen only on the last chunk.
    """
    def kernel(*refs):
        xs = refs[:n_in]
        ws = refs[n_in:2 * n_in]
        b_ref = refs[2 * n_in]
        o_ref = refs[2 * n_in + 1]
        acc_ref = refs[2 * n_in + 2]

        y = jnp.dot(xs[0][0], ws[0][...], preferred_element_type=jnp.float32)
        for i in range(1, n_in):
            y = y + jnp.dot(xs[i][0], ws[i][...],
                            preferred_element_type=jnp.float32)
        y = _lrelu(y + b_ref[...])                          # (tn, Cout) f32
        tn, cout = y.shape
        if tn % 8 == 0:
            # leading-dim (VALU-only) reduce to 8 sublanes; no per-chunk XLU reduce
            part = jnp.max(y.reshape(tn // 8, 8, cout), axis=0)
        else:
            part = jnp.broadcast_to(jnp.max(y, axis=0, keepdims=True), (8, cout))

        ni = pl.program_id(2)

        @pl.when(ni == 0)
        def _():
            acc_ref[...] = part

        @pl.when(ni > 0)
        def _():
            acc_ref[...] = jnp.maximum(acc_ref[...], part)

        @pl.when(ni == pl.num_programs(2) - 1)
        def _():
            o_ref[0, 0] = jnp.max(acc_ref[...], axis=0, keepdims=True)

    return kernel


def _seg_head_kernel(x1_ref, x2_ref, x3_ref, glp_ref,
                     w8a_ref, w8b_ref, w8c_ref, b8_ref,
                     w9_ref, b9_ref, w10_ref, b10_ref, w11t_ref, o_ref):
    """conv8 (3 per-point slabs + per-batch gl part) -> conv9 -> conv10 -> conv11.

    Writes logits lane-dense as a (seg, tn) tile of the (B, seg, N) output.
    Dropout layers (dp1/dp2) are identity in eval mode.
    """
    h = jnp.dot(x1_ref[0], w8a_ref[...], preferred_element_type=jnp.float32)
    h = h + jnp.dot(x2_ref[0], w8b_ref[...], preferred_element_type=jnp.float32)
    h = h + jnp.dot(x3_ref[0], w8c_ref[...], preferred_element_type=jnp.float32)
    h = h + glp_ref[0] + b8_ref[...]                    # add per-batch gl @ W8_gl
    h = _lrelu(h).astype(jnp.bfloat16)
    h = jnp.dot(h, w9_ref[...], preferred_element_type=jnp.float32) + b9_ref[...]
    h = _lrelu(h).astype(jnp.bfloat16)
    h = jnp.dot(h, w10_ref[...], preferred_element_type=jnp.float32) + b10_ref[...]
    h = _lrelu(h).astype(jnp.bfloat16)                  # (tn, 128)
    # (seg,128) x (tn,128) contracted on the shared 128 axis -> lane-dense (seg, tn)
    out_t = jnp.einsum("sd,nd->sn", w11t_ref[...], h,
                       preferred_element_type=jnp.float32)
    o_ref[0] = out_t.astype(o_ref.dtype)


# ---------------------------------------------------------------------------
# Pallas wrappers
# ---------------------------------------------------------------------------
def edgeconv2(nbr, ctr, wa, wc, b1, w2, b2):
    k, M, C = nbr.shape
    C1 = wa.shape[1]
    C2 = w2.shape[1]
    tm = _pick_row_tile(M, cap=2048)
    return pl.pallas_call(
        _edgeconv2_kernel,
        out_shape=jax.ShapeDtypeStruct((M, C2), jnp.bfloat16),
        grid=(M // tm,),
        in_specs=[
            pl.BlockSpec((k, tm, C), lambda i: (0, i, 0)),
            pl.BlockSpec((tm, C), lambda i: (i, 0)),
            pl.BlockSpec((C, C1), lambda i: (0, 0)),
            pl.BlockSpec((C, C1), lambda i: (0, 0)),
            pl.BlockSpec((1, C1), lambda i: (0, 0)),
            pl.BlockSpec((C1, C2), lambda i: (0, 0)),
            pl.BlockSpec((1, C2), lambda i: (0, 0)),
        ],
        out_specs=pl.BlockSpec((tm, C2), lambda i: (i, 0)),
        compiler_params=pltpu.CompilerParams(
            dimension_semantics=("parallel",), vmem_limit_bytes=VMEM_LIMIT),
    )(nbr, ctr, wa, wc, b1, w2, b2)


def edgeconv1(nbr, ctr, wa, wc, b1):
    k, M, C = nbr.shape
    C1 = wa.shape[1]
    tm = _pick_row_tile(M, cap=2048)
    return pl.pallas_call(
        _edgeconv1_kernel,
        out_shape=jax.ShapeDtypeStruct((M, C1), jnp.bfloat16),
        grid=(M // tm,),
        in_specs=[
            pl.BlockSpec((k, tm, C), lambda i: (0, i, 0)),
            pl.BlockSpec((tm, C), lambda i: (i, 0)),
            pl.BlockSpec((C, C1), lambda i: (0, 0)),
            pl.BlockSpec((C, C1), lambda i: (0, 0)),
            pl.BlockSpec((1, C1), lambda i: (0, 0)),
        ],
        out_specs=pl.BlockSpec((tm, C1), lambda i: (i, 0)),
        compiler_params=pltpu.CompilerParams(
            dimension_semantics=("parallel",), vmem_limit_bytes=VMEM_LIMIT),
    )(nbr, ctr, wa, wc, b1)


def conv_gmax(xs, ws, b, n_splits_hint=2):
    """xs: list of (B, N, Ci) bf16, ws: list of (Ci, Cout) bf16, b: (1, Cout) f32.

    1x1 conv (summed over the input slabs) + BN(eval) + lrelu, then max over N.
    The N-reduction is split into `n_splits` parallel halves (partial maxima,
    finished with a tiny XLA max) so both v7x TensorCores get work at small B.
    Returns (B, Cout) f32.
    """
    B, N, _ = xs[0].shape
    Cout = ws[0].shape[1]
    n_in = len(xs)
    tn = _pick_row_tile(N, cap=1024)
    total_chunks = N // tn
    n_splits = n_splits_hint if (total_chunks % n_splits_hint == 0
                                 and total_chunks >= n_splits_hint) else 1
    n_chunks = total_chunks // n_splits

    def x_map(bi, si, ni):
        return (bi, si * n_chunks + ni, 0)

    in_specs = []
    for x in xs:
        in_specs.append(pl.BlockSpec((1, tn, x.shape[2]), x_map))
    for w in ws:
        in_specs.append(pl.BlockSpec(w.shape, lambda bi, si, ni: (0, 0)))
    in_specs.append(pl.BlockSpec((1, Cout), lambda bi, si, ni: (0, 0)))

    out = pl.pallas_call(
        _make_conv_gmax_kernel(n_in),
        out_shape=jax.ShapeDtypeStruct((B, n_splits, 1, Cout), jnp.float32),
        grid=(B, n_splits, n_chunks),
        in_specs=in_specs,
        out_specs=pl.BlockSpec((1, 1, 1, Cout), lambda bi, si, ni: (bi, si, 0, 0)),
        scratch_shapes=[pltpu.VMEM((8, Cout), jnp.float32)],
        compiler_params=pltpu.CompilerParams(
            dimension_semantics=("parallel", "parallel", "arbitrary"),
            vmem_limit_bytes=VMEM_LIMIT),
    )(*xs, *ws, b)
    return jnp.max(out, axis=(1, 2))                         # (B, Cout)


def seg_head(x1, x2, x3, glp, w8a, w8b, w8c, b8, w9, b9, w10, b10, w11t):
    """x1/x2/x3: (B, N, 64) bf16, glp: (B, 1, 256) f32 -> logits (B, seg, N) f32."""
    B, N, Cx = x1.shape
    seg = w11t.shape[0]
    tn = _pick_lane_tile(N)
    return pl.pallas_call(
        _seg_head_kernel,
        out_shape=jax.ShapeDtypeStruct((B, seg, N), jnp.float32),
        grid=(B, N // tn),
        in_specs=[
            pl.BlockSpec((1, tn, Cx), lambda bi, ni: (bi, ni, 0)),
            pl.BlockSpec((1, tn, Cx), lambda bi, ni: (bi, ni, 0)),
            pl.BlockSpec((1, tn, Cx), lambda bi, ni: (bi, ni, 0)),
            pl.BlockSpec((1, 1, glp.shape[2]), lambda bi, ni: (bi, 0, 0)),
            pl.BlockSpec(w8a.shape, lambda bi, ni: (0, 0)),
            pl.BlockSpec(w8b.shape, lambda bi, ni: (0, 0)),
            pl.BlockSpec(w8c.shape, lambda bi, ni: (0, 0)),
            pl.BlockSpec((1, b8.shape[1]), lambda bi, ni: (0, 0)),
            pl.BlockSpec(w9.shape, lambda bi, ni: (0, 0)),
            pl.BlockSpec((1, b9.shape[1]), lambda bi, ni: (0, 0)),
            pl.BlockSpec(w10.shape, lambda bi, ni: (0, 0)),
            pl.BlockSpec((1, b10.shape[1]), lambda bi, ni: (0, 0)),
            pl.BlockSpec(w11t.shape, lambda bi, ni: (0, 0)),
        ],
        out_specs=pl.BlockSpec((1, seg, tn), lambda bi, ni: (bi, 0, ni)),
        compiler_params=pltpu.CompilerParams(
            dimension_semantics=("parallel", "parallel"),
            vmem_limit_bytes=VMEM_LIMIT),
    )(x1, x2, x3, glp, w8a, w8b, w8c, b8, w9, b9, w10, b10, w11t)


# ---------------------------------------------------------------------------
# kNN / graph feature (glue in plain JAX)
# ---------------------------------------------------------------------------
def knn_idx(x, k):
    # x: (B, N, C); indices of k nearest neighbours (incl. self): (B, N, k)
    # inner product on the MXU (bf16 operands where x is bf16), distances in f32.
    inner = -2.0 * jnp.einsum("bnc,bmc->bnm", x, x,
                              preferred_element_type=jnp.float32)
    xf = x.astype(jnp.float32)
    xx = jnp.sum(xf * xf, axis=-1)                     # (B, N) f32
    pdist = -xx[:, None, :] - inner - xx[:, :, None]   # -||x_n - x_m||^2, f32
    _, idx = jax.lax.top_k(pdist, k)
    return idx


def graph_nbr_ctr(x, k):
    """x: (B, N, C) -> nbr (k, B*N, C) bf16, ctr (B*N, C) bf16.

    The [nbr - ctr, ctr] 2C concat is folded into the EdgeConv weights, so only
    the gathered neighbours and the (un-replicated) centers are materialised.
    """
    B, N, C = x.shape
    idx = knn_idx(x, k)
    xb = x.astype(jnp.bfloat16)
    nbr = jax.vmap(lambda pts, ind: pts[ind])(xb, idx)          # (B, N, k, C)
    nbr = jnp.transpose(nbr, (2, 0, 1, 3)).reshape(k, B * N, C)
    ctr = xb.reshape(B * N, C)
    return nbr, ctr


# ---------------------------------------------------------------------------
# Parameters.  BN uses PyTorch eval defaults (gamma=1, beta=0, mean=0, var=1).
# For real checkpoints use: scale = gamma / sqrt(var + eps), bias = beta - mean * scale.
# ---------------------------------------------------------------------------
def _bn(c):
    s = jnp.full((1, c), 1.0 / float(jnp.sqrt(1.0 + BN_EPS)), jnp.float32)
    b = jnp.zeros((1, c), jnp.float32)
    return s, b


def init_params(key, seg_num_all=SEG_NUM_ALL, emb_dims=EMB_DIMS):
    wshapes = {
        # Transform_Net
        "Wt1": (6, 64), "Wt2": (64, 128), "Wt3": (128, 1024),
        "Wl1": (1024, 512), "Wl2": (512, 256),
        # DGCNN_partseg
        "W1": (6, 64), "W2": (64, 64), "W3": (128, 64), "W4": (64, 64),
        "W5": (128, 64), "W6": (192, emb_dims), "W7": (16, 64),
        "W8": (emb_dims + 64 + 192, 256), "W9": (256, 256), "W10": (256, 128),
        "W11": (128, seg_num_all),
    }
    keys = jax.random.split(key, len(wshapes))
    p = {}
    for kk, (name, shp) in zip(keys, sorted(wshapes.items())):
        p[name] = 0.1 * jax.random.normal(kk, shp, jnp.float32)
    # transform layer: weight = 0, bias = identity (init.constant_/init.eye_)
    p["Wtf"] = jnp.zeros((256, 9), jnp.float32)
    p["btf"] = jnp.eye(3, dtype=jnp.float32).reshape(1, 9)
    for name, c in [("t1", 64), ("t2", 128), ("t3", 1024), ("l1", 512), ("l2", 256),
                    ("1", 64), ("2", 64), ("3", 64), ("4", 64), ("5", 64),
                    ("6", emb_dims), ("7", 64), ("8", 256), ("9", 256), ("10", 128)]:
        p["s" + name], p["b" + name] = _bn(c)
    return p


def fold_params(p):
    """Fold BN scale into weights; split EdgeConv / conv6 / conv8 weights for
    fusion; Pallas-kernel weights stored in bf16, glue (XLA) weights in f32."""
    emb = p["W6"].shape[1]
    bf = jnp.bfloat16

    def fold(w, s):
        return w * s                       # s: (1, Cout)

    def split_edge(w, s, c):
        wa = (w[:c] * s).astype(bf)        # applied to nbr
        wc = ((w[c:] - w[:c]) * s).astype(bf)   # applied to ctr  (Wb - Wa)
        return wa, wc

    f = {}
    # Transform_Net
    f["wt1a"], f["wt1c"] = split_edge(p["Wt1"], p["st1"], 3); f["bt1"] = p["bt1"]
    f["wt2"] = fold(p["Wt2"], p["st2"]).astype(bf); f["bt2"] = p["bt2"]
    f["wt3"] = fold(p["Wt3"], p["st3"]).astype(bf); f["bt3"] = p["bt3"]
    f["wl1"] = fold(p["Wl1"], p["sl1"]); f["bl1"] = p["bl1"]          # M=B, XLA
    f["wl2"] = fold(p["Wl2"], p["sl2"]); f["bl2"] = p["bl2"]
    f["wtf"] = p["Wtf"]; f["btf"] = p["btf"]
    # DGCNN_partseg
    f["w1a"], f["w1c"] = split_edge(p["W1"], p["s1"], 3); f["b1"] = p["b1"]
    f["w2"] = fold(p["W2"], p["s2"]).astype(bf); f["b2"] = p["b2"]
    f["w3a"], f["w3c"] = split_edge(p["W3"], p["s3"], 64); f["b3"] = p["b3"]
    f["w4"] = fold(p["W4"], p["s4"]).astype(bf); f["b4"] = p["b4"]
    f["w5a"], f["w5c"] = split_edge(p["W5"], p["s5"], 64); f["b5"] = p["b5"]
    w6f = fold(p["W6"], p["s6"])
    f["w6a"] = w6f[0:64].astype(bf)        # x1 slab
    f["w6b"] = w6f[64:128].astype(bf)      # x2 slab
    f["w6c"] = w6f[128:192].astype(bf)     # x3 slab
    f["b6"] = p["b6"]
    f["w7"] = fold(p["W7"], p["s7"]); f["b7"] = p["b7"]               # M=B, XLA
    w8f = fold(p["W8"], p["s8"])
    f["w8gl"] = w8f[: emb + 64]                      # per-batch [g, l7] part (XLA)
    f["w8x1"] = w8f[emb + 64: emb + 128].astype(bf)  # per-point x1 slab
    f["w8x2"] = w8f[emb + 128: emb + 192].astype(bf)  # per-point x2 slab
    f["w8x3"] = w8f[emb + 192:].astype(bf)           # per-point x3 slab
    f["b8"] = p["b8"]
    f["w9"] = fold(p["W9"], p["s9"]).astype(bf); f["b9"] = p["b9"]
    f["w10"] = fold(p["W10"], p["s10"]).astype(bf); f["b10"] = p["b10"]
    f["w11t"] = jnp.transpose(p["W11"]).astype(bf)   # (seg, 128), no bias/BN
    return f


# ---------------------------------------------------------------------------
# Model
# ---------------------------------------------------------------------------
def transform_net(nbr0, ctr0, fp, B, N):
    # conv1 -> conv2 -> max over k   (fused)
    h = edgeconv2(nbr0, ctr0, fp["wt1a"], fp["wt1c"], fp["bt1"],
                  fp["wt2"], fp["bt2"])                        # (B*N, 128) bf16
    # conv3 -> max over N            (fused)
    g = conv_gmax([h.reshape(B, N, 128)], [fp["wt3"]], fp["bt3"])   # (B, 1024) f32
    # tiny M=B tail in plain XLA
    h = _lrelu(g @ fp["wl1"] + fp["bl1"])
    h = _lrelu(h @ fp["wl2"] + fp["bl2"])
    t = h @ fp["wtf"] + fp["btf"]                              # (B, 9)
    return t.reshape(B, 3, 3)


def dgcnn_partseg(x, l, fp, k=K_NN):
    # x: (B, 3, N) as in PyTorch; l: (B, 16) one-hot category label
    B, _, N = x.shape

    pts = jnp.transpose(x, (0, 2, 1))                          # (B, N, 3) f32

    # spatial transform
    nbr0, ctr0 = graph_nbr_ctr(pts, k)
    t = transform_net(nbr0, ctr0, fp, B, N)                    # (B, 3, 3)
    pts = jnp.einsum("bnc,bcd->bnd", pts, t)                   # torch.bmm, f32

    # EdgeConv 1: conv1 -> conv2 -> max_k
    nbr, ctr = graph_nbr_ctr(pts, k)
    x1 = edgeconv2(nbr, ctr, fp["w1a"], fp["w1c"], fp["b1"], fp["w2"], fp["b2"])

    # EdgeConv 2: conv3 -> conv4 -> max_k
    nbr, ctr = graph_nbr_ctr(x1.reshape(B, N, 64), k)
    x2 = edgeconv2(nbr, ctr, fp["w3a"], fp["w3c"], fp["b3"], fp["w4"], fp["b4"])

    # EdgeConv 3: conv5 -> max_k
    nbr, ctr = graph_nbr_ctr(x2.reshape(B, N, 64), k)
    x3 = edgeconv1(nbr, ctr, fp["w5a"], fp["w5c"], fp["b5"])

    x1b = x1.reshape(B, N, 64)
    x2b = x2.reshape(B, N, 64)
    x3b = x3.reshape(B, N, 64)

    # conv6 + global max over N (fused; no (B*N,192) concat, no (B*N,emb) in HBM)
    g = conv_gmax([x1b, x2b, x3b], [fp["w6a"], fp["w6b"], fp["w6c"]], fp["b6"])

    # conv7 on the category label (M = B, plain XLA)
    l7 = _lrelu(l @ fp["w7"] + fp["b7"])                       # (B, 64)

    # per-batch part of conv8 (replaces the (B*N, 1280) concat + repeat)
    gl = jnp.concatenate([g, l7], axis=-1)                     # (B, emb + 64)
    glp = (gl @ fp["w8gl"]).reshape(B, 1, 256)                 # (B, 1, 256) f32

    # conv8..conv11 fused; dp1/dp2 are identity in eval mode
    out = seg_head(x1b, x2b, x3b, glp,
                   fp["w8x1"], fp["w8x2"], fp["w8x3"], fp["b8"],
                   fp["w9"], fp["b9"], fp["w10"], fp["b10"], fp["w11t"])
    return out                                                 # (B, seg, N) f32


# ---------------------------------------------------------------------------
if __name__ == "__main__":
    B, N = 2, 16
    key = jax.random.PRNGKey(0)
    kx, kl, kp = jax.random.split(key, 3)

    x = jax.random.normal(kx, (B, 3, N), jnp.float32)            # point cloud (B, 3, N)
    labels = jax.random.randint(kl, (B,), 0, 16)
    l = jax.nn.one_hot(labels, 16, dtype=jnp.float32)            # (B, 16) category one-hot

    raw = init_params(kp, seg_num_all=SEG_NUM_ALL, emb_dims=EMB_DIMS)
    fp = fold_params(raw)

    fwd = jax.jit(lambda xx, ll: dgcnn_partseg(xx, ll, fp, k=K_NN))
    out = fwd(x, l)
    jax.block_until_ready(out)

    assert out.shape == (B, SEG_NUM_ALL, N), out.shape
    assert jnp.all(jnp.isfinite(out))
    print("KERNEL_OK")
</pallas_src>

<mosaic_0001>
module attributes {stable_mosaic.version = 11 : i64} {
  func.func @_edgeconv2_kernel(%arg0: i32, %arg1: memref<4x32x3xbf16, #tpu.memory_space<vmem>>, %arg2: memref<32x3xbf16, #tpu.memory_space<vmem>>, %arg3: memref<3x64xbf16, #tpu.memory_space<vmem>>, %arg4: memref<3x64xbf16, #tpu.memory_space<vmem>>, %arg5: memref<1x64xf32, #tpu.memory_space<vmem>>, %arg6: memref<64x128xbf16, #tpu.memory_space<vmem>>, %arg7: memref<1x128xf32, #tpu.memory_space<vmem>>, %arg8: memref<32x128xbf16, #tpu.memory_space<vmem>>) attributes {dimension_semantics = [#tpu.dimension_semantics<parallel>], iteration_bounds = array<i64: 1>, scalar_prefetch = 0 : i64, scratch_operands = 0 : i64, tpu.core_type = #tpu.core_type<tc>, window_params = [{transform_indices = @transform_0, window_bounds = array<i64: 4, 32, 3>}, {transform_indices = @transform_1, window_bounds = array<i64: 32, 3>}, {pipeline_mode = #tpu.pipeline_mode<synchronous>, transform_indices = @transform_2, window_bounds = array<i64: 3, 64>}, {pipeline_mode = #tpu.pipeline_mode<synchronous>, transform_indices = @transform_3, window_bounds = array<i64: 3, 64>}, {pipeline_mode = #tpu.pipeline_mode<synchronous>, transform_indices = @transform_4, window_bounds = array<i64: 1, 64>}, {pipeline_mode = #tpu.pipeline_mode<synchronous>, transform_indices = @transform_5, window_bounds = array<i64: 64, 128>}, {pipeline_mode = #tpu.pipeline_mode<synchronous>, transform_indices = @transform_6, window_bounds = array<i64: 1, 128>}, {transform_indices = @transform_7, window_bounds = array<i64: 32, 128>}]} {
    %c0 = arith.constant 0 : index
    %c0_0 = arith.constant 0 : index
    %0 = vector.load %arg2[%c0, %c0_0] : memref<32x3xbf16, #tpu.memory_space<vmem>>, vector<32x3xbf16>
    %c0_1 = arith.constant 0 : index
    %c0_2 = arith.constant 0 : index
    %1 = vector.load %arg4[%c0_1, %c0_2] : memref<3x64xbf16, #tpu.memory_space<vmem>>, vector<3x64xbf16>
    %cst = arith.constant dense<0.000000e+00> : vector<32x64xf32>
    %2 = tpu.matmul %0, %1, %cst {dimension_numbers = #tpu.dot_dimension_numbers<[1], [0], [0], [1], [0, 0, 1, 1], [], []>} : vector<32x3xbf16>, vector<3x64xbf16>, vector<32x64xf32> -> vector<32x64xf32>
    %c0_3 = arith.constant 0 : index
    %c0_4 = arith.constant 0 : index
    %3 = vector.load %arg5[%c0_3, %c0_4] : memref<1x64xf32, #tpu.memory_space<vmem>>, vector<1x64xf32>
    %4 = vector.broadcast %3 : vector<1x64xf32> to vector<32x64xf32>
    %5 = arith.addf %2, %4 : vector<32x64xf32>
    %c0_5 = arith.constant 0 : index
    %c0_6 = arith.constant 0 : index
    %c0_7 = arith.constant 0 : index
    %6 = vector.load %arg1[%c0_5, %c0_6, %c0_7] : memref<4x32x3xbf16, #tpu.memory_space<vmem>>, vector<4x32x3xbf16>
    %7 = vector.shape_cast %6 : vector<4x32x3xbf16> to vector<128x3xbf16>
    %c0_8 = arith.constant 0 : index
    %c0_9 = arith.constant 0 : index
    %8 = vector.load %arg3[%c0_8, %c0_9] : memref<3x64xbf16, #tpu.memory_space<vmem>>, vector<3x64xbf16>
    %cst_10 = arith.constant dense<0.000000e+00> : vector<128x64xf32>
    %9 = tpu.matmul %7, %8, %cst_10 {dimension_numbers = #tpu.dot_dimension_numbers<[1], [0], [0], [1], [0, 0, 1, 1], [], []>} : vector<128x3xbf16>, vector<3x64xbf16>, vector<128x64xf32> -> vector<128x64xf32>
    %10 = vector.shape_cast %9 : vector<128x64xf32> to vector<4x32x64xf32>
    %11 = vector.shape_cast %5 : vector<32x64xf32> to vector<1x32x64xf32>
    %12 = vector.broadcast %11 : vector<1x32x64xf32> to vector<4x32x64xf32>
    %13 = arith.addf %10, %12 : vector<4x32x64xf32>
    %cst_11 = arith.constant 0.000000e+00 : f32
    %14 = vector.broadcast %cst_11 : f32 to vector<4x32x64xf32>
    %15 = arith.cmpf ogt, %13, %14 : vector<4x32x64xf32>
    %cst_12 = arith.constant 2.000000e-01 : f32
    %16 = vector.broadcast %cst_12 : f32 to vector<4x32x64xf32>
    %17 = arith.mulf %16, %13 : vector<4x32x64xf32>
    %18 = arith.select %15, %13, %17 : vector<4x32x64xi1>, vector<4x32x64xf32>
    %19 = arith.truncf %18 : vector<4x32x64xf32> to vector<4x32x64xbf16>
    %20 = vector.shape_cast %19 : vector<4x32x64xbf16> to vector<128x64xbf16>
    %c0_13 = arith.constant 0 : index
    %c0_14 = arith.constant 0 : index
    %21 = vector.load %arg6[%c0_13, %c0_14] : memref<64x128xbf16, #tpu.memory_space<vmem>>, vector<64x128xbf16>
    %cst_15 = arith.constant dense<0.000000e+00> : vector<128x128xf32>
    %22 = tpu.matmul %20, %21, %cst_15 {dimension_numbers = #tpu.dot_dimension_numbers<[1], [0], [0], [1], [0, 0, 1, 1], [], []>} : vector<128x64xbf16>, vector<64x128xbf16>, vector<128x128xf32> -> vector<128x128xf32>
    %c0_16 = arith.constant 0 : index
    %c0_17 = arith.constant 0 : index
    %23 = vector.load %arg7[%c0_16, %c0_17] : memref<1x128xf32, #tpu.memory_space<vmem>>, vector<1x128xf32>
    %24 = vector.broadcast %23 : vector<1x128xf32> to vector<128x128xf32>
    %25 = arith.addf %22, %24 : vector<128x128xf32>
    %cst_18 = arith.constant 0.000000e+00 : f32
    %26 = vector.broadcast %cst_18 : f32 to vector<128x128xf32>
    %27 = arith.cmpf ogt, %25, %26 : vector<128x128xf32>
    %cst_19 = arith.constant 2.000000e-01 : f32
    %28 = vector.broadcast %cst_19 : f32 to vector<128x128xf32>
    %29 = arith.mulf %28, %25 : vector<128x128xf32>
    %30 = arith.select %27, %25, %29 : vector<128x128xi1>, vector<128x128xf32>
    %31 = vector.shape_cast %30 : vector<128x128xf32> to vector<4x32x128xf32>
    %cst_20 = arith.constant dense<0xFF800000> : vector<32x128xf32>
    %32 = vector.multi_reduction <maximumf>, %31, %cst_20 [0] : vector<4x32x128xf32> to vector<32x128xf32>
    %33 = arith.truncf %32 : vector<32x128xf32> to vector<32x128xbf16>
    %c0_21 = arith.constant 0 : index
    %c0_22 = arith.constant 0 : index
    %34 = vector.load %arg8[%c0_21, %c0_22] : memref<32x128xbf16, #tpu.memory_space<vmem>>, vector<32x128xbf16>
    tpu.vector_store %arg8[%c0_21, %c0_22], %33 {strides = array<i32>} : memref<32x128xbf16, #tpu.memory_space<vmem>>, vector<32x128xbf16>,
    return
  }
  func.func @transform_0(%arg0: i32) -> (i32, i32, i32) {
    %c0_i32 = arith.constant 0 : i32
    %c0_i32_0 = arith.constant 0 : i32
    %c0_i32_1 = arith.constant 0 : i32
    return %c0_i32, %arg0, %c0_i32_0 : i32, i32, i32
  }
  func.func @transform_1(%arg0: i32) -> (i32, i32) {
    %c0_i32 = arith.constant 0 : i32
    %c0_i32_0 = arith.constant 0 : i32
    return %arg0, %c0_i32 : i32, i32
  }
  func.func @transform_2(%arg0: i32) -> (i32, i32) {
    %c0_i32 = arith.constant 0 : i32
    %c0_i32_0 = arith.constant 0 : i32
    %c0_i32_1 = arith.constant 0 : i32
    return %c0_i32, %c0_i32_0 : i32, i32
  }
  func.func @transform_3(%arg0: i32) -> (i32, i32) {
    %c0_i32 = arith.constant 0 : i32
    %c0_i32_0 = arith.constant 0 : i32
    %c0_i32_1 = arith.constant 0 : i32
    return %c0_i32, %c0_i32_0 : i32, i32
  }
  func.func @transform_4(%arg0: i32) -> (i32, i32) {
    %c0_i32 = arith.constant 0 : i32
    %c0_i32_0 = arith.constant 0 : i32
    %c0_i32_1 = arith.constant 0 : i32
    return %c0_i32, %c0_i32_0 : i32, i32
  }
  func.func @transform_5(%arg0: i32) -> (i32, i32) {
    %c0_i32 = arith.constant 0 : i32
    %c0_i32_0 = arith.constant 0 : i32
    %c0_i32_1 = arith.constant 0 : i32
    return %c0_i32, %c0_i32_0 : i32, i32
  }
  func.func @transform_6(%arg0: i32) -> (i32, i32) {
    %c0_i32 = arith.constant 0 : i32
    %c0_i32_0 = arith.constant 0 : i32
    %c0_i32_1 = arith.constant 0 : i32
    return %c0_i32, %c0_i32_0 : i32, i32
  }
  func.func @transform_7(%arg0: i32) -> (i32, i32) {
    %c0_i32 = arith.constant 0 : i32
    %c0_i32_0 = arith.constant 0 : i32
    return %arg0, %c0_i32 : i32, i32
  }
}

module attributes {stable_mosaic.version = 11 : i64} {
  func.func @kernel(%arg0: i32, %arg1: i32, %arg2: i32, %arg3: memref<1x16x128xbf16, #tpu.memory_space<vmem>>, %arg4: memref<128x1024xbf16, #tpu.memory_space<vmem>>, %arg5: memref<1x1024xf32, #tpu.memory_space<vmem>>, %arg6: memref<1x1x1x1024xf32, #tpu.memory_space<vmem>>, %arg7: memref<8x1024xf32, #tpu.memory_space<vmem>>) attributes {dimension_semantics = [#tpu.dimension_semantics<parallel>, #tpu.dimension_semantics<parallel>, #tpu.dimension_semantics<arbitrary>], iteration_bounds = array<i64: 2, 1, 1>, scalar_prefetch = 0 : i64, scratch_operands = 1 : i64, tpu.core_type = #tpu.core_type<tc>, window_params = [{transform_indices = @transform_0, window_bounds = array<i64: 1, 16, 128>}, {pipeline_mode = #tpu.pipeline_mode<synchronous>, transform_indices = @transform_1, window_bounds = array<i64: 128, 1024>}, {pipeline_mode = #tpu.pipeline_mode<synchronous>, transform_indices = @transform_2, window_bounds = array<i64: 1, 1024>}, {transform_indices = @transform_3, window_bounds = array<i64: 1, 1, 1, 1024>}]} {
    %c0 = arith.constant 0 : index
    %c0_0 = arith.constant 0 : index
    %c0_1 = arith.constant 0 : index
    %0 = vector.load %arg3[%c0, %c0_0, %c0_1] : memref<1x16x128xbf16, #tpu.memory_space<vmem>>, vector<1x16x128xbf16>
    %1 = vector.shape_cast %0 : vector<1x16x128xbf16> to vector<16x128xbf16>
    %c0_2 = arith.constant 0 : index
    %c0_3 = arith.constant 0 : index
    %2 = vector.load %arg4[%c0_2, %c0_3] : memref<128x1024xbf16, #tpu.memory_space<vmem>>, vector<128x1024xbf16>
    %cst = arith.constant dense<0.000000e+00> : vector<16x1024xf32>
    %3 = tpu.matmul %1, %2, %cst {dimension_numbers = #tpu.dot_dimension_numbers<[1], [0], [0], [1], [0, 0, 1, 1], [], []>} : vector<16x128xbf16>, vector<128x1024xbf16>, vector<16x1024xf32> -> vector<16x1024xf32>
    %c0_4 = arith.constant 0 : index
    %c0_5 = arith.constant 0 : index
    %4 = vector.load %arg5[%c0_4, %c0_5] : memref<1x1024xf32, #tpu.memory_space<vmem>>, vector<1x1024xf32>
    %5 = vector.broadcast %4 : vector<1x1024xf32> to vector<16x1024xf32>
    %6 = arith.addf %3, %5 : vector<16x1024xf32>
    %cst_6 = arith.constant 0.000000e+00 : f32
    %7 = vector.broadcast %cst_6 : f32 to vector<16x1024xf32>
    %8 = arith.cmpf ogt, %6, %7 : vector<16x1024xf32>
    %cst_7 = arith.constant 2.000000e-01 : f32
    %9 = vector.broadcast %cst_7 : f32 to vector<16x1024xf32>
    %10 = arith.mulf %9, %6 : vector<16x1024xf32>
    %11 = arith.select %8, %6, %10 : vector<16x1024xi1>, vector<16x1024xf32>
    %12 = vector.shape_cast %11 : vector<16x1024xf32> to vector<2x8x1024xf32>
    %cst_8 = arith.constant dense<0xFF800000> : vector<8x1024xf32>
    %13 = vector.multi_reduction <maximumf>, %12, %cst_8 [0] : vector<2x8x1024xf32> to vector<8x1024xf32>
    %c0_i32 = arith.constant 0 : i32
    %14 = arith.cmpi eq, %arg2, %c0_i32 : i32
    %15 = arith.extui %14 : i1 to i32
    %c0_i32_9 = arith.constant 0 : i32
    %16 = arith.cmpi ne, %15, %c0_i32_9 : i32
    scf.if %16 {
      %c0_14 = arith.constant 0 : index
      %c0_15 = arith.constant 0 : index
      %23 = vector.load %arg7[%c0_14, %c0_15] : memref<8x1024xf32, #tpu.memory_space<vmem>>, vector<8x1024xf32>
      tpu.vector_store %arg7[%c0_14, %c0_15], %13 {strides = array<i32>} : memref<8x1024xf32, #tpu.memory_space<vmem>>, vector<8x1024xf32>,
    } else {
    }
    %c0_i32_10 = arith.constant 0 : i32
    %17 = arith.cmpi sgt, %arg2, %c0_i32_10 : i32
    %18 = arith.extui %17 : i1 to i32
    %c0_i32_11 = arith.constant 0 : i32
    %19 = arith.cmpi ne, %18, %c0_i32_11 : i32
    scf.if %19 {
      %c0_14 = arith.constant 0 : index
      %c0_15 = arith.constant 0 : index
      %23 = vector.load %arg7[%c0_14, %c0_15] : memref<8x1024xf32, #tpu.memory_space<vmem>>, vector<8x1024xf32>
      %24 = arith.maximumf %23, %13 : vector<8x1024xf32>
      %c0_16 = arith.constant 0 : index
      %c0_17 = arith.constant 0 : index
      %25 = vector.load %arg7[%c0_16, %c0_17] : memref<8x1024xf32, #tpu.memory_space<vmem>>, vector<8x1024xf32>
      tpu.vector_store %arg7[%c0_16, %c0_17], %24 {strides = array<i32>} : memref<8x1024xf32, #tpu.memory_space<vmem>>, vector<8x1024xf32>,
    } else {
    }
    %c0_i32_12 = arith.constant 0 : i32
    %20 = arith.cmpi eq, %arg2, %c0_i32_12 : i32
    %21 = arith.extui %20 : i1 to i32
    %c0_i32_13 = arith.constant 0 : i32
    %22 = arith.cmpi ne, %21, %c0_i32_13 : i32
    scf.if %22 {
      %c0_14 = arith.constant 0 : index
      %c0_15 = arith.constant 0 : index
      %23 = vector.load %arg7[%c0_14, %c0_15] : memref<8x1024xf32, #tpu.memory_space<vmem>>, vector<8x1024xf32>
      %cst_16 = arith.constant dense<0xFF800000> : vector<1024xf32>
      %24 = vector.multi_reduction <maximumf>, %23, %cst_16 [0] : vector<8x1024xf32> to vector<1024xf32>
      %25 = vector.shape_cast %24 : vector<1024xf32> to vector<1x1024xf32>
      %c0_17 = arith.constant 0 : index
      %c0_18 = arith.constant 0 : index
      %c0_19 = arith.constant 0 : index
      %c0_20 = arith.constant 0 : index
      %26 = vector.load %arg6[%c0_17, %c0_18, %c0_19, %c0_20] : memref<1x1x1x1024xf32, #tpu.memory_space<vmem>>, vector<1x1x1x1024xf32>
      %27 = vector.shape_cast %26 : vector<1x1x1x1024xf32> to vector<1x1024xf32>
      %28 = vector.shape_cast %25 : vector<1x1024xf32> to vector<1x1x1x1024xf32>
      tpu.vector_store %arg6[%c0_17, %c0_18, %c0_19, %c0_20], %28 {strides = array<i32>} : memref<1x1x1x1024xf32, #tpu.memory_space<vmem>>, vector<1x1x1x1024xf32>,
    } else {
    }
    return
  }
  func.func @transform_0(%arg0: i32, %arg1: i32, %arg2: i32) -> (i32, i32, i32) {
    %c1_i32 = arith.constant 1 : i32
    %0 = arith.muli %arg1, %c1_i32 : i32
    %1 = arith.addi %0, %arg2 : i32
    %c0_i32 = arith.constant 0 : i32
    %c0_i32_0 = arith.constant 0 : i32
    return %arg0, %1, %c0_i32 : i32, i32, i32
  }
  func.func @transform_1(%arg0: i32, %arg1: i32, %arg2: i32) -> (i32, i32) {
    %c0_i32 = arith.constant 0 : i32
    %c0_i32_0 = arith.constant 0 : i32
    %c0_i32_1 = arith.constant 0 : i32
    return %c0_i32, %c0_i32_0 : i32, i32
  }
  func.func @transform_2(%arg0: i32, %arg1: i32, %arg2: i32) -> (i32, i32) {
    %c0_i32 = arith.constant 0 : i32
    %c0_i32_0 = arith.constant 0 : i32
    %c0_i32_1 = arith.constant 0 : i32
    return %c0_i32, %c0_i32_0 : i32, i32
  }
  func.func @transform_3(%arg0: i32, %arg1: i32, %arg2: i32) -> (i32, i32, i32, i32) {
    %c0_i32 = arith.constant 0 : i32
    %c0_i32_0 = arith.constant 0 : i32
    %c0_i32_1 = arith.constant 0 : i32
    return %arg0, %arg1, %c0_i32, %c0_i32_0 : i32, i32, i32, i32
  }
}

module attributes {stable_mosaic.version = 11 : i64} {
  func.func @_edgeconv2_kernel(%arg0: i32, %arg1: memref<4x32x3xbf16, #tpu.memory_space<vmem>>, %arg2: memref<32x3xbf16, #tpu.memory_space<vmem>>, %arg3: memref<3x64xbf16, #tpu.memory_space<vmem>>, %arg4: memref<3x64xbf16, #tpu.memory_space<vmem>>, %arg5: memref<1x64xf32, #tpu.memory_space<vmem>>, %arg6: memref<64x64xbf16, #tpu.memory_space<vmem>>, %arg7: memref<1x64xf32, #tpu.memory_space<vmem>>, %arg8: memref<32x64xbf16, #tpu.memory_space<vmem>>) attributes {dimension_semantics = [#tpu.dimension_semantics<parallel>], iteration_bounds = array<i64: 1>, scalar_prefetch = 0 : i64, scratch_operands = 0 : i64, tpu.core_type = #tpu.core_type<tc>, window_params = [{transform_indices = @transform_0, window_bounds = array<i64: 4, 32, 3>}, {transform_indices = @transform_1, window_bounds = array<i64: 32, 3>}, {pipeline_mode = #tpu.pipeline_mode<synchronous>, transform_indices = @transform_2, window_bounds = array<i64: 3, 64>}, {pipeline_mode = #tpu.pipeline_mode<synchronous>, transform_indices = @transform_3, window_bounds = array<i64: 3, 64>}, {pipeline_mode = #tpu.pipeline_mode<synchronous>, transform_indices = @transform_4, window_bounds = array<i64: 1, 64>}, {pipeline_mode = #tpu.pipeline_mode<synchronous>, transform_indices = @transform_5, window_bounds = array<i64: 64, 64>}, {pipeline_mode = #tpu.pipeline_mode<synchronous>, transform_indices = @transform_6, window_bounds = array<i64: 1, 64>}, {transform_indices = @transform_7, window_bounds = array<i64: 32, 64>}]} {
    %c0 = arith.constant 0 : index
    %c0_0 = arith.constant 0 : index
    %0 = vector.load %arg2[%c0, %c0_0] : memref<32x3xbf16, #tpu.memory_space<vmem>>, vector<32x3xbf16>
    %c0_1 = arith.constant 0 : index
    %c0_2 = arith.constant 0 : index
    %1 = vector.load %arg4[%c0_1, %c0_2] : memref<3x64xbf16, #tpu.memory_space<vmem>>, vector<3x64xbf16>
    %cst = arith.constant dense<0.000000e+00> : vector<32x64xf32>
    %2 = tpu.matmul %0, %1, %cst {dimension_numbers = #tpu.dot_dimension_numbers<[1], [0], [0], [1], [0, 0, 1, 1], [], []>} : vector<32x3xbf16>, vector<3x64xbf16>, vector<32x64xf32> -> vector<32x64xf32>
    %c0_3 = arith.constant 0 : index
    %c0_4 = arith.constant 0 : index
    %3 = vector.load %arg5[%c0_3, %c0_4] : memref<1x64xf32, #tpu.memory_space<vmem>>, vector<1x64xf32>
    %4 = vector.broadcast %3 : vector<1x64xf32> to vector<32x64xf32>
    %5 = arith.addf %2, %4 : vector<32x64xf32>
    %c0_5 = arith.constant 0 : index
    %c0_6 = arith.constant 0 : index
    %c0_7 = arith.constant 0 : index
    %6 = vector.load %arg1[%c0_5, %c0_6, %c0_7] : memref<4x32x3xbf16, #tpu.memory_space<vmem>>, vector<4x32x3xbf16>
    %7 = vector.shape_cast %6 : vector<4x32x3xbf16> to vector<128x3xbf16>
    %c0_8 = arith.constant 0 : index
    %c0_9 = arith.constant 0 : index
    %8 = vector.load %arg3[%c0_8, %c0_9] : memref<3x64xbf16, #tpu.memory_space<vmem>>, vector<3x64xbf16>
    %cst_10 = arith.constant dense<0.000000e+00> : vector<128x64xf32>
    %9 = tpu.matmul %7, %8, %cst_10 {dimension_numbers = #tpu.dot_dimension_numbers<[1], [0], [0], [1], [0, 0, 1, 1], [], []>} : vector<128x3xbf16>, vector<3x64xbf16>, vector<128x64xf32> -> vector<128x64xf32>
    %10 = vector.shape_cast %9 : vector<128x64xf32> to vector<4x32x64xf32>
    %11 = vector.shape_cast %5 : vector<32x64xf32> to vector<1x32x64xf32>
    %12 = vector.broadcast %11 : vector<1x32x64xf32> to vector<4x32x64xf32>
    %13 = arith.addf %10, %12 : vector<4x32x64xf32>
    %cst_11 = arith.constant 0.000000e+00 : f32
    %14 = vector.broadcast %cst_11 : f32 to vector<4x32x64xf32>
    %15 = arith.cmpf ogt, %13, %14 : vector<4x32x64xf32>
    %cst_12 = arith.constant 2.000000e-01 : f32
    %16 = vector.broadcast %cst_12 : f32 to vector<4x32x64xf32>
    %17 = arith.mulf %16, %13 : vector<4x32x64xf32>
    %18 = arith.select %15, %13, %17 : vector<4x32x64xi1>, vector<4x32x64xf32>
    %19 = arith.truncf %18 : vector<4x32x64xf32> to vector<4x32x64xbf16>
    %20 = vector.shape_cast %19 : vector<4x32x64xbf16> to vector<128x64xbf16>
    %c0_13 = arith.constant 0 : index
    %c0_14 = arith.constant 0 : index
    %21 = vector.load %arg6[%c0_13, %c0_14] : memref<64x64xbf16, #tpu.memory_space<vmem>>, vector<64x64xbf16>
    %cst_15 = arith.constant dense<0.000000e+00> : vector<128x64xf32>
    %22 = tpu.matmul %20, %21, %cst_15 {dimension_numbers = #tpu.dot_dimension_numbers<[1], [0], [0], [1], [0, 0, 1, 1], [], []>} : vector<128x64xbf16>, vector<64x64xbf16>, vector<128x64xf32> -> vector<128x64xf32>
    %c0_16 = arith.constant 0 : index
    %c0_17 = arith.constant 0 : index
    %23 = vector.load %arg7[%c0_16, %c0_17] : memref<1x64xf32, #tpu.memory_space<vmem>>, vector<1x64xf32>
    %24 = vector.broadcast %23 : vector<1x64xf32> to vector<128x64xf32>
    %25 = arith.addf %22, %24 : vector<128x64xf32>
    %cst_18 = arith.constant 0.000000e+00 : f32
    %26 = vector.broadcast %cst_18 : f32 to vector<128x64xf32>
    %27 = arith.cmpf ogt, %25, %26 : vector<128x64xf32>
    %cst_19 = arith.constant 2.000000e-01 : f32
    %28 = vector.broadcast %cst_19 : f32 to vector<128x64xf32>
    %29 = arith.mulf %28, %25 : vector<128x64xf32>
    %30 = arith.select %27, %25, %29 : vector<128x64xi1>, vector<128x64xf32>
    %31 = vector.shape_cast %30 : vector<128x64xf32> to vector<4x32x64xf32>
    %cst_20 = arith.constant dense<0xFF800000> : vector<32x64xf32>
    %32 = vector.multi_reduction <maximumf>, %31, %cst_20 [0] : vector<4x32x64xf32> to vector<32x64xf32>
    %33 = arith.truncf %32 : vector<32x64xf32> to vector<32x64xbf16>
    %c0_21 = arith.constant 0 : index
    %c0_22 = arith.constant 0 : index
    %34 = vector.load %arg8[%c0_21, %c0_22] : memref<32x64xbf16, #tpu.memory_space<vmem>>, vector<32x64xbf16>
    tpu.vector_store %arg8[%c0_21, %c0_22], %33 {strides = array<i32>} : memref<32x64xbf16, #tpu.memory_space<vmem>>, vector<32x64xbf16>,
    return
  }
  func.func @transform_0(%arg0: i32) -> (i32, i32, i32) {
    %c0_i32 = arith.constant 0 : i32
    %c0_i32_0 = arith.constant 0 : i32
    %c0_i32_1 = arith.constant 0 : i32
    return %c0_i32, %arg0, %c0_i32_0 : i32, i32, i32
  }
  func.func @transform_1(%arg0: i32) -> (i32, i32) {
    %c0_i32 = arith.constant 0 : i32
    %c0_i32_0 = arith.constant 0 : i32
    return %arg0, %c0_i32 : i32, i32
  }
  func.func @transform_2(%arg0: i32) -> (i32, i32) {
    %c0_i32 = arith.constant 0 : i32
    %c0_i32_0 = arith.constant 0 : i32
    %c0_i32_1 = arith.constant 0 : i32
    return %c0_i32, %c0_i32_0 : i32, i32
  }
  func.func @transform_3(%arg0: i32) -> (i32, i32) {
    %c0_i32 = arith.constant 0 : i32
    %c0_i32_0 = arith.constant 0 : i32
    %c0_i32_1 = arith.constant 0 : i32
    return %c0_i32, %c0_i32_0 : i32, i32
  }
  func.func @transform_4(%arg0: i32) -> (i32, i32) {
    %c0_i32 = arith.constant 0 : i32
    %c0_i32_0 = arith.constant 0 : i32
    %c0_i32_1 = arith.constant 0 : i32
    return %c0_i32, %c0_i32_0 : i32, i32
  }
  func.func @transform_5(%arg0: i32) -> (i32, i32) {
    %c0_i32 = arith.constant 0 : i32
    %c0_i32_0 = arith.constant 0 : i32
    %c0_i32_1 = arith.constant 0 : i32
    return %c0_i32, %c0_i32_0 : i32, i32
  }
  func.func @transform_6(%arg0: i32) -> (i32, i32) {
    %c0_i32 = arith.constant 0 : i32
    %c0_i32_0 = arith.constant 0 : i32
    %c0_i32_1 = arith.constant 0 : i32
    return %c0_i32, %c0_i32_0 : i32, i32
  }
  func.func @transform_7(%arg0: i32) -> (i32, i32) {
    %c0_i32 = arith.constant 0 : i32
    %c0_i32_0 = arith.constant 0 : i32
    return %arg0, %c0_i32 : i32, i32
  }
}

module attributes {stable_mosaic.version = 11 : i64} {
  func.func @_edgeconv1_kernel(%arg0: i32, %arg1: memref<4x32x64xbf16, #tpu.memory_space<vmem>>, %arg2: memref<32x64xbf16, #tpu.memory_space<vmem>>, %arg3: memref<64x64xbf16, #tpu.memory_space<vmem>>, %arg4: memref<64x64xbf16, #tpu.memory_space<vmem>>, %arg5: memref<1x64xf32, #tpu.memory_space<vmem>>, %arg6: memref<32x64xbf16, #tpu.memory_space<vmem>>) attributes {dimension_semantics = [#tpu.dimension_semantics<parallel>], iteration_bounds = array<i64: 1>, scalar_prefetch = 0 : i64, scratch_operands = 0 : i64, tpu.core_type = #tpu.core_type<tc>, window_params = [{transform_indices = @transform_0, window_bounds = array<i64: 4, 32, 64>}, {transform_indices = @transform_1, window_bounds = array<i64: 32, 64>}, {pipeline_mode = #tpu.pipeline_mode<synchronous>, transform_indices = @transform_2, window_bounds = array<i64: 64, 64>}, {pipeline_mode = #tpu.pipeline_mode<synchronous>, transform_indices = @transform_3, window_bounds = array<i64: 64, 64>}, {pipeline_mode = #tpu.pipeline_mode<synchronous>, transform_indices = @transform_4, window_bounds = array<i64: 1, 64>}, {transform_indices = @transform_5, window_bounds = array<i64: 32, 64>}]} {
    %c0 = arith.constant 0 : index
    %c0_0 = arith.constant 0 : index
    %0 = vector.load %arg2[%c0, %c0_0] : memref<32x64xbf16, #tpu.memory_space<vmem>>, vector<32x64xbf16>
    %c0_1 = arith.constant 0 : index
    %c0_2 = arith.constant 0 : index
    %1 = vector.load %arg4[%c0_1, %c0_2] : memref<64x64xbf16, #tpu.memory_space<vmem>>, vector<64x64xbf16>
    %cst = arith.constant dense<0.000000e+00> : vector<32x64xf32>
    %2 = tpu.matmul %0, %1, %cst {dimension_numbers = #tpu.dot_dimension_numbers<[1], [0], [0], [1], [0, 0, 1, 1], [], []>} : vector<32x64xbf16>, vector<64x64xbf16>, vector<32x64xf32> -> vector<32x64xf32>
    %c0_3 = arith.constant 0 : index
    %c0_4 = arith.constant 0 : index
    %3 = vector.load %arg5[%c0_3, %c0_4] : memref<1x64xf32, #tpu.memory_space<vmem>>, vector<1x64xf32>
    %4 = vector.broadcast %3 : vector<1x64xf32> to vector<32x64xf32>
    %5 = arith.addf %2, %4 : vector<32x64xf32>
    %c0_5 = arith.constant 0 : index
    %c0_6 = arith.constant 0 : index
    %c0_7 = arith.constant 0 : index
    %6 = vector.load %arg1[%c0_5, %c0_6, %c0_7] : memref<4x32x64xbf16, #tpu.memory_space<vmem>>, vector<4x32x64xbf16>
    %7 = vector.shape_cast %6 : vector<4x32x64xbf16> to vector<128x64xbf16>
    %c0_8 = arith.constant 0 : index
    %c0_9 = arith.constant 0 : index
    %8 = vector.load %arg3[%c0_8, %c0_9] : memref<64x64xbf16, #tpu.memory_space<vmem>>, vector<64x64xbf16>
    %cst_10 = arith.constant dense<0.000000e+00> : vector<128x64xf32>
    %9 = tpu.matmul %7, %8, %cst_10 {dimension_numbers = #tpu.dot_dimension_numbers<[1], [0], [0], [1], [0, 0, 1, 1], [], []>} : vector<128x64xbf16>, vector<64x64xbf16>, vector<128x64xf32> -> vector<128x64xf32>
    %10 = vector.shape_cast %9 : vector<128x64xf32> to vector<4x32x64xf32>
    %11 = vector.shape_cast %5 : vector<32x64xf32> to vector<1x32x64xf32>
    %12 = vector.broadcast %11 : vector<1x32x64xf32> to vector<4x32x64xf32>
    %13 = arith.addf %10, %12 : vector<4x32x64xf32>
    %cst_11 = arith.constant 0.000000e+00 : f32
    %14 = vector.broadcast %cst_11 : f32 to vector<4x32x64xf32>
    %15 = arith.cmpf ogt, %13, %14 : vector<4x32x64xf32>
    %cst_12 = arith.constant 2.000000e-01 : f32
    %16 = vector.broadcast %cst_12 : f32 to vector<4x32x64xf32>
    %17 = arith.mulf %16, %13 : vector<4x32x64xf32>
    %18 = arith.select %15, %13, %17 : vector<4x32x64xi1>, vector<4x32x64xf32>
    %cst_13 = arith.constant dense<0xFF800000> : vector<32x64xf32>
    %19 = vector.multi_reduction <maximumf>, %18, %cst_13 [0] : vector<4x32x64xf32> to vector<32x64xf32>
    %20 = arith.truncf %19 : vector<32x64xf32> to vector<32x64xbf16>
    %c0_14 = arith.constant 0 : index
    %c0_15 = arith.constant 0 : index
    %21 = vector.load %arg6[%c0_14, %c0_15] : memref<32x64xbf16, #tpu.memory_space<vmem>>, vector<32x64xbf16>
    tpu.vector_store %arg6[%c0_14, %c0_15], %20 {strides = array<i32>} : memref<32x64xbf16, #tpu.memory_space<vmem>>, vector<32x64xbf16>,
    return
  }
  func.func @transform_0(%arg0: i32) -> (i32, i32, i32) {
    %c0_i32 = arith.constant 0 : i32
    %c0_i32_0 = arith.constant 0 : i32
    %c0_i32_1 = arith.constant 0 : i32
    return %c0_i32, %arg0, %c0_i32_0 : i32, i32, i32
  }
  func.func @transform_1(%arg0: i32) -> (i32, i32) {
    %c0_i32 = arith.constant 0 : i32
    %c0_i32_0 = arith.constant 0 : i32
    return %arg0, %c0_i32 : i32, i32
  }
  func.func @transform_2(%arg0: i32) -> (i32, i32) {
    %c0_i32 = arith.constant 0 : i32
    %c0_i32_0 = arith.constant 0 : i32
    %c0_i32_1 = arith.constant 0 : i32
    return %c0_i32, %c0_i32_0 : i32, i32
  }
  func.func @transform_3(%arg0: i32) -> (i32, i32) {
    %c0_i32 = arith.constant 0 : i32
    %c0_i32_0 = arith.constant 0 : i32
    %c0_i32_1 = arith.constant 0 : i32
    return %c0_i32, %c0_i32_0 : i32, i32
  }
  func.func @transform_4(%arg0: i32) -> (i32, i32) {
    %c0_i32 = arith.constant 0 : i32
    %c0_i32_0 = arith.constant 0 : i32
    %c0_i32_1 = arith.constant 0 : i32
    return %c0_i32, %c0_i32_0 : i32, i32
  }
  func.func @transform_5(%arg0: i32) -> (i32, i32) {
    %c0_i32 = arith.constant 0 : i32
    %c0_i32_0 = arith.constant 0 : i32
    return %arg0, %c0_i32 : i32, i32
  }
}

module attributes {stable_mosaic.version = 11 : i64} {
  func.func @_edgeconv2_kernel(%arg0: i32, %arg1: memref<4x32x64xbf16, #tpu.memory_space<vmem>>, %arg2: memref<32x64xbf16, #tpu.memory_space<vmem>>, %arg3: memref<64x64xbf16, #tpu.memory_space<vmem>>, %arg4: memref<64x64xbf16, #tpu.memory_space<vmem>>, %arg5: memref<1x64xf32, #tpu.memory_space<vmem>>, %arg6: memref<64x64xbf16, #tpu.memory_space<vmem>>, %arg7: memref<1x64xf32, #tpu.memory_space<vmem>>, %arg8: memref<32x64xbf16, #tpu.memory_space<vmem>>) attributes {dimension_semantics = [#tpu.dimension_semantics<parallel>], iteration_bounds = array<i64: 1>, scalar_prefetch = 0 : i64, scratch_operands = 0 : i64, tpu.core_type = #tpu.core_type<tc>, window_params = [{transform_indices = @transform_0, window_bounds = array<i64: 4, 32, 64>}, {transform_indices = @transform_1, window_bounds = array<i64: 32, 64>}, {pipeline_mode = #tpu.pipeline_mode<synchronous>, transform_indices = @transform_2, window_bounds = array<i64: 64, 64>}, {pipeline_mode = #tpu.pipeline_mode<synchronous>, transform_indices = @transform_3, window_bounds = array<i64: 64, 64>}, {pipeline_mode = #tpu.pipeline_mode<synchronous>, transform_indices = @transform_4, window_bounds = array<i64: 1, 64>}, {pipeline_mode = #tpu.pipeline_mode<synchronous>, transform_indices = @transform_5, window_bounds = array<i64: 64, 64>}, {pipeline_mode = #tpu.pipeline_mode<synchronous>, transform_indices = @transform_6, window_bounds = array<i64: 1, 64>}, {transform_indices = @transform_7, window_bounds = array<i64: 32, 64>}]} {
    %c0 = arith.constant 0 : index
    %c0_0 = arith.constant 0 : index
    %0 = vector.load %arg2[%c0, %c0_0] : memref<32x64xbf16, #tpu.memory_space<vmem>>, vector<32x64xbf16>
    %c0_1 = arith.constant 0 : index
    %c0_2 = arith.constant 0 : index
    %1 = vector.load %arg4[%c0_1, %c0_2] : memref<64x64xbf16, #tpu.memory_space<vmem>>, vector<64x64xbf16>
    %cst = arith.constant dense<0.000000e+00> : vector<32x64xf32>
    %2 = tpu.matmul %0, %1, %cst {dimension_numbers = #tpu.dot_dimension_numbers<[1], [0], [0], [1], [0, 0, 1, 1], [], []>} : vector<32x64xbf16>, vector<64x64xbf16>, vector<32x64xf32> -> vector<32x64xf32>
    %c0_3 = arith.constant 0 : index
    %c0_4 = arith.constant 0 : index
    %3 = vector.load %arg5[%c0_3, %c0_4] : memref<1x64xf32, #tpu.memory_space<vmem>>, vector<1x64xf32>
    %4 = vector.broadcast %3 : vector<1x64xf32> to vector<32x64xf32>
    %5 = arith.addf %2, %4 : vector<32x64xf32>
    %c0_5 = arith.constant 0 : index
    %c0_6 = arith.constant 0 : index
    %c0_7 = arith.constant 0 : index
    %6 = vector.load %arg1[%c0_5, %c0_6, %c0_7] : memref<4x32x64xbf16, #tpu.memory_space<vmem>>, vector<4x32x64xbf16>
    %7 = vector.shape_cast %6 : vector<4x32x64xbf16> to vector<128x64xbf16>
    %c0_8 = arith.constant 0 : index
    %c0_9 = arith.constant 0 : index
    %8 = vector.load %arg3[%c0_8, %c0_9] : memref<64x64xbf16, #tpu.memory_space<vmem>>, vector<64x64xbf16>
    %cst_10 = arith.constant dense<0.000000e+00> : vector<128x64xf32>
    %9 = tpu.matmul %7, %8, %cst_10 {dimension_numbers = #tpu.dot_dimension_numbers<[1], [0], [0], [1], [0, 0, 1, 1], [], []>} : vector<128x64xbf16>, vector<64x64xbf16>, vector<128x64xf32> -> vector<128x64xf32>
    %10 = vector.shape_cast %9 : vector<128x64xf32> to vector<4x32x64xf32>
    %11 = vector.shape_cast %5 : vector<32x64xf32> to vector<1x32x64xf32>
    %12 = vector.broadcast %11 : vector<1x32x64xf32> to vector<4x32x64xf32>
    %13 = arith.addf %10, %12 : vector<4x32x64xf32>
    %cst_11 = arith.constant 0.000000e+00 : f32
    %14 = vector.broadcast %cst_11 : f32 to vector<4x32x64xf32>
    %15 = arith.cmpf ogt, %13, %14 : vector<4x32x64xf32>
    %cst_12 = arith.constant 2.000000e-01 : f32
    %16 = vector.broadcast %cst_12 : f32 to vector<4x32x64xf32>
    %17 = arith.mulf %16, %13 : vector<4x32x64xf32>
    %18 = arith.select %15, %13, %17 : vector<4x32x64xi1>, vector<4x32x64xf32>
    %19 = arith.truncf %18 : vector<4x32x64xf32> to vector<4x32x64xbf16>
    %20 = vector.shape_cast %19 : vector<4x32x64xbf16> to vector<128x64xbf16>
    %c0_13 = arith.constant 0 : index
    %c0_14 = arith.constant 0 : index
    %21 = vector.load %arg6[%c0_13, %c0_14] : memref<64x64xbf16, #tpu.memory_space<vmem>>, vector<64x64xbf16>
    %cst_15 = arith.constant dense<0.000000e+00> : vector<128x64xf32>
    %22 = tpu.matmul %20, %21, %cst_15 {dimension_numbers = #tpu.dot_dimension_numbers<[1], [0], [0], [1], [0, 0, 1, 1], [], []>} : vector<128x64xbf16>, vector<64x64xbf16>, vector<128x64xf32> -> vector<128x64xf32>
    %c0_16 = arith.constant 0 : index
    %c0_17 = arith.constant 0 : index
    %23 = vector.load %arg7[%c0_16, %c0_17] : memref<1x64xf32, #tpu.memory_space<vmem>>, vector<1x64xf32>
    %24 = vector.broadcast %23 : vector<1x64xf32> to vector<128x64xf32>
    %25 = arith.addf %22, %24 : vector<128x64xf32>
    %cst_18 = arith.constant 0.000000e+00 : f32
    %26 = vector.broadcast %cst_18 : f32 to vector<128x64xf32>
    %27 = arith.cmpf ogt, %25, %26 : vector<128x64xf32>
    %cst_19 = arith.constant 2.000000e-01 : f32
    %28 = vector.broadcast %cst_19 : f32 to vector<128x64xf32>
    %29 = arith.mulf %28, %25 : vector<128x64xf32>
    %30 = arith.select %27, %25, %29 : vector<128x64xi1>, vector<128x64xf32>
    %31 = vector.shape_cast %30 : vector<128x64xf32> to vector<4x32x64xf32>
    %cst_20 = arith.constant dense<0xFF800000> : vector<32x64xf32>
    %32 = vector.multi_reduction <maximumf>, %31, %cst_20 [0] : vector<4x32x64xf32> to vector<32x64xf32>
    %33 = arith.truncf %32 : vector<32x64xf32> to vector<32x64xbf16>
    %c0_21 = arith.constant 0 : index
    %c0_22 = arith.constant 0 : index
    %34 = vector.load %arg8[%c0_21, %c0_22] : memref<32x64xbf16, #tpu.memory_space<vmem>>, vector<32x64xbf16>
    tpu.vector_store %arg8[%c0_21, %c0_22], %33 {strides = array<i32>} : memref<32x64xbf16, #tpu.memory_space<vmem>>, vector<32x64xbf16>,
    return
  }
  func.func @transform_0(%arg0: i32) -> (i32, i32, i32) {
    %c0_i32 = arith.constant 0 : i32
    %c0_i32_0 = arith.constant 0 : i32
    %c0_i32_1 = arith.constant 0 : i32
    return %c0_i32, %arg0, %c0_i32_0 : i32, i32, i32
  }
  func.func @transform_1(%arg0: i32) -> (i32, i32) {
    %c0_i32 = arith.constant 0 : i32
    %c0_i32_0 = arith.constant 0 : i32
    return %arg0, %c0_i32 : i32, i32
  }
  func.func @transform_2(%arg0: i32) -> (i32, i32) {
    %c0_i32 = arith.constant 0 : i32
    %c0_i32_0 = arith.constant 0 : i32
    %c0_i32_1 = arith.constant 0 : i32
    return %c0_i32, %c0_i32_0 : i32, i32
  }
  func.func @transform_3(%arg0: i32) -> (i32, i32) {
    %c0_i32 = arith.constant 0 : i32
    %c0_i32_0 = arith.constant 0 : i32
    %c0_i32_1 = arith.constant 0 : i32
    return %c0_i32, %c0_i32_0 : i32, i32
  }
  func.func @transform_4(%arg0: i32) -> (i32, i32) {
    %c0_i32 = arith.constant 0 : i32
    %c0_i32_0 = arith.constant 0 : i32
    %c0_i32_1 = arith.constant 0 : i32
    return %c0_i32, %c0_i32_0 : i32, i32
  }
  func.func @transform_5(%arg0: i32) -> (i32, i32) {
    %c0_i32 = arith.constant 0 : i32
    %c0_i32_0 = arith.constant 0 : i32
    %c0_i32_1 = arith.constant 0 : i32
    return %c0_i32, %c0_i32_0 : i32, i32
  }
  func.func @transform_6(%arg0: i32) -> (i32, i32) {
    %c0_i32 = arith.constant 0 : i32
    %c0_i32_0 = arith.constant 0 : i32
    %c0_i32_1 = arith.constant 0 : i32
    return %c0_i32, %c0_i32_0 : i32, i32
  }
  func.func @transform_7(%arg0: i32) -> (i32, i32) {
    %c0_i32 = arith.constant 0 : i32
    %c0_i32_0 = arith.constant 0 : i32
    return %arg0, %c0_i32 : i32, i32
  }
}

module attributes {stable_mosaic.version = 11 : i64} {
  func.func @kernel(%arg0: i32, %arg1: i32, %arg2: i32, %arg3: memref<1x16x64xbf16, #tpu.memory_space<vmem>>, %arg4: memref<1x16x64xbf16, #tpu.memory_space<vmem>>, %arg5: memref<1x16x64xbf16, #tpu.memory_space<vmem>>, %arg6: memref<64x1024xbf16, #tpu.memory_space<vmem>>, %arg7: memref<64x1024xbf16, #tpu.memory_space<vmem>>, %arg8: memref<64x1024xbf16, #tpu.memory_space<vmem>>, %arg9: memref<1x1024xf32, #tpu.memory_space<vmem>>, %arg10: memref<1x1x1x1024xf32, #tpu.memory_space<vmem>>, %arg11: memref<8x1024xf32, #tpu.memory_space<vmem>>) attributes {dimension_semantics = [#tpu.dimension_semantics<parallel>, #tpu.dimension_semantics<parallel>, #tpu.dimension_semantics<arbitrary>], iteration_bounds = array<i64: 2, 1, 1>, scalar_prefetch = 0 : i64, scratch_operands = 1 : i64, tpu.core_type = #tpu.core_type<tc>, window_params = [{transform_indices = @transform_0, window_bounds = array<i64: 1, 16, 64>}, {transform_indices = @transform_1, window_bounds = array<i64: 1, 16, 64>}, {transform_indices = @transform_2, window_bounds = array<i64: 1, 16, 64>}, {pipeline_mode = #tpu.pipeline_mode<synchronous>, transform_indices = @transform_3, window_bounds = array<i64: 64, 1024>}, {pipeline_mode = #tpu.pipeline_mode<synchronous>, transform_indices = @transform_4, window_bounds = array<i64: 64, 1024>}, {pipeline_mode = #tpu.pipeline_mode<synchronous>, transform_indices = @transform_5, window_bounds = array<i64: 64, 1024>}, {pipeline_mode = #tpu.pipeline_mode<synchronous>, transform_indices = @transform_6, window_bounds = array<i64: 1, 1024>}, {transform_indices = @transform_7, window_bounds = array<i64: 1, 1, 1, 1024>}]} {
    %c0 = arith.constant 0 : index
    %c0_0 = arith.constant 0 : index
    %c0_1 = arith.constant 0 : index
    %0 = vector.load %arg3[%c0, %c0_0, %c0_1] : memref<1x16x64xbf16, #tpu.memory_space<vmem>>, vector<1x16x64xbf16>
    %1 = vector.shape_cast %0 : vector<1x16x64xbf16> to vector<16x64xbf16>
    %c0_2 = arith.constant 0 : index
    %c0_3 = arith.constant 0 : index
    %2 = vector.load %arg6[%c0_2, %c0_3] : memref<64x1024xbf16, #tpu.memory_space<vmem>>, vector<64x1024xbf16>
    %cst = arith.constant dense<0.000000e+00> : vector<16x1024xf32>
    %3 = tpu.matmul %1, %2, %cst {dimension_numbers = #tpu.dot_dimension_numbers<[1], [0], [0], [1], [0, 0, 1, 1], [], []>} : vector<16x64xbf16>, vector<64x1024xbf16>, vector<16x1024xf32> -> vector<16x1024xf32>
    %c0_4 = arith.constant 0 : index
    %c0_5 = arith.constant 0 : index
    %c0_6 = arith.constant 0 : index
    %4 = vector.load %arg4[%c0_4, %c0_5, %c0_6] : memref<1x16x64xbf16, #tpu.memory_space<vmem>>, vector<1x16x64xbf16>
    %5 = vector.shape_cast %4 : vector<1x16x64xbf16> to vector<16x64xbf16>
    %c0_7 = arith.constant 0 : index
    %c0_8 = arith.constant 0 : index
    %6 = vector.load %arg7[%c0_7, %c0_8] : memref<64x1024xbf16, #tpu.memory_space<vmem>>, vector<64x1024xbf16>
    %cst_9 = arith.constant dense<0.000000e+00> : vector<16x1024xf32>
    %7 = tpu.matmul %5, %6, %cst_9 {dimension_numbers = #tpu.dot_dimension_numbers<[1], [0], [0], [1], [0, 0, 1, 1], [], []>} : vector<16x64xbf16>, vector<64x1024xbf16>, vector<16x1024xf32> -> vector<16x1024xf32>
    %8 = arith.addf %3, %7 : vector<16x1024xf32>
    %c0_10 = arith.constant 0 : index
    %c0_11 = arith.constant 0 : index
    %c0_12 = arith.constant 0 : index
    %9 = vector.load %arg5[%c0_10, %c0_11, %c0_12] : memref<1x16x64xbf16, #tpu.memory_space<vmem>>, vector<1x16x64xbf16>
    %10 = vector.shape_cast %9 : vector<1x16x64xbf16> to vector<16x64xbf16>
    %c0_13 = arith.constant 0 : index
    %c0_14 = arith.constant 0 : index
    %11 = vector.load %arg8[%c0_13, %c0_14] : memref<64x1024xbf16, #tpu.memory_space<vmem>>, vector<64x1024xbf16>
    %cst_15 = arith.constant dense<0.000000e+00> : vector<16x1024xf32>
    %12 = tpu.matmul %10, %11, %cst_15 {dimension_numbers = #tpu.dot_dimension_numbers<[1], [0], [0], [1], [0, 0, 1, 1], [], []>} : vector<16x64xbf16>, vector<64x1024xbf16>, vector<16x1024xf32> -> vector<16x1024xf32>
    %13 = arith.addf %8, %12 : vector<16x1024xf32>
    %c0_16 = arith.constant 0 : index
    %c0_17 = arith.constant 0 : index
    %14 = vector.load %arg9[%c0_16, %c0_17] : memref<1x1024xf32, #tpu.memory_space<vmem>>, vector<1x1024xf32>
    %15 = vector.broadcast %14 : vector<1x1024xf32> to vector<16x1024xf32>
    %16 = arith.addf %13, %15 : vector<16x1024xf32>
    %cst_18 = arith.constant 0.000000e+00 : f32
    %17 = vector.broadcast %cst_18 : f32 to vector<16x1024xf32>
    %18 = arith.cmpf ogt, %16, %17 : vector<16x1024xf32>
    %cst_19 = arith.constant 2.000000e-01 : f32
    %19 = vector.broadcast %cst_19 : f32 to vector<16x1024xf32>
    %20 = arith.mulf %19, %16 : vector<16x1024xf32>
    %21 = arith.select %18, %16, %20 : vector<16x1024xi1>, vector<16x1024xf32>
    %22 = vector.shape_cast %21 : vector<16x1024xf32> to vector<2x8x1024xf32>
    %cst_20 = arith.constant dense<0xFF800000> : vector<8x1024xf32>
    %23 = vector.multi_reduction <maximumf>, %22, %cst_20 [0] : vector<2x8x1024xf32> to vector<8x1024xf32>
    %c0_i32 = arith.constant 0 : i32
    %24 = arith.cmpi eq, %arg2, %c0_i32 : i32
    %25 = arith.extui %24 : i1 to i32
    %c0_i32_21 = arith.constant 0 : i32
    %26 = arith.cmpi ne, %25, %c0_i32_21 : i32
    scf.if %26 {
      %c0_26 = arith.constant 0 : index
      %c0_27 = arith.constant 0 : index
      %33 = vector.load %arg11[%c0_26, %c0_27] : memref<8x1024xf32, #tpu.memory_space<vmem>>, vector<8x1024xf32>
      tpu.vector_store %arg11[%c0_26, %c0_27], %23 {strides = array<i32>} : memref<8x1024xf32, #tpu.memory_space<vmem>>, vector<8x1024xf32>,
    } else {
    }
    %c0_i32_22 = arith.constant 0 : i32
    %27 = arith.cmpi sgt, %arg2, %c0_i32_22 : i32
    %28 = arith.extui %27 : i1 to i32
    %c0_i32_23 = arith.constant 0 : i32
    %29 = arith.cmpi ne, %28, %c0_i32_23 : i32
    scf.if %29 {
      %c0_26 = arith.constant 0 : index
      %c0_27 = arith.constant 0 : index
      %33 = vector.load %arg11[%c0_26, %c0_27] : memref<8x1024xf32, #tpu.memory_space<vmem>>, vector<8x1024xf32>
      %34 = arith.maximumf %33, %23 : vector<8x1024xf32>
      %c0_28 = arith.constant 0 : index
      %c0_29 = arith.constant 0 : index
      %35 = vector.load %arg11[%c0_28, %c0_29] : memref<8x1024xf32, #tpu.memory_space<vmem>>, vector<8x1024xf32>
      tpu.vector_store %arg11[%c0_28, %c0_29], %34 {strides = array<i32>} : memref<8x1024xf32, #tpu.memory_space<vmem>>, vector<8x1024xf32>,
    } else {
    }
    %c0_i32_24 = arith.constant 0 : i32
    %30 = arith.cmpi eq, %arg2, %c0_i32_24 : i32
    %31 = arith.extui %30 : i1 to i32
    %c0_i32_25 = arith.constant 0 : i32
    %32 = arith.cmpi ne, %31, %c0_i32_25 : i32
    scf.if %32 {
      %c0_26 = arith.constant 0 : index
      %c0_27 = arith.constant 0 : index
      %33 = vector.load %arg11[%c0_26, %c0_27] : memref<8x1024xf32, #tpu.memory_space<vmem>>, vector<8x1024xf32>
      %cst_28 = arith.constant dense<0xFF800000> : vector<1024xf32>
      %34 = vector.multi_reduction <maximumf>, %33, %cst_28 [0] : vector<8x1024xf32> to vector<1024xf32>
      %35 = vector.shape_cast %34 : vector<1024xf32> to vector<1x1024xf32>
      %c0_29 = arith.constant 0 : index
      %c0_30 = arith.constant 0 : index
      %c0_31 = arith.constant 0 : index
      %c0_32 = arith.constant 0 : index
      %36 = vector.load %arg10[%c0_29, %c0_30, %c0_31, %c0_32] : memref<1x1x1x1024xf32, #tpu.memory_space<vmem>>, vector<1x1x1x1024xf32>
      %37 = vector.shape_cast %36 : vector<1x1x1x1024xf32> to vector<1x1024xf32>
      %38 = vector.shape_cast %35 : vector<1x1024xf32> to vector<1x1x1x1024xf32>
      tpu.vector_store %arg10[%c0_29, %c0_30, %c0_31, %c0_32], %38 {strides = array<i32>} : memref<1x1x1x1024xf32, #tpu.memory_space<vmem>>, vector<1x1x1x1024xf32>,
    } else {
    }
    return
  }
  func.func @transform_0(%arg0: i32, %arg1: i32, %arg2: i32) -> (i32, i32, i32) {
    %c1_i32 = arith.constant 1 : i32
    %0 = arith.muli %arg1, %c1_i32 : i32
    %1 = arith.addi %0, %arg2 : i32
    %c0_i32 = arith.constant 0 : i32
    %c0_i32_0 = arith.constant 0 : i32
    return %arg0, %1, %c0_i32 : i32, i32, i32
  }
  func.func @transform_1(%arg0: i32, %arg1: i32, %arg2: i32) -> (i32, i32, i32) {
    %c1_i32 = arith.constant 1 : i32
    %0 = arith.muli %arg1, %c1_i32 : i32
    %1 = arith.addi %0, %arg2 : i32
    %c0_i32 = arith.constant 0 : i32
    %c0_i32_0 = arith.constant 0 : i32
    return %arg0, %1, %c0_i32 : i32, i32, i32
  }
  func.func @transform_2(%arg0: i32, %arg1: i32, %arg2: i32) -> (i32, i32, i32) {
    %c1_i32 = arith.constant 1 : i32
    %0 = arith.muli %arg1, %c1_i32 : i32
    %1 = arith.addi %0, %arg2 : i32
    %c0_i32 = arith.constant 0 : i32
    %c0_i32_0 = arith.constant 0 : i32
    return %arg0, %1, %c0_i32 : i32, i32, i32
  }
  func.func @transform_3(%arg0: i32, %arg1: i32, %arg2: i32) -> (i32, i32) {
    %c0_i32 = arith.constant 0 : i32
    %c0_i32_0 = arith.constant 0 : i32
    %c0_i32_1 = arith.constant 0 : i32
    return %c0_i32, %c0_i32_0 : i32, i32
  }
  func.func @transform_4(%arg0: i32, %arg1: i32, %arg2: i32) -> (i32, i32) {
    %c0_i32 = arith.constant 0 : i32
    %c0_i32_0 = arith.constant 0 : i32
    %c0_i32_1 = arith.constant 0 : i32
    return %c0_i32, %c0_i32_0 : i32, i32
  }
  func.func @transform_5(%arg0: i32, %arg1: i32, %arg2: i32) -> (i32, i32) {
    %c0_i32 = arith.constant 0 : i32
    %c0_i32_0 = arith.constant 0 : i32
    %c0_i32_1 = arith.constant 0 : i32
    return %c0_i32, %c0_i32_0 : i32, i32
  }
  func.func @transform_6(%arg0: i32, %arg1: i32, %arg2: i32) -> (i32, i32) {
    %c0_i32 = arith.constant 0 : i32
    %c0_i32_0 = arith.constant 0 : i32
    %c0_i32_1 = arith.constant 0 : i32
    return %c0_i32, %c0_i32_0 : i32, i32
  }
  func.func @transform_7(%arg0: i32, %arg1: i32, %arg2: i32) -> (i32, i32, i32, i32) {
    %c0_i32 = arith.constant 0 : i32
    %c0_i32_0 = arith.constant 0 : i32
    %c0_i32_1 = arith.constant 0 : i32
    return %arg0, %arg1, %c0_i32, %c0_i32_0 : i32, i32, i32, i32
  }
}

module attributes {stable_mosaic.version = 11 : i64} {
  func.func @_seg_head_kernel(%arg0: i32, %arg1: i32, %arg2: memref<1x16x64xbf16, #tpu.memory_space<vmem>>, %arg3: memref<1x16x64xbf16, #tpu.memory_space<vmem>>, %arg4: memref<1x16x64xbf16, #tpu.memory_space<vmem>>, %arg5: memref<1x1x256xf32, #tpu.memory_space<vmem>>, %arg6: memref<64x256xbf16, #tpu.memory_space<vmem>>, %arg7: memref<64x256xbf16, #tpu.memory_space<vmem>>, %arg8: memref<64x256xbf16, #tpu.memory_space<vmem>>, %arg9: memref<1x256xf32, #tpu.memory_space<vmem>>, %arg10: memref<256x256xbf16, #tpu.memory_space<vmem>>, %arg11: memref<1x256xf32, #tpu.memory_space<vmem>>, %arg12: memref<256x128xbf16, #tpu.memory_space<vmem>>, %arg13: memref<1x128xf32, #tpu.memory_space<vmem>>, %arg14: memref<8x128xbf16, #tpu.memory_space<vmem>>, %arg15: memref<1x8x16xf32, #tpu.memory_space<vmem>>) attributes {dimension_semantics = [#tpu.dimension_semantics<parallel>, #tpu.dimension_semantics<parallel>], iteration_bounds = array<i64: 2, 1>, scalar_prefetch = 0 : i64, scratch_operands = 0 : i64, tpu.core_type = #tpu.core_type<tc>, window_params = [{transform_indices = @transform_0, window_bounds = array<i64: 1, 16, 64>}, {transform_indices = @transform_1, window_bounds = array<i64: 1, 16, 64>}, {transform_indices = @transform_2, window_bounds = array<i64: 1, 16, 64>}, {transform_indices = @transform_3, window_bounds = array<i64: 1, 1, 256>}, {pipeline_mode = #tpu.pipeline_mode<synchronous>, transform_indices = @transform_4, window_bounds = array<i64: 64, 256>}, {pipeline_mode = #tpu.pipeline_mode<synchronous>, transform_indices = @transform_5, window_bounds = array<i64: 64, 256>}, {pipeline_mode = #tpu.pipeline_mode<synchronous>, transform_indices = @transform_6, window_bounds = array<i64: 64, 256>}, {pipeline_mode = #tpu.pipeline_mode<synchronous>, transform_indices = @transform_7, window_bounds = array<i64: 1, 256>}, {pipeline_mode = #tpu.pipeline_mode<synchronous>, transform_indices = @transform_8, window_bounds = array<i64: 256, 256>}, {pipeline_mode = #tpu.pipeline_mode<synchronous>, transform_indices = @transform_9, window_bounds = array<i64: 1, 256>}, {pipeline_mode = #tpu.pipeline_mode<synchronous>, transform_indices = @transform_10, window_bounds = array<i64: 256, 128>}, {pipeline_mode = #tpu.pipeline_mode<synchronous>, transform_indices = @transform_11, window_bounds = array<i64: 1, 128>}, {pipeline_mode = #tpu.pipeline_mode<synchronous>, transform_indices = @transform_12, window_bounds = array<i64: 8, 128>}, {transform_indices = @transform_13, window_bounds = array<i64: 1, 8, 16>}]} {
    %c0 = arith.constant 0 : index
    %c0_0 = arith.constant 0 : index
    %c0_1 = arith.constant 0 : index
    %0 = vector.load %arg2[%c0, %c0_0, %c0_1] : memref<1x16x64xbf16, #tpu.memory_space<vmem>>, vector<1x16x64xbf16>
    %1 = vector.shape_cast %0 : vector<1x16x64xbf16> to vector<16x64xbf16>
    %c0_2 = arith.constant 0 : index
    %c0_3 = arith.constant 0 : index
    %2 = vector.load %arg6[%c0_2, %c0_3] : memref<64x256xbf16, #tpu.memory_space<vmem>>, vector<64x256xbf16>
    %cst = arith.constant dense<0.000000e+00> : vector<16x256xf32>
    %3 = tpu.matmul %1, %2, %cst {dimension_numbers = #tpu.dot_dimension_numbers<[1], [0], [0], [1], [0, 0, 1, 1], [], []>} : vector<16x64xbf16>, vector<64x256xbf16>, vector<16x256xf32> -> vector<16x256xf32>
    %c0_4 = arith.constant 0 : index
    %c0_5 = arith.constant 0 : index
    %c0_6 = arith.constant 0 : index
    %4 = vector.load %arg3[%c0_4, %c0_5, %c0_6] : memref<1x16x64xbf16, #tpu.memory_space<vmem>>, vector<1x16x64xbf16>
    %5 = vector.shape_cast %4 : vector<1x16x64xbf16> to vector<16x64xbf16>
    %c0_7 = arith.constant 0 : index
    %c0_8 = arith.constant 0 : index
    %6 = vector.load %arg7[%c0_7, %c0_8] : memref<64x256xbf16, #tpu.memory_space<vmem>>, vector<64x256xbf16>
    %cst_9 = arith.constant dense<0.000000e+00> : vector<16x256xf32>
    %7 = tpu.matmul %5, %6, %cst_9 {dimension_numbers = #tpu.dot_dimension_numbers<[1], [0], [0], [1], [0, 0, 1, 1], [], []>} : vector<16x64xbf16>, vector<64x256xbf16>, vector<16x256xf32> -> vector<16x256xf32>
    %8 = arith.addf %3, %7 : vector<16x256xf32>
    %c0_10 = arith.constant 0 : index
    %c0_11 = arith.constant 0 : index
    %c0_12 = arith.constant 0 : index
    %9 = vector.load %arg4[%c0_10, %c0_11, %c0_12] : memref<1x16x64xbf16, #tpu.memory_space<vmem>>, vector<1x16x64xbf16>
    %10 = vector.shape_cast %9 : vector<1x16x64xbf16> to vector<16x64xbf16>
    %c0_13 = arith.constant 0 : index
    %c0_14 = arith.constant 0 : index
    %11 = vector.load %arg8[%c0_13, %c0_14] : memref<64x256xbf16, #tpu.memory_space<vmem>>, vector<64x256xbf16>
    %cst_15 = arith.constant dense<0.000000e+00> : vector<16x256xf32>
    %12 = tpu.matmul %10, %11, %cst_15 {dimension_numbers = #tpu.dot_dimension_numbers<[1], [0], [0], [1], [0, 0, 1, 1], [], []>} : vector<16x64xbf16>, vector<64x256xbf16>, vector<16x256xf32> -> vector<16x256xf32>
    %13 = arith.addf %8, %12 : vector<16x256xf32>
    %c0_16 = arith.constant 0 : index
    %c0_17 = arith.constant 0 : index
    %c0_18 = arith.constant 0 : index
    %14 = vector.load %arg5[%c0_16, %c0_17, %c0_18] : memref<1x1x256xf32, #tpu.memory_space<vmem>>, vector<1x1x256xf32>
    %15 = vector.shape_cast %14 : vector<1x1x256xf32> to vector<1x256xf32>
    %16 = vector.broadcast %15 : vector<1x256xf32> to vector<16x256xf32>
    %17 = arith.addf %13, %16 : vector<16x256xf32>
    %c0_19 = arith.constant 0 : index
    %c0_20 = arith.constant 0 : index
    %18 = vector.load %arg9[%c0_19, %c0_20] : memref<1x256xf32, #tpu.memory_space<vmem>>, vector<1x256xf32>
    %19 = vector.broadcast %18 : vector<1x256xf32> to vector<16x256xf32>
    %20 = arith.addf %17, %19 : vector<16x256xf32>
    %cst_21 = arith.constant 0.000000e+00 : f32
    %21 = vector.broadcast %cst_21 : f32 to vector<16x256xf32>
    %22 = arith.cmpf ogt, %20, %21 : vector<16x256xf32>
    %cst_22 = arith.constant 2.000000e-01 : f32
    %23 = vector.broadcast %cst_22 : f32 to vector<16x256xf32>
    %24 = arith.mulf %23, %20 : vector<16x256xf32>
    %25 = arith.select %22, %20, %24 : vector<16x256xi1>, vector<16x256xf32>
    %26 = arith.truncf %25 : vector<16x256xf32> to vector<16x256xbf16>
    %c0_23 = arith.constant 0 : index
    %c0_24 = arith.constant 0 : index
    %27 = vector.load %arg10[%c0_23, %c0_24] : memref<256x256xbf16, #tpu.memory_space<vmem>>, vector<256x256xbf16>
    %cst_25 = arith.constant dense<0.000000e+00> : vector<16x256xf32>
    %28 = tpu.matmul %26, %27, %cst_25 {dimension_numbers = #tpu.dot_dimension_numbers<[1], [0], [0], [1], [0, 0, 1, 1], [], []>} : vector<16x256xbf16>, vector<256x256xbf16>, vector<16x256xf32> -> vector<16x256xf32>
    %c0_26 = arith.constant 0 : index
    %c0_27 = arith.constant 0 : index
    %29 = vector.load %arg11[%c0_26, %c0_27] : memref<1x256xf32, #tpu.memory_space<vmem>>, vector<1x256xf32>
    %30 = vector.broadcast %29 : vector<1x256xf32> to vector<16x256xf32>
    %31 = arith.addf %28, %30 : vector<16x256xf32>
    %cst_28 = arith.constant 0.000000e+00 : f32
    %32 = vector.broadcast %cst_28 : f32 to vector<16x256xf32>
    %33 = arith.cmpf ogt, %31, %32 : vector<16x256xf32>
    %cst_29 = arith.constant 2.000000e-01 : f32
    %34 = vector.broadcast %cst_29 : f32 to vector<16x256xf32>
    %35 = arith.mulf %34, %31 : vector<16x256xf32>
    %36 = arith.select %33, %31, %35 : vector<16x256xi1>, vector<16x256xf32>
    %37 = arith.truncf %36 : vector<16x256xf32> to vector<16x256xbf16>
    %c0_30 = arith.constant 0 : index
    %c0_31 = arith.constant 0 : index
    %38 = vector.load %arg12[%c0_30, %c0_31] : memref<256x128xbf16, #tpu.memory_space<vmem>>, vector<256x128xbf16>
    %cst_32 = arith.constant dense<0.000000e+00> : vector<16x128xf32>
    %39 = tpu.matmul %37, %38, %cst_32 {dimension_numbers = #tpu.dot_dimension_numbers<[1], [0], [0], [1], [0, 0, 1, 1], [], []>} : vector<16x256xbf16>, vector<256x128xbf16>, vector<16x128xf32> -> vector<16x128xf32>
    %c0_33 = arith.constant 0 : index
    %c0_34 = arith.constant 0 : index
    %40 = vector.load %arg13[%c0_33, %c0_34] : memref<1x128xf32, #tpu.memory_space<vmem>>, vector<1x128xf32>
    %41 = vector.broadcast %40 : vector<1x128xf32> to vector<16x128xf32>
    %42 = arith.addf %39, %41 : vector<16x128xf32>
    %cst_35 = arith.constant 0.000000e+00 : f32
    %43 = vector.broadcast %cst_35 : f32 to vector<16x128xf32>
    %44 = arith.cmpf ogt, %42, %43 : vector<16x128xf32>
    %cst_36 = arith.constant 2.000000e-01 : f32
    %45 = vector.broadcast %cst_36 : f32 to vector<16x128xf32>
    %46 = arith.mulf %45, %42 : vector<16x128xf32>
    %47 = arith.select %44, %42, %46 : vector<16x128xi1>, vector<16x128xf32>
    %48 = arith.truncf %47 : vector<16x128xf32> to vector<16x128xbf16>
    %c0_37 = arith.constant 0 : index
    %c0_38 = arith.constant 0 : index
    %49 = vector.load %arg14[%c0_37, %c0_38] : memref<8x128xbf16, #tpu.memory_space<vmem>>, vector<8x128xbf16>
    "tpu.trace_start"() <{level = 10 : i32, message = "sd,nd->sn"}> : () -> ()
    %cst_39 = arith.constant dense<0.000000e+00> : vector<8x16xf32>
    %50 = tpu.matmul %49, %48, %cst_39 {dimension_numbers = #tpu.dot_dimension_numbers<[1], [1], [0], [0], [0, 0, 1, 0], [], []>} : vector<8x128xbf16>, vector<16x128xbf16>, vector<8x16xf32> -> vector<8x16xf32>
    "tpu.trace_stop"() : () -> ()
    %c0_40 = arith.constant 0 : index
    %c0_41 = arith.constant 0 : index
    %c0_42 = arith.constant 0 : index
    %51 = vector.load %arg15[%c0_40, %c0_41, %c0_42] : memref<1x8x16xf32, #tpu.memory_space<vmem>>, vector<1x8x16xf32>
    %52 = vector.shape_cast %51 : vector<1x8x16xf32> to vector<8x16xf32>
    %53 = vector.shape_cast %50 : vector<8x16xf32> to vector<1x8x16xf32>
    tpu.vector_store %arg15[%c0_40, %c0_41, %c0_42], %53 {strides = array<i32>} : memref<1x8x16xf32, #tpu.memory_space<vmem>>, vector<1x8x16xf32>,
    return
  }
  func.func @transform_0(%arg0: i32, %arg1: i32) -> (i32, i32, i32) {
    %c0_i32 = arith.constant 0 : i32
    %c0_i32_0 = arith.constant 0 : i32
    return %arg0, %arg1, %c0_i32 : i32, i32, i32
  }
  func.func @transform_1(%arg0: i32, %arg1: i32) -> (i32, i32, i32) {
    %c0_i32 = arith.constant 0 : i32
    %c0_i32_0 = arith.constant 0 : i32
    return %arg0, %arg1, %c0_i32 : i32, i32, i32
  }
  func.func @transform_2(%arg0: i32, %arg1: i32) -> (i32, i32, i32) {
    %c0_i32 = arith.constant 0 : i32
    %c0_i32_0 = arith.constant 0 : i32
    return %arg0, %arg1, %c0_i32 : i32, i32, i32
  }
  func.func @transform_3(%arg0: i32, %arg1: i32) -> (i32, i32, i32) {
    %c0_i32 = arith.constant 0 : i32
    %c0_i32_0 = arith.constant 0 : i32
    %c0_i32_1 = arith.constant 0 : i32
    return %arg0, %c0_i32, %c0_i32_0 : i32, i32, i32
  }
  func.func @transform_4(%arg0: i32, %arg1: i32) -> (i32, i32) {
    %c0_i32 = arith.constant 0 : i32
    %c0_i32_0 = arith.constant 0 : i32
    %c0_i32_1 = arith.constant 0 : i32
    return %c0_i32, %c0_i32_0 : i32, i32
  }
  func.func @transform_5(%arg0: i32, %arg1: i32) -> (i32, i32) {
    %c0_i32 = arith.constant 0 : i32
    %c0_i32_0 = arith.constant 0 : i32
    %c0_i32_1 = arith.constant 0 : i32
    return %c0_i32, %c0_i32_0 : i32, i32
  }
  func.func @transform_6(%arg0: i32, %arg1: i32) -> (i32, i32) {
    %c0_i32 = arith.constant 0 : i32
    %c0_i32_0 = arith.constant 0 : i32
    %c0_i32_1 = arith.constant 0 : i32
    return %c0_i32, %c0_i32_0 : i32, i32
  }
  func.func @transform_7(%arg0: i32, %arg1: i32) -> (i32, i32) {
    %c0_i32 = arith.constant 0 : i32
    %c0_i32_0 = arith.constant 0 : i32
    %c0_i32_1 = arith.constant 0 : i32
    return %c0_i32, %c0_i32_0 : i32, i32
  }
  func.func @transform_8(%arg0: i32, %arg1: i32) -> (i32, i32) {
    %c0_i32 = arith.constant 0 : i32
    %c0_i32_0 = arith.constant 0 : i32
    %c0_i32_1 = arith.constant 0 : i32
    return %c0_i32, %c0_i32_0 : i32, i32
  }
  func.func @transform_9(%arg0: i32, %arg1: i32) -> (i32, i32) {
    %c0_i32 = arith.constant 0 : i32
    %c0_i32_0 = arith.constant 0 : i32
    %c0_i32_1 = arith.constant 0 : i32
    return %c0_i32, %c0_i32_0 : i32, i32
  }
  func.func @transform_10(%arg0: i32, %arg1: i32) -> (i32, i32) {
    %c0_i32 = arith.constant 0 : i32
    %c0_i32_0 = arith.constant 0 : i32
    %c0_i32_1 = arith.constant 0 : i32
    return %c0_i32, %c0_i32_0 : i32, i32
  }
  func.func @transform_11(%arg0: i32, %arg1: i32) -> (i32, i32) {
    %c0_i32 = arith.constant 0 : i32
    %c0_i32_0 = arith.constant 0 : i32
    %c0_i32_1 = arith.constant 0 : i32
    return %c0_i32, %c0_i32_0 : i32, i32
  }
  func.func @transform_12(%arg0: i32, %arg1: i32) -> (i32, i32) {
    %c0_i32 = arith.constant 0 : i32
    %c0_i32_0 = arith.constant 0 : i32
    %c0_i32_1 = arith.constant 0 : i32
    return %c0_i32, %c0_i32_0 : i32, i32
  }
  func.func @transform_13(%arg0: i32, %arg1: i32) -> (i32, i32, i32) {
    %c0_i32 = arith.constant 0 : i32
    %c0_i32_0 = arith.constant 0 : i32
    return %arg0, %c0_i32, %arg1 : i32, i32, i32
  }
}

</mosaic_0001>

<bundles_post_ra>
// kernel: neg.0
= control target key start
LH: loop header
LB: loop body
LE: loop exit
PB: predicated region body
PF: predicated region fallthrough
CT: control target
= control target key end

     0   :  { %s24_s0 = inlined_call_operand.vmem [shape: f32[2,16], index: 0, kind: input, shape index: {}]   ;;  %s25_s1 = inlined_call_operand.vmem [shape: f32[2,16], index: 1, kind: output, shape index: {}]  }
   0x1   :  { %v2_v0 = vld [vmem:[%s24_s0] sm:$0x3] }
   0x2   :  { %v5_v1 = vxor.u32 2147483648, %v2_v0 }
   0x4   :  { %7 = vst [vmem:[%s25_s1] sm:$0x3] %v5_v1 }

// kernel: _lambda_.7
= control target key start
LH: loop header
LB: loop body
LE: loop exit
PB: predicated region body
PF: predicated region fallthrough
CT: control target
= control target key end

     0   :  { %vm53_vm0 = vcmask 1040384   ;;  %vm54_vm1 = vcmask 1041408   ;;  %v621_v1 = vmov 65535   ;;  %vm46_vm2 = vcmask 23552   ;;  %s803_s3 = inlined_call_operand.vmem [shape: bf16[3,64], index: 3, kind: input, shape index: {}]   ;;  %s804_s2 = inlined_call_operand.vmem [shape: bf16[3,64], index: 2, kind: input, shape index: {}]   ;;  %s805_s1 = inlined_call_operand.vmem [shape: bf16[32,3], index: 1, kind: input, shape index: {}]   ;;  %s806_s0 = inlined_call_operand.vmem [shape: bf16[4,32,3], index: 0, kind: input, shape index: {}]   ;;  %s807_s4 = inlined_call_operand.vmem [shape: f32[1,64], index: 4, kind: input, shape index: {}]   ;;  %s808_s6 = inlined_call_operand.vmem [shape: f32[1,128], index: 6, kind: input, shape index: {}]   ;;  %s809_s5 = inlined_call_operand.vmem [shape: bf16[64,128], index: 5, kind: input, shape index: {}]   ;;  %s810_s7 = inlined_call_operand.vmem [shape: bf16[32,128], index: 7, kind: output, shape index: {}]  }
   0x1   :  { %v31_v0 = vld [vmem:[%s803_s3] sm:$0x3]  ;;  %v55_v2 = vsel %vm53_vm0, 4294967295, %v621_v1  ;;  %v593_v8 = vld [vmem:[%s806_s0 + $0x18] sm:$0xff]  ;;  %v589_v9 = vld [vmem:[%s805_s1 + $0x8] sm:$0xff]  ;;  %vm368_vm11 = vcmask 523264  }
   0x2   :  { %v95_v3 = vld [vmem:[%s804_s2] sm:$0x3]  ;;  %v56_v4 = vsel %vm54_vm1, %v55_v2, 0  ;;  %v595_v12 = vld [vmem:[%s806_s0 + $0x28] sm:$0xff]  ;;  %v596_v14 = vld [vmem:[%s806_s0 + $0x30] sm:$0xff] }
   0x3   :  { %v58_v5 = vand.u32 %v56_v4, %v31_v0  ;;  %v161_v6 = vand.u32 %v95_v3, %v56_v4  ;;  %v588_v7 = vld [vmem:[%s805_s1] sm:$0xff]  ;;  %v591_v13 = vld [vmem:[%s806_s0 + $0x8] sm:$0xff]  ;;  %v592_v15 = vld [vmem:[%s806_s0 + $0x10] sm:$0xff] }
   0x4   :  { %v594_v10 = vld [vmem:[%s806_s0 + $0x20] sm:$0xff]  ;;  %v597_v16 = vld [vmem:[%s806_s0 + $0x38] sm:$0xff]  ;;  %v600_v20 = vld [vmem:[%s809_s5 + $0x10] sm:$0xff] }
   0x5   :  { %67 = vmatpush.bf16.msra.mxu0 %v58_v5  ;;  %613 = vmatpush.bf16.msra.mxu1 %v161_v6  ;;  %v590_v11 = vld [vmem:[%s806_s0] sm:$0xff]  ;;  %v601_v19 = vld [vmem:[%s809_s5 + $0x18] sm:$0xff]  ;;  %v599_v24 = vld [vmem:[%s809_s5 + $0x8] sm:$0xff] }
   0x6   :  { %397 = vmatpush.bf16.msra.mxu2 %v601_v19  ;;  %614 = vmatpush.bf16.msra.mxu3 %v601_v19  ;;  %v619_v23 = vld [vmem:[%s807_s4] ss:$0 sm:$0xff] }
   0x7   :  { %v598_v26 = vld [vmem:[%s809_s5] sm:$0xff] }
   0x8   :  { %522 = vmatmul.msk.bf16.vlgmr.msra.gmra.mxu0 %vm46_vm2, %v588_v7  ;;  %559 = vmatmul.msk.bf16.vlgmr.msra.gmra.mxu1 %vm46_vm2, %v593_v8 }
   0x9   :  { %170 = vmatpush.bf16.msrb.mxu0 %v161_v6 }
   0xa   :  { %398 = vmatpush.bf16.msra.mxu2 %v600_v20  ;;  %615 = vmatpush.bf16.msra.mxu3 %v600_v20 }
   0xe   :  { %399 = vmatpush.bf16.msra.mxu2 %v599_v24  ;;  %616 = vmatpush.bf16.msra.mxu3 %v599_v24 }
  0x12   :  { %400 = vmatpush.bf16.msra.mxu2 %v598_v26  ;;  %617 = vmatpush.bf16.msra.mxu3 %v598_v26 }
  0x18   :  { %523 = vmatmul.msk.bf16.gmra.mxu0 %vm46_vm2, %v589_v9  ;;  %560 = vmatmul.msk.bf16.gmra.mxu1 %vm46_vm2, %v594_v10 }
  0x28   :  { %556 = vmatmul.msk.bf16.vlgmr.msrb.gmra.mxu0 %vm46_vm2, %v590_v11  ;;  %561 = vmatmul.msk.bf16.gmra.mxu1 %vm46_vm2, %v595_v12 }
  0x38   :  { %557 = vmatmul.msk.bf16.gmra.mxu0 %vm46_vm2, %v591_v13  ;;  %562 = vmatmul.msk.bf16.gmra.mxu1 %vm46_vm2, %v596_v14 }
  0x48   :  { %558 = vmatmul.msk.bf16.gmra.mxu0 %vm46_vm2, %v592_v15  ;;  %563 = vmatmul.msk.bf16.gmra.mxu1 %vm46_vm2, %v597_v16 }
  0x85   :  { %v69_v17 = vpop.f32.mrf.mxu0  ;;  %v187_v18 = vpop.f32.mrf.mxu1 }
  0x86   :  { %v720_v25 = vadd.f32 %v619_v23, %v69_v17 }
  0x8d   :  { %v71_v21 = vpop.f32.mrf.mxu0  ;;  %v189_v22 = vpop.f32.mrf.mxu1 }
  0x8e   :  { %v729_v33 = vadd.f32 %v619_v23, %v71_v21 }
  0x95   :  { %v74_v27 = vpop.f32.mrf.mxu0  ;;  %v192_v28 = vpop.f32.mrf.mxu1 }
  0x96   :  { %v725_v29 = vadd.f32 %v619_v23, %v74_v27  ;;  %v220_v30 = vadd.f32 %v192_v28, %v720_v25 }
  0x98   :  { %v218_v31 = vadd.f32 %v187_v18, %v725_v29  ;;  %v252_v32 = vmul.f32 0.2, %v220_v30  ;;  %vm236_vm3 = vcmp.gt.f32.partialorder %v220_v30, 0.0 }
  0x9a   :  { %v250_v34 = vmul.f32 0.2, %v218_v31  ;;  %vm234_vm4 = vcmp.gt.f32.partialorder %v218_v31, 0.0  ;;  %v268_v37 = vsel %vm236_vm3, %v220_v30, %v252_v32 }
  0x9b   :  { %v284_v43 = vpack.c.bf16 %v268_v37, %v268_v37 }
  0x9c   :  { %v266_v42 = vsel %vm234_vm4, %v218_v31, %v250_v34 }
  0x9d   :  { %v76_v35 = vpop.f32.mrf.mxu0  ;;  %v194_v36 = vpop.f32.mrf.mxu1  ;;  %v282_v47 = vpack.c.bf16 %v266_v42, %v266_v42  ;;  %v735_v49 = vunpack.c.l.b16 %v284_v43 }
  0x9e   :  { %v731_v38 = vadd.f32 %v619_v23, %v76_v35  ;;  %v221_v39 = vadd.f32 %v194_v36, %v729_v33 }
  0x9f   :  { %v741_v56 = vunpack.c.l.b16 %v282_v47 }
  0xa0   :  { %v219_v40 = vadd.f32 %v189_v22, %v731_v38  ;;  %vm237_vm5 = vcmp.gt.f32.partialorder %v221_v39, 0.0  ;;  %v253_v41 = vmul.f32 0.2, %v221_v39 }
  0xa2   :  { %v269_v44 = vsel %vm237_vm5, %v221_v39, %v253_v41  ;;  %vm235_vm6 = vcmp.gt.f32.partialorder %v219_v40, 0.0  ;;  %v251_v45 = vmul.f32 0.2, %v219_v40 }
  0xa3   :  { %v285_v46 = vpack.c.bf16 %v269_v44, %v269_v44 }
  0xa4   :  { %v267_v48 = vsel %vm235_vm6, %v219_v40, %v251_v45 }
  0xa5   :  { %v737_v50 = vunpack.c.l.b16 %v285_v46  ;;  %v172_v51 = vpop.f32.mrf.mxu0  ;;  %v197_v52 = vpop.f32.mrf.mxu1  ;;  %v283_v53 = vpack.c.bf16 %v267_v48, %v267_v48 }
  0xa6   :  { %v212_v54 = vadd.f32 %v172_v51, %v720_v25  ;;  %v222_v55 = vadd.f32 %v197_v52, %v725_v29 }
  0xa7   :  { %v743_v57 = vunpack.c.l.b16 %v283_v53  ;;  %v340_v58 = vpack.c.b16 %v737_v50, %v735_v49 }
  0xa8   :  { %v244_v60 = vmul.f32 0.2, %v212_v54  ;;  %v254_v61 = vmul.f32 0.2, %v222_v55  ;;  %vm228_vm7 = vcmp.gt.f32.partialorder %v212_v54, 0.0  ;;  %vm238_vm8 = vcmp.gt.f32.partialorder %v222_v55, 0.0 }
  0xa9   :  { %v339_v59 = vpack.c.b16 %v743_v57, %v741_v56  ;;  %v778_v56 = vld [vmem:[%s808_s6] ss:$0 sm:$0xff] }
  0xaa   :  { %v260_v0 = vsel %vm228_vm7, %v212_v54, %v244_v60  ;;  %v270_v1 = vsel %vm238_vm8, %v222_v55, %v254_v61 }
  0xab   :  { %v276_v6 = vpack.c.bf16 %v260_v0, %v260_v0  ;;  %v286_v7 = vpack.c.bf16 %v270_v1, %v270_v1 }
  0xad   :  { %v174_v62 = vpop.f32.mrf.mxu0  ;;  %v199_v63 = vpop.f32.mrf.mxu1  ;;  %v320_v12 = vunpack.c.l.b16 %v276_v6  ;;  %v330_v13 = vunpack.c.l.b16 %v286_v7 }
  0xae   :  { %v213_v2 = vadd.f32 %v174_v62, %v729_v33  ;;  %v223_v3 = vadd.f32 %v199_v63, %v731_v38 }
  0xb0   :  { %vm229_vm9 = vcmp.gt.f32.partialorder %v213_v2, 0.0  ;;  %v245_v4 = vmul.f32 0.2, %v213_v2  ;;  %vm239_vm10 = vcmp.gt.f32.partialorder %v223_v3, 0.0  ;;  %v255_v5 = vmul.f32 0.2, %v223_v3 }
  0xb2   :  { %v261_v8 = vsel %vm229_vm9, %v213_v2, %v245_v4  ;;  %v271_v9 = vsel %vm239_vm10, %v223_v3, %v255_v5 }
  0xb3   :  { %v277_v10 = vpack.c.bf16 %v261_v8, %v261_v8  ;;  %v287_v11 = vpack.c.bf16 %v271_v9, %v271_v9 }
  0xb5   :  { %v321_v14 = vunpack.c.l.b16 %v277_v10  ;;  %v331_v15 = vunpack.c.l.b16 %v287_v11  ;;  %v177_v16 = vpop.f32.mrf.mxu0  ;;  %v202_v17 = vpop.f32.mrf.mxu1 }
  0xb6   :  { %v214_v18 = vadd.f32 %v177_v16, %v725_v29  ;;  %v224_v19 = vadd.f32 %v202_v17, %v720_v25 }
  0xb7   :  { %v336_v20 = vpack.c.b16 %v321_v14, %v320_v12  ;;  %v341_v21 = vpack.c.b16 %v331_v15, %v330_v13 }
  0xb8   :  { %v246_v22 = vmul.f32 0.2, %v214_v18  ;;  %v256_v23 = vmul.f32 0.2, %v224_v19  ;;  %vm230_vm12 = vcmp.gt.f32.partialorder %v214_v18, 0.0  ;;  %vm240_vm13 = vcmp.gt.f32.partialorder %v224_v19, 0.0 }
  0xb9   :  { %580 = vmatmul.msk.bf16.vlgmr.msra.gmra.mxu2 %vm368_vm11, %v336_v20  ;;  %585 = vmatmul.msk.bf16.vlgmr.msra.gmra.mxu3 %vm368_vm11, %v341_v21 }
  0xba   :  { %v262_v27 = vsel %vm230_vm12, %v214_v18, %v246_v22  ;;  %v272_v28 = vsel %vm240_vm13, %v224_v19, %v256_v23 }
  0xbb   :  { %v278_v35 = vpack.c.bf16 %v262_v27, %v262_v27  ;;  %v288_v36 = vpack.c.bf16 %v272_v28, %v272_v28 }
  0xbd   :  { %v179_v24 = vpop.f32.mrf.mxu0  ;;  %v204_v26 = vpop.f32.mrf.mxu1  ;;  %v322_v42 = vunpack.c.l.b16 %v278_v35  ;;  %v332_v43 = vunpack.c.l.b16 %v288_v36 }
  0xbe   :  { %v215_v30 = vadd.f32 %v179_v24, %v731_v38  ;;  %v225_v31 = vadd.f32 %v204_v26, %v729_v33 }
  0xc0   :  { %vm231_vm14 = vcmp.gt.f32.partialorder %v215_v30, 0.0  ;;  %v247_v32 = vmul.f32 0.2, %v215_v30  ;;  %vm241_vm15 = vcmp.gt.f32.partialorder %v225_v31, 0.0  ;;  %v257_v34 = vmul.f32 0.2, %v225_v31 }
  0xc2   :  { %v263_v37 = vsel %vm231_vm14, %v215_v30, %v247_v32  ;;  %v273_v39 = vsel %vm241_vm15, %v225_v31, %v257_v34 }
  0xc3   :  { %v279_v40 = vpack.c.bf16 %v263_v37, %v263_v37  ;;  %v289_v41 = vpack.c.bf16 %v273_v39, %v273_v39 }
  0xc5   :  { %v323_v44 = vunpack.c.l.b16 %v279_v40  ;;  %v333_v45 = vunpack.c.l.b16 %v289_v41  ;;  %v182_v46 = vpop.f32.mrf.mxu0  ;;  %v207_v47 = vpop.f32.mrf.mxu1 }
  0xc6   :  { %v216_v48 = vadd.f32 %v182_v46, %v720_v25  ;;  %v226_v51 = vadd.f32 %v207_v47, %v725_v29 }
  0xc7   :  { %v337_v52 = vpack.c.b16 %v323_v44, %v322_v42  ;;  %v342_v53 = vpack.c.b16 %v333_v45, %v332_v43 }
  0xc8   :  { %v248_v54 = vmul.f32 0.2, %v216_v48  ;;  %v258_v55 = vmul.f32 0.2, %v226_v51  ;;  %vm232_vm0 = vcmp.gt.f32.partialorder %v216_v48, 0.0  ;;  %vm242_vm1 = vcmp.gt.f32.partialorder %v226_v51, 0.0 }
  0xc9   :  { %581 = vmatmul.msk.bf16.gmra.mxu2 %vm368_vm11, %v337_v52  ;;  %586 = vmatmul.msk.bf16.gmra.mxu3 %vm368_vm11, %v342_v53 }
  0xca   :  { %v264_v62 = vsel %vm232_vm0, %v216_v48, %v248_v54  ;;  %v274_v63 = vsel %vm242_vm1, %v226_v51, %v258_v55 }
  0xcb   :  { %v280_v2 = vpack.c.bf16 %v264_v62, %v264_v62  ;;  %v290_v3 = vpack.c.bf16 %v274_v63, %v274_v63 }
  0xcd   :  { %v184_v60 = vpop.f32.mrf.mxu0  ;;  %v209_v61 = vpop.f32.mrf.mxu1  ;;  %v324_v8 = vunpack.c.l.b16 %v280_v2  ;;  %v334_v9 = vunpack.c.l.b16 %v290_v3 }
  0xce   :  { %v217_v0 = vadd.f32 %v184_v60, %v729_v33  ;;  %v227_v25 = vadd.f32 %v209_v61, %v731_v38 }
  0xd0   :  { %vm233_vm2 = vcmp.gt.f32.partialorder %v217_v0, 0.0  ;;  %v249_v29 = vmul.f32 0.2, %v217_v0  ;;  %vm243_vm3 = vcmp.gt.f32.partialorder %v227_v25, 0.0  ;;  %v259_v1 = vmul.f32 0.2, %v227_v25 }
  0xd2   :  { %v265_v4 = vsel %vm233_vm2, %v217_v0, %v249_v29  ;;  %v275_v5 = vsel %vm243_vm3, %v227_v25, %v259_v1 }
  0xd3   :  { %v281_v6 = vpack.c.bf16 %v265_v4, %v265_v4  ;;  %v291_v7 = vpack.c.bf16 %v275_v5, %v275_v5 }
  0xd5   :  { %v325_v10 = vunpack.c.l.b16 %v281_v6  ;;  %v335_v11 = vunpack.c.l.b16 %v291_v7 }
  0xd7   :  { %v338_v12 = vpack.c.b16 %v325_v10, %v324_v8  ;;  %v343_v13 = vpack.c.b16 %v335_v11, %v334_v9 }
  0xd9   :  { %582 = vmatmul.msk.bf16.gmra.mxu2 %vm368_vm11, %v338_v12  ;;  %587 = vmatmul.msk.bf16.gmra.mxu3 %vm368_vm11, %v343_v13 }
  0xe9   :  { %583 = vmatmul.msk.bf16.gmra.mxu2 %vm368_vm11, %v339_v59 }
  0xf9   :  { %584 = vmatmul.msk.bf16.gmra.mxu2 %vm368_vm11, %v340_v58 }
 0x13c   :  { %v402_v33 = vpop.f32.mrf.mxu2  ;;  %v427_v38 = vpop.f32.mrf.mxu3 }
 0x13d   :  { %v428_v59 = vadd.f32 %v778_v56, %v427_v38  ;;  %v403_v53 = vadd.f32 %v778_v56, %v402_v33 }
 0x13f   :  { %vm452_vm6 = vcmp.gt.f32.partialorder %v428_v59, 0.0  ;;  %v468_v30 = vmul.f32 0.2, %v428_v59  ;;  %v458_v3 = vmul.f32 0.2, %v403_v53  ;;  %vm442_vm13 = vcmp.gt.f32.partialorder %v403_v53, 0.0 }
 0x141   :  { %v484_v42 = vsel %vm452_vm6, %v428_v59, %v468_v30  ;;  %v474_v11 = vsel %vm442_vm13, %v403_v53, %v458_v3 }
 0x144   :  { %v404_v14 = vpop.f32.mrf.mxu2  ;;  %v429_v15 = vpop.f32.mrf.mxu3 }
 0x145   :  { %v430_v27 = vadd.f32 %v778_v56, %v429_v15  ;;  %v405_v29 = vadd.f32 %v778_v56, %v404_v14 }
 0x147   :  { %v469_v40 = vmul.f32 0.2, %v430_v27  ;;  %vm453_vm9 = vcmp.gt.f32.partialorder %v430_v27, 0.0  ;;  %v459_v7 = vmul.f32 0.2, %v405_v29  ;;  %vm443_vm0 = vcmp.gt.f32.partialorder %v405_v29, 0.0 }
 0x149   :  { %v485_v51 = vsel %vm453_vm9, %v430_v27, %v469_v40  ;;  %v475_v15 = vsel %vm443_vm0, %v405_v29, %v459_v7 }
 0x14c   :  { %v407_v16 = vpop.f32.mrf.mxu2  ;;  %v432_v17 = vpop.f32.mrf.mxu3 }
 0x14d   :  { %v408_v49 = vadd.f32 %v778_v56, %v407_v16  ;;  %v433_v6 = vadd.f32 %v778_v56, %v432_v17 }
 0x14f   :  { %v460_v23 = vmul.f32 0.2, %v408_v49  ;;  %vm444_vm5 = vcmp.gt.f32.partialorder %v408_v49, 0.0  ;;  %v470_v38 = vmul.f32 0.2, %v433_v6  ;;  %vm454_vm2 = vcmp.gt.f32.partialorder %v433_v6, 0.0 }
 0x151   :  { %v476_v31 = vsel %vm444_vm5, %v408_v49, %v460_v23 }
 0x154   :  { %v409_v18 = vpop.f32.mrf.mxu2  ;;  %v773_v20 = vpop.f32.mrf.mxu3 }
 0x155   :  { %v410_v24 = vadd.f32 %v778_v56, %v409_v18  ;;  %v435_v8 = vadd.f32 %v778_v56, %v773_v20 }
 0x157   :  { %v461_v34 = vmul.f32 0.2, %v410_v24  ;;  %vm445_vm7 = vcmp.gt.f32.partialorder %v410_v24, 0.0  ;;  %v471_v16 = vmul.f32 0.2, %v435_v8  ;;  %vm455_vm3 = vcmp.gt.f32.partialorder %v435_v8, 0.0 }
 0x159   :  { %v477_v43 = vsel %vm445_vm7, %v410_v24, %v461_v34  ;;  %v487_v49 = vsel %vm455_vm3, %v435_v8, %v471_v16 }
 0x15c   :  { %v412_v19 = vpop.f32.mrf.mxu2  ;;  %v437_v22 = vpop.f32.mrf.mxu3 }
 0x15d   :  { %v438_v35 = vadd.f32 %v778_v56, %v437_v22  ;;  %v413_v52 = vadd.f32 %v778_v56, %v412_v19  ;;  %v486_v22 = vsel %vm454_vm2, %v433_v6, %v470_v38 }
 0x15f   :  { %v472_v44 = vmul.f32 0.2, %v438_v35  ;;  %vm456_vm10 = vcmp.gt.f32.partialorder %v438_v35, 0.0  ;;  %v462_v1 = vmul.f32 0.2, %v413_v52  ;;  %vm446_vm12 = vcmp.gt.f32.partialorder %v413_v52, 0.0 }
 0x161   :  { %v488_v60 = vsel %vm456_vm10, %v438_v35, %v472_v44  ;;  %v478_v9 = vsel %vm446_vm12, %v413_v52, %v462_v1 }
 0x162   :  { %v490_v14 = vmax.f32 %v474_v11, %v478_v9 }
 0x164   :  { %v414_v21 = vpop.f32.mrf.mxu2  ;;  %v439_v26 = vpop.f32.mrf.mxu3 }
 0x165   :  { %v440_v36 = vadd.f32 %v778_v56, %v439_v26  ;;  %v415_v61 = vadd.f32 %v778_v56, %v414_v21 }
 0x167   :  { %v473_v45 = vmul.f32 0.2, %v440_v36  ;;  %vm457_vm11 = vcmp.gt.f32.partialorder %v440_v36, 0.0  ;;  %v463_v4 = vmul.f32 0.2, %v415_v61  ;;  %vm447_vm14 = vcmp.gt.f32.partialorder %v415_v61, 0.0 }
 0x169   :  { %v489_v62 = vsel %vm457_vm11, %v440_v36, %v473_v45  ;;  %v479_v12 = vsel %vm447_vm14, %v415_v61, %v463_v4 }
 0x16a   :  { %v493_v18 = vmax.f32 %v475_v15, %v479_v12 }
 0x16c   :  { %v417_v50 = vpop.f32.mrf.mxu2 }
 0x16d   :  { %v418_v57 = vadd.f32 %v778_v56, %v417_v50 }
 0x16f   :  { %v464_v58 = vmul.f32 0.2, %v418_v57  ;;  %vm448_vm4 = vcmp.gt.f32.partialorder %v418_v57, 0.0 }
 0x171   :  { %v480_v28 = vsel %vm448_vm4, %v418_v57, %v464_v58 }
 0x172   :  { %v496_v39 = vmax.f32 %v476_v31, %v480_v28 }
 0x174   :  { %v419_v32 = vpop.f32.mrf.mxu2  ;;  %v497_v47 = vmax.f32 %v496_v39, %v484_v42 }
 0x175   :  { %v420_v37 = vadd.f32 %v778_v56, %v419_v32 }
 0x176   :  { %v498_v0 = vmax.f32 %v497_v47, %v488_v60 }
 0x177   :  { %vm449_vm8 = vcmp.gt.f32.partialorder %v420_v37, 0.0  ;;  %v465_v41 = vmul.f32 0.2, %v420_v37 }
 0x179   :  { %v481_v46 = vsel %vm449_vm8, %v420_v37, %v465_v41 }
 0x17a   :  { %v499_v48 = vmax.f32 %v477_v43, %v481_v46 }
 0x17c   :  { %v500_v54 = vmax.f32 %v499_v48, %v485_v51  ;;  %v422_v55 = vpop.f32.mrf.mxu2 }
 0x17d   :  { %v423_v63 = vadd.f32 %v778_v56, %v422_v55 }
 0x17e   :  { %v501_v25 = vmax.f32 %v500_v54, %v489_v62 }
 0x17f   :  { %v466_v5 = vmul.f32 0.2, %v423_v63  ;;  %vm450_vm15 = vcmp.gt.f32.partialorder %v423_v63, 0.0 }
 0x180   :  { %v610_v2 = vpack.c.bf16 %v501_v25, %v498_v0 }
 0x181   :  { %v482_v13 = vsel %vm450_vm15, %v423_v63, %v466_v5 }
 0x182   :  { %612 = vst [vmem:[%s810_s7 + $0x8] sm:$0xff] %v610_v2   ;;  %v491_v19 = vmax.f32 %v490_v14, %v482_v13 }
 0x184   :  { %v424_v10 = vpop.f32.mrf.mxu2  ;;  %v492_v50 = vmax.f32 %v491_v19, %v486_v22 }
 0x185   :  { %v425_v33 = vadd.f32 %v778_v56, %v424_v10 }
 0x187   :  { %vm451_vm1 = vcmp.gt.f32.partialorder %v425_v33, 0.0  ;;  %v467_v17 = vmul.f32 0.2, %v425_v33 }
 0x189   :  { %v483_v21 = vsel %vm451_vm1, %v425_v33, %v467_v17 }
 0x18a   :  { %v494_v20 = vmax.f32 %v493_v18, %v483_v21 }
 0x18c   :  { %v495_v57 = vmax.f32 %v494_v20, %v487_v49 }
 0x18e   :  { %v605_v58 = vpack.c.bf16 %v495_v57, %v492_v50 }
 0x190   :  { %606 = vst [vmem:[%s810_s7] sm:$0xff] %v605_v58  }

// kernel: _lambda_.8
= control target key start
LH: loop header
LB: loop body
LE: loop exit
PB: predicated region body
PF: predicated region fallthrough
CT: control target
= control target key end

     0   :  { %s1419_s12 = smov 0   ;;  %s1421_s13 = smov 0   ;;  %s1870_s0 = inlined_call_operand.vmem [shape: bf16[2,16,128], index: 0, kind: input, shape index: {}]   ;;  %s1871_s1 = inlined_call_operand.vmem [shape: bf16[128,1024], index: 1, kind: input, shape index: {}]   ;;  %s1872_s2 = inlined_call_operand.vmem [shape: f32[1,1024], index: 2, kind: input, shape index: {}]   ;;  %s1873_s3 = inlined_call_operand.vmem [shape: f32[2,1,1,1024], index: 3, kind: output, shape index: {}]  }
   0x1   :  { %s1423_s14 = smov 0  }
   0x2 LB: > { %s32_s15 = sadd.s32 1, %s1393_s13  ;;  %p1019_p0 = scmp.ge.s32.totalorder %s1397_s14, 1  ;;  %s1397_s14 = sphi %s1423_s14, %s13_s14   ;;  %s1393_s13 = sphi %s1421_s13, %s1875_s13   ;;  %s1389_s12 = sphi %s1419_s12, %s1874_s12  }
   0x3   : > { %p34_p1 = scmp.ge.s32.totalorder %s32_s15, 2  ;;  %p169_p2 = scmp.lt.s32.totalorder %s1397_s14, 3 }
   0x5   : > { %s1877_s15 = smov (%p34_p1, %s32_s15), 0  ;;  %p170_p3 = pnand %p1019_p0, %p169_p2 }
   0x6   : > { %p203_p4 = scmp.lt.s32.totalorder (!%p170_p3), %s1389_s12, 1 }
   0x7   : > { %173 = sbr.rel (%p170_p3) target bundleno = 246 (0xf6), region = 32 }
   0xc   : > { %v1253_v0 = vld [vmem:[%s1871_s1 + $0x1c0] sm:$0xf]  ;;  %v1343_v2 = vld [vmem:[%s1871_s1 + $0x1c4] sm:$0xf]  ;;  %v1261_v5 = vld [vmem:[%s1871_s1 + $0x1c8] sm:$0xf] }
   0xd   : > { %v1347_v1 = vld [vmem:[%s1871_s1 + $0x1dc] sm:$0xf0]  ;;  %v1255_v4 = vld [vmem:[%s1871_s1 + $0x1e0] sm:$0xf0]  ;;  %v1348_v6 = vld [vmem:[%s1871_s1 + $0x1e4] sm:$0xf0] }
   0xe   : > { %v1254_v3 = vor.u32 %v1347_v1, %v1253_v0  ;;  %v1258_v7 = vor.u32 %v1343_v2, %v1255_v4  ;;  %v1262_v8 = vor.u32 %v1348_v6, %v1261_v5  ;;  %v1344_v9 = vld [vmem:[%s1871_s1 + $0x1cc] sm:$0xf]  ;;  %v1221_v11 = vld [vmem:[%s1871_s1 + $0x180] sm:$0xf]  ;;  %v1335_v14 = vld [vmem:[%s1871_s1 + $0x184] sm:$0xf] }
   0xf   : > { %v1263_v10 = vld [vmem:[%s1871_s1 + $0x1e8] sm:$0xf0]  ;;  %v1339_v13 = vld [vmem:[%s1871_s1 + $0x19c] sm:$0xf0]  ;;  %v1223_v15 = vld [vmem:[%s1871_s1 + $0x1a0] sm:$0xf0] }
  0x10   : > { %631 = vmatpush.bf16.msra.mxu0 %v1254_v3  ;;  %v1266_v12 = vor.u32 %v1344_v9, %v1263_v10  ;;  %645 = vmatpush.bf16.msra.mxu1 %v1258_v7  ;;  %v1222_v16 = vor.u32 %v1339_v13, %v1221_v11  ;;  %v1226_v17 = vor.u32 %v1335_v14, %v1223_v15  ;;  %v1229_v18 = vld [vmem:[%s1871_s1 + $0x188] sm:$0xf]  ;;  %v1336_v20 = vld [vmem:[%s1871_s1 + $0x18c] sm:$0xf]  ;;  %v1189_v23 = vld [vmem:[%s1871_s1 + $0x140] sm:$0xf] }
  0x11   : > { %659 = vmatpush.bf16.msra.mxu2 %v1262_v8  ;;  %v1340_v19 = vld [vmem:[%s1871_s1 + $0x1a4] sm:$0xf0]  ;;  %v1231_v22 = vld [vmem:[%s1871_s1 + $0x1a8] sm:$0xf0]  ;;  %v1331_v24 = vld [vmem:[%s1871_s1 + $0x15c] sm:$0xf0] }
  0x12   : > { %673 = vmatpush.bf16.msra.mxu3 %v1266_v12  ;;  %v1230_v21 = vor.u32 %v1340_v19, %v1229_v18  ;;  %v1234_v25 = vor.u32 %v1336_v20, %v1231_v22  ;;  %v1327_v26 = vld [vmem:[%s1871_s1 + $0x144] sm:$0xf]  ;;  %v1197_v28 = vld [vmem:[%s1871_s1 + $0x148] sm:$0xf]  ;;  %v1190_v29 = vor.u32 %v1331_v24, %v1189_v23  ;;  %v1328_v31 = vld [vmem:[%s1871_s1 + $0x14c] sm:$0xf] }
  0x13   : > { %v1191_v27 = vld [vmem:[%s1871_s1 + $0x160] sm:$0xf0]  ;;  %v1332_v30 = vld [vmem:[%s1871_s1 + $0x164] sm:$0xf0]  ;;  %v1199_v32 = vld [vmem:[%s1871_s1 + $0x168] sm:$0xf0] }
  0x14   : > { %632 = vmatpush.bf16.msra.mxu0 %v1222_v16  ;;  %646 = vmatpush.bf16.msra.mxu1 %v1226_v17  ;;  %v1194_v33 = vor.u32 %v1327_v26, %v1191_v27  ;;  %v1198_v34 = vor.u32 %v1332_v30, %v1197_v28  ;;  %v1157_v35 = vld [vmem:[%s1871_s1 + $0x100] sm:$0xf]  ;;  %v1319_v37 = vld [vmem:[%s1871_s1 + $0x104] sm:$0xf]  ;;  %v1202_v38 = vor.u32 %v1328_v31, %v1199_v32  ;;  %v1165_v40 = vld [vmem:[%s1871_s1 + $0x108] sm:$0xf] }
  0x15   : > { %660 = vmatpush.bf16.msra.mxu2 %v1230_v21  ;;  %v1323_v36 = vld [vmem:[%s1871_s1 + $0x11c] sm:$0xf0]  ;;  %v1159_v39 = vld [vmem:[%s1871_s1 + $0x120] sm:$0xf0]  ;;  %v1324_v41 = vld [vmem:[%s1871_s1 + $0x124] sm:$0xf0] }
  0x16   : > { %674 = vmatpush.bf16.msra.mxu3 %v1234_v25  ;;  %v1320_v42 = vld [vmem:[%s1871_s1 + $0x10c] sm:$0xf]  ;;  %v1158_v44 = vor.u32 %v1323_v36, %v1157_v35  ;;  %v1162_v45 = vor.u32 %v1319_v37, %v1159_v39  ;;  %v1166_v46 = vor.u32 %v1324_v41, %v1165_v40  ;;  %v1125_v47 = vld [vmem:[%s1871_s1 + $0xc0] sm:$0xf]  ;;  %v1311_v49 = vld [vmem:[%s1871_s1 + $0xc4] sm:$0xf] }
  0x17   : > { %v1167_v43 = vld [vmem:[%s1871_s1 + $0x128] sm:$0xf0]  ;;  %v1315_v48 = vld [vmem:[%s1871_s1 + $0xdc] sm:$0xf0]  ;;  %v1127_v51 = vld [vmem:[%s1871_s1 + $0xe0] sm:$0xf0] }
  0x18   : > { %633 = vmatpush.bf16.msra.mxu0 %v1190_v29  ;;  %647 = vmatpush.bf16.msra.mxu1 %v1194_v33  ;;  %v1170_v50 = vor.u32 %v1320_v42, %v1167_v43  ;;  %v1133_v52 = vld [vmem:[%s1871_s1 + $0xc8] sm:$0xf]  ;;  %v1312_v54 = vld [vmem:[%s1871_s1 + $0xcc] sm:$0xf]  ;;  %v1126_v56 = vor.u32 %v1315_v48, %v1125_v47  ;;  %v1130_v57 = vor.u32 %v1311_v49, %v1127_v51  ;;  %v1093_v59 = vld [vmem:[%s1871_s1 + $0x80] sm:$0xf] }
  0x19   : > { %661 = vmatpush.bf16.msra.mxu2 %v1198_v34  ;;  %v1316_v53 = vld [vmem:[%s1871_s1 + $0xe4] sm:$0xf0]  ;;  %v1135_v55 = vld [vmem:[%s1871_s1 + $0xe8] sm:$0xf0]  ;;  %v1307_v60 = vld [vmem:[%s1871_s1 + $0x9c] sm:$0xf0] }
  0x1a   : > { %675 = vmatpush.bf16.msra.mxu3 %v1202_v38  ;;  %v1134_v58 = vor.u32 %v1316_v53, %v1133_v52  ;;  %v1303_v61 = vld [vmem:[%s1871_s1 + $0x84] sm:$0xf]  ;;  %v1138_v62 = vor.u32 %v1312_v54, %v1135_v55  ;;  %v1101_v0 = vld [vmem:[%s1871_s1 + $0x88] sm:$0xf]  ;;  %v1304_v2 = vld [vmem:[%s1871_s1 + $0x8c] sm:$0xf]  ;;  %v1094_v4 = vor.u32 %v1307_v60, %v1093_v59 }
  0x1b   : > { %v1095_v63 = vld [vmem:[%s1871_s1 + $0xa0] sm:$0xf0]  ;;  %v1308_v1 = vld [vmem:[%s1871_s1 + $0xa4] sm:$0xf0]  ;;  %v1103_v3 = vld [vmem:[%s1871_s1 + $0xa8] sm:$0xf0] }
  0x1c   : > { %634 = vmatpush.bf16.msra.mxu0 %v1158_v44  ;;  %648 = vmatpush.bf16.msra.mxu1 %v1162_v45  ;;  %v1098_v5 = vor.u32 %v1303_v61, %v1095_v63  ;;  %v1102_v6 = vor.u32 %v1308_v1, %v1101_v0  ;;  %v1061_v7 = vld [vmem:[%s1871_s1 + $0x40] sm:$0xf]  ;;  %v1295_v9 = vld [vmem:[%s1871_s1 + $0x44] sm:$0xf]  ;;  %v1106_v10 = vor.u32 %v1304_v2, %v1103_v3  ;;  %v1069_v12 = vld [vmem:[%s1871_s1 + $0x48] sm:$0xf] }
  0x1d   : > { %662 = vmatpush.bf16.msra.mxu2 %v1166_v46  ;;  %v1299_v8 = vld [vmem:[%s1871_s1 + $0x5c] sm:$0xf0]  ;;  %v1063_v11 = vld [vmem:[%s1871_s1 + $0x60] sm:$0xf0]  ;;  %v1300_v13 = vld [vmem:[%s1871_s1 + $0x64] sm:$0xf0] }
  0x1e   : > { %676 = vmatpush.bf16.msra.mxu3 %v1170_v50  ;;  %v1296_v14 = vld [vmem:[%s1871_s1 + $0x4c] sm:$0xf]  ;;  %v1029_v16 = vld [vmem:[%s1871_s1] sm:$0xf]  ;;  %v1062_v17 = vor.u32 %v1299_v8, %v1061_v7  ;;  %v1287_v19 = vld [vmem:[%s1871_s1 + $0x4] sm:$0xf]  ;;  %v1066_v21 = vor.u32 %v1295_v9, %v1063_v11  ;;  %v1070_v22 = vor.u32 %v1300_v13, %v1069_v12 }
  0x1f   : > { %v1071_v15 = vld [vmem:[%s1871_s1 + $0x68] sm:$0xf0]  ;;  %v1291_v18 = vld [vmem:[%s1871_s1 + $0x1c] sm:$0xf0]  ;;  %v1031_v20 = vld [vmem:[%s1871_s1 + $0x20] sm:$0xf0] }
  0x20   : > { %635 = vmatpush.bf16.msra.mxu0 %v1126_v56  ;;  %649 = vmatpush.bf16.msra.mxu1 %v1130_v57  ;;  %v1037_v23 = vld [vmem:[%s1871_s1 + $0x8] sm:$0xf]  ;;  %v1074_v25 = vor.u32 %v1296_v14, %v1071_v15  ;;  %v1288_v26 = vld [vmem:[%s1871_s1 + $0xc] sm:$0xf]  ;;  %v1269_v28 = vld [vmem:[%s1871_s1 + $0x1d0] sm:$0xf]  ;;  %v1030_v31 = vor.u32 %v1291_v18, %v1029_v16  ;;  %v1034_v35 = vor.u32 %v1287_v19, %v1031_v20 }
  0x21   : > { %663 = vmatpush.bf16.msra.mxu2 %v1134_v58  ;;  %v1292_v24 = vld [vmem:[%s1871_s1 + $0x24] sm:$0xf0]  ;;  %v1039_v27 = vld [vmem:[%s1871_s1 + $0x28] sm:$0xf0]  ;;  %v1349_v29 = vld [vmem:[%s1871_s1 + $0x1ec] sm:$0xf0] }
  0x22   : > { %677 = vmatpush.bf16.msra.mxu3 %v1138_v62  ;;  %v1345_v30 = vld [vmem:[%s1871_s1 + $0x1d4] sm:$0xf]  ;;  %s1879_s12 = smov (!%p203_p4, %s1389_s12), 1  ;;  %v1277_v33 = vld [vmem:[%s1871_s1 + $0x1d8] sm:$0xf]  ;;  %v1038_v36 = vor.u32 %v1292_v24, %v1037_v23  ;;  %v1042_v39 = vor.u32 %v1288_v26, %v1039_v27  ;;  %v1270_v40 = vor.u32 %v1349_v29, %v1269_v28 }
  0x23   : > { %v1271_v32 = vld [vmem:[%s1871_s1 + $0x1f0] sm:$0xf0]  ;;  %v1350_v34 = vld [vmem:[%s1871_s1 + $0x1f4] sm:$0xf0]  ;;  %v1346_v37 = vld [vmem:[%s1871_s1 + $0x1dc] sm:$0xf] }
  0x24   : > { %636 = vmatpush.bf16.msra.mxu0 %v1094_v4  ;;  %650 = vmatpush.bf16.msra.mxu1 %v1098_v5  ;;  %v1279_v38 = vld [vmem:[%s1871_s1 + $0x1f8] sm:$0xf0]  ;;  %s1285_s22 = sshll.u32 %s1879_s12, 3  ;;  %v1237_v41 = vld [vmem:[%s1871_s1 + $0x190] sm:$0xf]  ;;  %v1274_v42 = vor.u32 %v1345_v30, %v1271_v32  ;;  %v1278_v43 = vor.u32 %v1350_v34, %v1277_v33 }
  0x25   : > { %664 = vmatpush.bf16.msra.mxu2 %v1102_v6  ;;  %s210_s25 = scalar_lea.vmem %s1870_s0, %s1285_s22  ;;  %v1341_v44 = vld [vmem:[%s1871_s1 + $0x1ac] sm:$0xf0]  ;;  %v1337_v45 = vld [vmem:[%s1871_s1 + $0x194] sm:$0xf]  ;;  %v1282_v47 = vor.u32 %v1346_v37, %v1279_v38  ;;  %v1245_v49 = vld [vmem:[%s1871_s1 + $0x198] sm:$0xf]  ;;  %s220_s5 = scalar_lea.vmem %s1873_s3, %s1285_s22 }
  0x26   : > { %678 = vmatpush.bf16.msra.mxu3 %v1106_v10  ;;  %v1239_v46 = vld [vmem:[%s1871_s1 + $0x1b0] sm:$0xf0]  ;;  %v1677_v48 = vld [vmem:[%s210_s25] sm:$0xff]  ;;  %v1342_v50 = vld [vmem:[%s1871_s1 + $0x1b4] sm:$0xf0]  ;;  %v1238_v53 = vor.u32 %v1341_v44, %v1237_v41 }
  0x27   : > { %v1338_v51 = vld [vmem:[%s1871_s1 + $0x19c] sm:$0xf]  ;;  %v1242_v54 = vor.u32 %v1337_v45, %v1239_v46  ;;  %v1246_v55 = vor.u32 %v1342_v50, %v1245_v49  ;;  %v1205_v56 = vld [vmem:[%s1871_s1 + $0x150] sm:$0xf]  ;;  %v1329_v58 = vld [vmem:[%s1871_s1 + $0x154] sm:$0xf] }
  0x28   : > { %637 = vmatpush.bf16.msra.mxu0 %v1062_v17  ;;  %651 = vmatpush.bf16.msra.mxu1 %v1066_v21  ;;  %v1247_v52 = vld [vmem:[%s1871_s1 + $0x1b8] sm:$0xf0]  ;;  %v1333_v57 = vld [vmem:[%s1871_s1 + $0x16c] sm:$0xf0]  ;;  %v1207_v60 = vld [vmem:[%s1871_s1 + $0x170] sm:$0xf0] }
  0x29   : > { %665 = vmatpush.bf16.msra.mxu2 %v1070_v22  ;;  %v1250_v59 = vor.u32 %v1338_v51, %v1247_v52  ;;  %v1213_v61 = vld [vmem:[%s1871_s1 + $0x158] sm:$0xf]  ;;  %v1330_v63 = vld [vmem:[%s1871_s1 + $0x15c] sm:$0xf]  ;;  %v1206_v1 = vor.u32 %v1333_v57, %v1205_v56  ;;  %v1210_v2 = vor.u32 %v1329_v58, %v1207_v60  ;;  %v1173_v4 = vld [vmem:[%s1871_s1 + $0x110] sm:$0xf] }
  0x2a   : > { %679 = vmatpush.bf16.msra.mxu3 %v1074_v25  ;;  %v1334_v62 = vld [vmem:[%s1871_s1 + $0x174] sm:$0xf0]  ;;  %v1215_v0 = vld [vmem:[%s1871_s1 + $0x178] sm:$0xf0]  ;;  %v1325_v5 = vld [vmem:[%s1871_s1 + $0x12c] sm:$0xf0] }
  0x2b   : > { %v1214_v3 = vor.u32 %v1334_v62, %v1213_v61  ;;  %v1321_v6 = vld [vmem:[%s1871_s1 + $0x114] sm:$0xf]  ;;  %v1218_v7 = vor.u32 %v1330_v63, %v1215_v0  ;;  %v1181_v9 = vld [vmem:[%s1871_s1 + $0x118] sm:$0xf]  ;;  %v1322_v11 = vld [vmem:[%s1871_s1 + $0x11c] sm:$0xf]  ;;  %v1174_v13 = vor.u32 %v1325_v5, %v1173_v4 }
  0x2c   : > { %638 = vmatpush.bf16.msra.mxu0 %v1030_v31  ;;  %652 = vmatpush.bf16.msra.mxu1 %v1034_v35  ;;  %v1175_v8 = vld [vmem:[%s1871_s1 + $0x130] sm:$0xf0]  ;;  %v1326_v10 = vld [vmem:[%s1871_s1 + $0x134] sm:$0xf0]  ;;  %v1183_v12 = vld [vmem:[%s1871_s1 + $0x138] sm:$0xf0] }
  0x2d   : > { %666 = vmatpush.bf16.msra.mxu2 %v1038_v36  ;;  %v1178_v14 = vor.u32 %v1321_v6, %v1175_v8  ;;  %v1182_v15 = vor.u32 %v1326_v10, %v1181_v9  ;;  %v1141_v16 = vld [vmem:[%s1871_s1 + $0xd0] sm:$0xf]  ;;  %v1313_v18 = vld [vmem:[%s1871_s1 + $0xd4] sm:$0xf]  ;;  %v1186_v19 = vor.u32 %v1322_v11, %v1183_v12  ;;  %v1149_v21 = vld [vmem:[%s1871_s1 + $0xd8] sm:$0xf] }
  0x2e   : > { %680 = vmatpush.bf16.msra.mxu3 %v1042_v39  ;;  %v1317_v17 = vld [vmem:[%s1871_s1 + $0xec] sm:$0xf0]  ;;  %v1143_v20 = vld [vmem:[%s1871_s1 + $0xf0] sm:$0xf0]  ;;  %v1318_v22 = vld [vmem:[%s1871_s1 + $0xf4] sm:$0xf0] }
  0x2f   : > { %653 = vmatmul.bf16.vlgmr.msra.gmra.mxu1 %v1677_v48  ;;  %639 = vmatmul.bf16.vlgmr.msra.gmra.mxu0 %v1677_v48  ;;  %v1314_v23 = vld [vmem:[%s1871_s1 + $0xdc] sm:$0xf]  ;;  %v1142_v25 = vor.u32 %v1317_v17, %v1141_v16  ;;  %v1146_v26 = vor.u32 %v1313_v18, %v1143_v20  ;;  %v1150_v27 = vor.u32 %v1318_v22, %v1149_v21  ;;  %v1109_v28 = vld [vmem:[%s1871_s1 + $0x90] sm:$0xf]  ;;  %v1305_v30 = vld [vmem:[%s1871_s1 + $0x94] sm:$0xf] }
  0x30   : > { %687 = vmatpush.bf16.msrb.mxu0 %v1270_v40  ;;  %701 = vmatpush.bf16.msrb.mxu1 %v1274_v42  ;;  %v1151_v24 = vld [vmem:[%s1871_s1 + $0xf8] sm:$0xf0]  ;;  %v1309_v29 = vld [vmem:[%s1871_s1 + $0xac] sm:$0xf0]  ;;  %v1111_v32 = vld [vmem:[%s1871_s1 + $0xb0] sm:$0xf0] }
  0x31   : > { %715 = vmatpush.bf16.msrb.mxu2 %v1278_v43  ;;  %681 = vmatmul.bf16.vlgmr.msra.gmra.mxu3 %v1677_v48  ;;  %v1154_v31 = vor.u32 %v1314_v23, %v1151_v24  ;;  %v1117_v33 = vld [vmem:[%s1871_s1 + $0x98] sm:$0xf]  ;;  %v1306_v35 = vld [vmem:[%s1871_s1 + $0x9c] sm:$0xf]  ;;  %v1110_v37 = vor.u32 %v1309_v29, %v1109_v28  ;;  %v1114_v38 = vor.u32 %v1305_v30, %v1111_v32  ;;  %v1077_v40 = vld [vmem:[%s1871_s1 + $0x50] sm:$0xf] }
  0x32   : > { %729 = vmatpush.bf16.msrb.mxu3 %v1282_v47  ;;  %667 = vmatmul.bf16.vlgmr.msra.gmra.mxu2 %v1677_v48  ;;  %v1310_v34 = vld [vmem:[%s1871_s1 + $0xb4] sm:$0xf0]  ;;  %v1119_v36 = vld [vmem:[%s1871_s1 + $0xb8] sm:$0xf0]  ;;  %v1301_v41 = vld [vmem:[%s1871_s1 + $0x6c] sm:$0xf0] }
  0x33   : > { %v1118_v39 = vor.u32 %v1310_v34, %v1117_v33  ;;  %v1297_v42 = vld [vmem:[%s1871_s1 + $0x54] sm:$0xf]  ;;  %v1122_v43 = vor.u32 %v1306_v35, %v1119_v36  ;;  %v1085_v45 = vld [vmem:[%s1871_s1 + $0x58] sm:$0xf]  ;;  %v1298_v47 = vld [vmem:[%s1871_s1 + $0x5c] sm:$0xf]  ;;  %v1078_v50 = vor.u32 %v1301_v41, %v1077_v40 }
  0x34   : > { %688 = vmatpush.bf16.msrb.mxu0 %v1238_v53  ;;  %702 = vmatpush.bf16.msrb.mxu1 %v1242_v54  ;;  %v1079_v44 = vld [vmem:[%s1871_s1 + $0x70] sm:$0xf0]  ;;  %v1302_v46 = vld [vmem:[%s1871_s1 + $0x74] sm:$0xf0]  ;;  %v1087_v49 = vld [vmem:[%s1871_s1 + $0x78] sm:$0xf0] }
  0x35   : > { %716 = vmatpush.bf16.msrb.mxu2 %v1246_v55  ;;  %v1082_v51 = vor.u32 %v1297_v42, %v1079_v44  ;;  %v1086_v52 = vor.u32 %v1302_v46, %v1085_v45  ;;  %v1045_v53 = vld [vmem:[%s1871_s1 + $0x10] sm:$0xf]  ;;  %v1289_v55 = vld [vmem:[%s1871_s1 + $0x14] sm:$0xf]  ;;  %v1090_v56 = vor.u32 %v1298_v47, %v1087_v49  ;;  %v1053_v58 = vld [vmem:[%s1871_s1 + $0x18] sm:$0xf] }
  0x36   : > { %730 = vmatpush.bf16.msrb.mxu3 %v1250_v59  ;;  %v1293_v54 = vld [vmem:[%s1871_s1 + $0x2c] sm:$0xf0]  ;;  %v1047_v57 = vld [vmem:[%s1871_s1 + $0x30] sm:$0xf0]  ;;  %v1294_v59 = vld [vmem:[%s1871_s1 + $0x34] sm:$0xf0] }
  0x37   : > { %v1290_v60 = vld [vmem:[%s1871_s1 + $0x1c] sm:$0xf]  ;;  %v1046_v62 = vor.u32 %v1293_v54, %v1045_v53  ;;  %v1050_v63 = vor.u32 %v1289_v55, %v1047_v57  ;;  %v1054_v0 = vor.u32 %v1294_v59, %v1053_v58  ;;  %v1846_v4 = vld [vmem:[%s1872_s2] sm:$0xff] }
  0x38   : > { %689 = vmatpush.bf16.msrb.mxu0 %v1206_v1  ;;  %703 = vmatpush.bf16.msrb.mxu1 %v1210_v2  ;;  %v1055_v61 = vld [vmem:[%s1871_s1 + $0x38] sm:$0xf0]  ;;  %v289_v11 = vperm.slane %v1846_v4, 0  ;;  %v291_v12 = vperm.slane %v1846_v4, 2  ;;  %v295_v54 = vperm.slane %v1846_v4, 6  ;;  %v296_v59 = vperm.slane %v1846_v4, 7 }
  0x39   : > { %717 = vmatpush.bf16.msrb.mxu2 %v1214_v3  ;;  %v1058_v1 = vor.u32 %v1290_v60, %v1055_v61 }
  0x3a   : > { %731 = vmatpush.bf16.msrb.mxu3 %v1218_v7  ;;  %v290_v7 = vperm.slane %v1846_v4, 1 }
  0x3c   : > { %690 = vmatpush.bf16.msrb.mxu0 %v1174_v13  ;;  %704 = vmatpush.bf16.msrb.mxu1 %v1178_v14 }
  0x3d   : > { %718 = vmatpush.bf16.msrb.mxu2 %v1182_v15 }
  0x3e   : > { %732 = vmatpush.bf16.msrb.mxu3 %v1186_v19 }
  0x40   : > { %691 = vmatpush.bf16.msrb.mxu0 %v1142_v25  ;;  %705 = vmatpush.bf16.msrb.mxu1 %v1146_v26 }
  0x41   : > { %719 = vmatpush.bf16.msrb.mxu2 %v1150_v27 }
  0x42   : > { %733 = vmatpush.bf16.msrb.mxu3 %v1154_v31 }
  0x44   : > { %692 = vmatpush.bf16.msrb.mxu0 %v1110_v37  ;;  %706 = vmatpush.bf16.msrb.mxu1 %v1114_v38  ;;  %v293_v38 = vperm.slane %v1846_v4, 4 }
  0x45   : > { %720 = vmatpush.bf16.msrb.mxu2 %v1118_v39 }
  0x46   : > { %734 = vmatpush.bf16.msrb.mxu3 %v1122_v43  ;;  %v294_v43 = vperm.slane %v1846_v4, 5 }
  0x48   : > { %693 = vmatpush.bf16.msrb.mxu0 %v1078_v50  ;;  %707 = vmatpush.bf16.msrb.mxu1 %v1082_v51 }
  0x49   : > { %721 = vmatpush.bf16.msrb.mxu2 %v1086_v52 }
  0x4a   : > { %735 = vmatpush.bf16.msrb.mxu3 %v1090_v56 }
  0x4c   : > { %694 = vmatpush.bf16.msrb.mxu0 %v1046_v62  ;;  %708 = vmatpush.bf16.msrb.mxu1 %v1050_v63 }
  0x4d   : > { %722 = vmatpush.bf16.msrb.mxu2 %v1054_v0 }
  0x4e   : > { %736 = vmatpush.bf16.msrb.mxu3 %v1058_v1 }
  0x4f   : > { %695 = vmatmul.bf16.vlgmr.msrb.gmra.mxu0 %v1677_v48  ;;  %709 = vmatmul.bf16.vlgmr.msrb.gmra.mxu1 %v1677_v48 }
  0x50   : > { %723 = vmatmul.bf16.vlgmr.msrb.gmra.mxu2 %v1677_v48 }
  0x51   : > { %737 = vmatmul.bf16.vlgmr.msrb.gmra.mxu3 %v1677_v48  ;;  %v292_v48 = vperm.slane %v1846_v4, 3 }
  0xac   : > { %v654_v2 = vpop.f32.mrf.mxu1  ;;  %v640_v6 = vpop.f32.mrf.mxu0 }
  0xad   : > { %v655_v9 = vadd.f32 %v654_v2, %v290_v7  ;;  %v641_v18 = vadd.f32 %v640_v6, %v289_v11 }
  0xaf   : > { %vm744_vm0 = vcmp.gt.f32.partialorder %v655_v9, 0.0  ;;  %v760_v15 = vmul.f32 0.2, %v655_v9  ;;  %v759_v26 = vmul.f32 0.2, %v641_v18  ;;  %vm743_vm6 = vcmp.gt.f32.partialorder %v641_v18, 0.0 }
  0xb1   : > { %v776_v24 = vsel %vm744_vm0, %v655_v9, %v760_v15  ;;  %v775_v40 = vsel %vm743_vm6, %v641_v18, %v759_v26  ;;  %vm915_vm0 = vcmask 1042434   ;;  %vm925_vm6 = vcmask 1043456  }
  0xb4   : > { %v682_v5 = vpop.f32.mrf.mxu3  ;;  %v656_v8 = vpop.f32.mrf.mxu1 }
  0xb5   : > { %v668_v3 = vpop.f32.mrf.mxu2  ;;  %v657_v10 = vadd.f32 %v656_v8, %v290_v7  ;;  %v642_v17 = vpop.f32.mrf.mxu0  ;;  %v683_v21 = vadd.f32 %v682_v5, %v292_v48 }
  0xb6   : > { %v669_v19 = vadd.f32 %v668_v3, %v291_v12  ;;  %v643_v23 = vadd.f32 %v642_v17, %v289_v11 }
  0xb7   : > { %v768_v16 = vmul.f32 0.2, %v657_v10  ;;  %vm752_vm1 = vcmp.gt.f32.partialorder %v657_v10, 0.0  ;;  %v762_v29 = vmul.f32 0.2, %v683_v21  ;;  %vm746_vm4 = vcmp.gt.f32.partialorder %v683_v21, 0.0 }
  0xb8   : > { %v761_v27 = vmul.f32 0.2, %v669_v19  ;;  %vm745_vm2 = vcmp.gt.f32.partialorder %v669_v19, 0.0  ;;  %v767_v32 = vmul.f32 0.2, %v643_v23  ;;  %vm751_vm7 = vcmp.gt.f32.partialorder %v643_v23, 0.0 }
  0xb9   : > { %v784_v25 = vsel %vm752_vm1, %v657_v10, %v768_v16  ;;  %v778_v36 = vsel %vm746_vm4, %v683_v21, %v762_v29  ;;  %vm913_vm1 = vcmask 1040384   ;;  %vm917_vm4 = vcmask 1041408  }
  0xba   : > { %v792_v31 = vmax.f32 %v776_v24, %v784_v25  ;;  %v777_v33 = vsel %vm745_vm2, %v669_v19, %v761_v27  ;;  %v783_v42 = vsel %vm751_vm7, %v643_v23, %v767_v32  ;;  %vm919_vm2 = vcmask 1044484  }
  0xbb   : > { %v791_v46 = vmax.f32 %v775_v40, %v783_v42 }
  0xbc   : > { %v684_v14 = vpop.f32.mrf.mxu3  ;;  %v856_v41 = vrot.slane %v792_v31, 4 }
  0xbd   : > { %v670_v13 = vpop.f32.mrf.mxu2  ;;  %v685_v22 = vadd.f32 %v684_v14, %v292_v48  ;;  %v850_v57 = vrot.slane %v791_v46, 4 }
  0xbe   : > { %v671_v20 = vadd.f32 %v670_v13, %v291_v12  ;;  %v857_v49 = vmax.f32 %v792_v31, %v856_v41 }
  0xbf   : > { %v770_v30 = vmul.f32 0.2, %v685_v22  ;;  %vm754_vm5 = vcmp.gt.f32.partialorder %v685_v22, 0.0  ;;  %v851_v48 = vmax.f32 %v791_v46, %v850_v57 }
  0xc0   : > { %v769_v28 = vmul.f32 0.2, %v671_v20  ;;  %vm753_vm3 = vcmp.gt.f32.partialorder %v671_v20, 0.0  ;;  %v858_v62 = vrot.slane %v857_v49, 2 }
  0xc1   : > { %v786_v37 = vsel %vm754_vm5, %v685_v22, %v770_v30  ;;  %vm923_vm5 = vcmask 1045508  }
  0xc2   : > { %v785_v34 = vsel %vm753_vm3, %v671_v20, %v769_v28  ;;  %v794_v45 = vmax.f32 %v778_v36, %v786_v37  ;;  %v859_v12 = vmax.f32 %v857_v49, %v858_v62  ;;  %v852_v37 = vrot.slane %v851_v48, 2 }
  0xc3   : > { %v793_v44 = vmax.f32 %v777_v33, %v785_v34  ;;  %vm921_vm3 = vcmask 1046534  }
  0xc4   : > { %v868_v53 = vrot.slane %v794_v45, 4 }
  0xc5   : > { %v862_v51 = vrot.slane %v793_v44, 4 }
  0xc6   : > { %v869_v3 = vmax.f32 %v794_v45, %v868_v53  ;;  %v860_v45 = vrot.slane %v859_v12, 1 }
  0xc7   : > { %v863_v1 = vmax.f32 %v793_v44, %v862_v51 }
  0xc8   : > { %v870_v16 = vrot.slane %v869_v3, 2 }
  0xc9   : > { %v864_v13 = vrot.slane %v863_v1, 2 }
  0xca   : > { %v871_v29 = vmax.f32 %v869_v3, %v870_v16 }
  0xcb   : > { %v865_v26 = vmax.f32 %v863_v1, %v864_v13 }
  0xcc   : > { %v696_v35 = vpop.f32.mrf.mxu0  ;;  %v710_v39 = vpop.f32.mrf.mxu1 }
  0xcd   : > { %v697_v47 = vadd.f32 %v696_v35, %v293_v38  ;;  %v711_v50 = vadd.f32 %v710_v39, %v294_v43  ;;  %v866_v42 = vrot.slane %v865_v26, 1 }
  0xcf   : > { %v763_v58 = vmul.f32 0.2, %v697_v47  ;;  %vm747_vm8 = vcmp.gt.f32.partialorder %v697_v47, 0.0  ;;  %v764_v63 = vmul.f32 0.2, %v711_v50  ;;  %vm748_vm9 = vcmp.gt.f32.partialorder %v711_v50, 0.0 }
  0xd0   : > { %v867_v53 = vmax.f32 %v865_v26, %v866_v42 }
  0xd1   : > { %v779_v7 = vsel %vm747_vm8, %v697_v47, %v763_v58  ;;  %v780_v10 = vsel %vm748_vm9, %v711_v50, %v764_v63  ;;  %v853_v47 = vmax.f32 %v851_v48, %v852_v37 }
  0xd2   : > { %v907_v63 = vrot.slane %v867_v53, 6 }
  0xd3   : > { %v724_v52 = vpop.f32.mrf.mxu2  ;;  %v854_v58 = vrot.slane %v853_v47, 1 }
  0xd4   : > { %v738_v55 = vpop.f32.mrf.mxu3  ;;  %v698_v56 = vpop.f32.mrf.mxu0  ;;  %v725_v5 = vadd.f32 %v724_v52, %v295_v54 }
  0xd5   : > { %v699_v60 = vadd.f32 %v698_v56, %v293_v38  ;;  %v712_v61 = vpop.f32.mrf.mxu1  ;;  %v739_v8 = vadd.f32 %v738_v55, %v296_v59  ;;  %v861_v56 = vmax.f32 %v859_v12, %v860_v45 }
  0xd6   : > { %v713_v0 = vadd.f32 %v712_v61, %v294_v43  ;;  %v765_v17 = vmul.f32 0.2, %v725_v5  ;;  %vm749_vm12 = vcmp.gt.f32.partialorder %v725_v5, 0.0  ;;  %v872_v43 = vrot.slane %v871_v29, 1 }
  0xd7   : > { %vm755_vm10 = vcmp.gt.f32.partialorder %v699_v60, 0.0  ;;  %v771_v2 = vmul.f32 0.2, %v699_v60  ;;  %v766_v21 = vmul.f32 0.2, %v739_v8  ;;  %vm750_vm13 = vcmp.gt.f32.partialorder %v739_v8, 0.0 }
  0xd8   : > { %vm756_vm11 = vcmp.gt.f32.partialorder %v713_v0, 0.0  ;;  %v772_v6 = vmul.f32 0.2, %v713_v0  ;;  %v781_v30 = vsel %vm749_vm12, %v725_v5, %v765_v17  ;;  %v855_v5 = vmax.f32 %v853_v47, %v854_v58 }
  0xd9   : > { %v787_v9 = vsel %vm755_vm10, %v699_v60, %v771_v2  ;;  %v782_v33 = vsel %vm750_vm13, %v739_v8, %v766_v21  ;;  %v906_v2 = vrot.slane %v861_v56, 7 }
  0xda   : > { %v795_v11 = vmax.f32 %v779_v7, %v787_v9  ;;  %v788_v4 = vsel %vm756_vm11, %v713_v0, %v772_v6 }
  0xdb   : > { %v796_v14 = vmax.f32 %v780_v10, %v788_v4  ;;  %v726_v15 = vpop.f32.mrf.mxu2  ;;  %v914_v4 = vsel %vm913_vm1, %v855_v5, %v906_v2 }
  0xdc   : > { %v874_v18 = vrot.slane %v795_v11, 4  ;;  %v727_v19 = vadd.f32 %v726_v15, %v295_v54  ;;  %v740_v20 = vpop.f32.mrf.mxu3  ;;  %v873_v54 = vmax.f32 %v871_v29, %v872_v43 }
  0xdd   : > { %v880_v22 = vrot.slane %v796_v14, 4  ;;  %v741_v23 = vadd.f32 %v740_v20, %v296_v59 }
  0xde   : > { %v875_v24 = vmax.f32 %v795_v11, %v874_v18  ;;  %vm757_vm14 = vcmp.gt.f32.partialorder %v727_v19, 0.0  ;;  %v773_v25 = vmul.f32 0.2, %v727_v19  ;;  %v908_v0 = vrot.slane %v873_v54, 5 }
  0xdf   : > { %v881_v27 = vmax.f32 %v796_v14, %v880_v22  ;;  %vm758_vm15 = vcmp.gt.f32.partialorder %v741_v23, 0.0  ;;  %v774_v28 = vmul.f32 0.2, %v741_v23 }
  0xe0   : > { %v876_v31 = vrot.slane %v875_v24, 2  ;;  %v789_v32 = vsel %vm757_vm14, %v727_v19, %v773_v25  ;;  %v916_v10 = vsel %vm915_vm0, %v907_v63, %v908_v0 }
  0xe1   : > { %v882_v34 = vrot.slane %v881_v27, 2  ;;  %v797_v35 = vmax.f32 %v781_v30, %v789_v32  ;;  %v790_v36 = vsel %vm758_vm15, %v741_v23, %v774_v28  ;;  %v918_v13 = vsel %vm917_vm4, %v914_v4, %v916_v10 }
  0xe2   : > { %v877_v38 = vmax.f32 %v875_v24, %v876_v31  ;;  %v798_v39 = vmax.f32 %v782_v33, %v790_v36 }
  0xe3   : > { %v883_v40 = vmax.f32 %v881_v27, %v882_v34  ;;  %v886_v41 = vrot.slane %v797_v35, 4 }
  0xe4   : > { %v892_v44 = vrot.slane %v798_v39, 4  ;;  %v878_v49 = vrot.slane %v877_v38, 1 }
  0xe5   : > { %v887_v46 = vmax.f32 %v797_v35, %v886_v41  ;;  %v884_v50 = vrot.slane %v883_v40, 1 }
  0xe6   : > { %v893_v51 = vmax.f32 %v798_v39, %v892_v44  ;;  %v879_v59 = vmax.f32 %v877_v38, %v878_v49 }
  0xe7   : > { %v888_v52 = vrot.slane %v887_v46, 2  ;;  %v885_v60 = vmax.f32 %v883_v40, %v884_v50 }
  0xe8   : > { %v894_v55 = vrot.slane %v893_v51, 2  ;;  %v909_v6 = vrot.slane %v879_v59, 4 }
  0xe9   : > { %v889_v57 = vmax.f32 %v887_v46, %v888_v52  ;;  %v910_v7 = vrot.slane %v885_v60, 3 }
  0xea   : > { %v895_v61 = vmax.f32 %v893_v51, %v894_v55 }
  0xeb   : > { %v890_v62 = vrot.slane %v889_v57, 1  ;;  %v920_v12 = vsel %vm919_vm2, %v909_v6, %v910_v7 }
  0xec   : > { %v896_v1 = vrot.slane %v895_v61, 1 }
  0xed   : > { %v891_v3 = vmax.f32 %v889_v57, %v890_v62 }
  0xee   : > { %v897_v8 = vmax.f32 %v895_v61, %v896_v1 }
  0xef   : > { %v911_v9 = vrot.slane %v891_v3, 2 }
  0xf0   : > { %v912_v11 = vrot.slane %v897_v8, 1 }
  0xf2   : > { %v922_v48 = vsel %vm921_vm3, %v911_v9, %v912_v11 }
  0xf3   : > { %v924_v14 = vsel %vm923_vm5, %v920_v12, %v922_v48 }
  0xf4   : > { %v926_v15 = vsel %vm925_vm6, %v918_v13, %v924_v14 }
  0xf5   : > { %928 = vst [vmem:[%s220_s5] sm:$0xff] %v926_v15 }
  0xf6 PF: > { %s13_s14 = sadd.s32 1, %s1397_s14   ;;  %s1874_s12 = smov %s1393_s13 }
  0xf7   : > { %p10_p5 = scmp.ge.s32.totalorder %s13_s14, 4   ;;  %s1875_s13 = smov %s1877_s15 }
  0xf9   :  { %12 = sbr.rel (!%p10_p5) target bundleno = 2 (0x2), region = 74 }

// kernel: _lambda_.11
= control target key start
LH: loop header
LB: loop body
LE: loop exit
PB: predicated region body
PF: predicated region fallthrough
CT: control target
= control target key end

     0   :  { %vm71_vm0 = vcmask 523264   ;;  %vm354_vm8 = vcmask 519168   ;;  %s610_s3 = inlined_call_operand.vmem [shape: bf16[64,64], index: 3, kind: input, shape index: {}]   ;;  %s611_s2 = inlined_call_operand.vmem [shape: bf16[64,64], index: 2, kind: input, shape index: {}]   ;;  %s612_s4 = inlined_call_operand.vmem [shape: f32[1,64], index: 4, kind: input, shape index: {}]   ;;  %s613_s1 = inlined_call_operand.vmem [shape: bf16[32,64], index: 1, kind: input, shape index: {}]   ;;  %s614_s0 = inlined_call_operand.vmem [shape: bf16[4,32,64], index: 0, kind: input, shape index: {}]   ;;  %s615_s5 = inlined_call_operand.vmem [shape: bf16[32,64], index: 5, kind: output, shape index: {}]  }
   0x1   :  { %v450_v0 = vld [vmem:[%s610_s3 + $0x18] sm:$0xff]  ;;  %v449_v2 = vld [vmem:[%s610_s3 + $0x10] sm:$0xff]  ;;  %v448_v4 = vld [vmem:[%s610_s3 + $0x8] sm:$0xff] }
   0x2   :  { %v462_v1 = vld [vmem:[%s611_s2 + $0x18] sm:$0xff]  ;;  %82 = vmatpush.bf16.msra.mxu0 %v450_v0  ;;  %v461_v3 = vld [vmem:[%s611_s2 + $0x10] sm:$0xff]  ;;  %v460_v5 = vld [vmem:[%s611_s2 + $0x8] sm:$0xff] }
   0x3   :  { %213 = vmatpush.bf16.msra.mxu1 %v462_v1  ;;  %463 = vmatpush.bf16.msra.mxu2 %v462_v1  ;;  %v447_v6 = vld [vmem:[%s610_s3] sm:$0xff]  ;;  %v454_v10 = vld [vmem:[%s614_s0 + $0x18] sm:$0xff]  ;;  %v457_v11 = vld [vmem:[%s614_s0 + $0x30] sm:$0xff] }
   0x4   :  { %464 = vmatpush.bf16.msra.mxu3 %v462_v1  ;;  %v459_v7 = vld [vmem:[%s611_s2] sm:$0xff]  ;;  %v446_v12 = vld [vmem:[%s613_s1 + $0x8] sm:$0xff]  ;;  %v458_v15 = vld [vmem:[%s614_s0 + $0x38] sm:$0xff] }
   0x5   :  { %v445_v8 = vld [vmem:[%s613_s1] sm:$0xff]  ;;  %v452_v13 = vld [vmem:[%s614_s0 + $0x8] sm:$0xff]  ;;  %v453_v16 = vld [vmem:[%s614_s0 + $0x10] sm:$0xff] }
   0x6   :  { %83 = vmatpush.bf16.msra.mxu0 %v449_v2  ;;  %v451_v9 = vld [vmem:[%s614_s0] sm:$0xff]  ;;  %v456_v17 = vld [vmem:[%s614_s0 + $0x28] sm:$0xff] }
   0x7   :  { %214 = vmatpush.bf16.msra.mxu1 %v461_v3  ;;  %465 = vmatpush.bf16.msra.mxu2 %v461_v3  ;;  %v455_v14 = vld [vmem:[%s614_s0 + $0x20] sm:$0xff] }
   0x8   :  { %466 = vmatpush.bf16.msra.mxu3 %v461_v3  ;;  %v471_v24 = vld [vmem:[%s612_s4] ss:$0 sm:$0xff] }
   0xa   :  { %84 = vmatpush.bf16.msra.mxu0 %v448_v4 }
   0xb   :  { %215 = vmatpush.bf16.msra.mxu1 %v460_v5  ;;  %467 = vmatpush.bf16.msra.mxu2 %v460_v5 }
   0xc   :  { %468 = vmatpush.bf16.msra.mxu3 %v460_v5 }
   0xe   :  { %85 = vmatpush.bf16.msra.mxu0 %v447_v6 }
   0xf   :  { %216 = vmatpush.bf16.msra.mxu1 %v459_v7  ;;  %469 = vmatpush.bf16.msra.mxu2 %v459_v7 }
  0x10   :  { %470 = vmatpush.bf16.msra.mxu3 %v459_v7 }
  0x11   :  { %387 = vmatmul.msk.bf16.vlgmr.msra.gmra.mxu0 %vm71_vm0, %v445_v8 }
  0x12   :  { %437 = vmatmul.msk.bf16.vlgmr.msra.gmra.mxu1 %vm71_vm0, %v451_v9  ;;  %440 = vmatmul.msk.bf16.vlgmr.msra.gmra.mxu2 %vm71_vm0, %v454_v10 }
  0x13   :  { %443 = vmatmul.msk.bf16.vlgmr.msra.gmra.mxu3 %vm71_vm0, %v457_v11 }
  0x21   :  { %388 = vmatmul.msk.bf16.gmra.mxu0 %vm71_vm0, %v446_v12 }
  0x22   :  { %438 = vmatmul.msk.bf16.gmra.mxu1 %vm71_vm0, %v452_v13  ;;  %441 = vmatmul.msk.bf16.gmra.mxu2 %vm71_vm0, %v455_v14 }
  0x23   :  { %444 = vmatmul.msk.bf16.gmra.mxu3 %vm71_vm0, %v458_v15 }
  0x32   :  { %439 = vmatmul.msk.bf16.gmra.mxu1 %vm71_vm0, %v453_v16  ;;  %442 = vmatmul.msk.bf16.gmra.mxu2 %vm71_vm0, %v456_v17 }
  0x8e   :  { %v87_v18 = vpop.f32.mrf.mxu0 }
  0x8f   :  { %v218_v19 = vpop.f32.mrf.mxu1  ;;  %v88_v27 = vadd.f32 %v471_v24, %v87_v18 }
  0x91   :  { %v258_v30 = vadd.f32 %v218_v19, %v88_v27 }
  0x93   :  { %v290_v36 = vmul.f32 0.2, %v258_v30  ;;  %vm274_vm1 = vcmp.gt.f32.partialorder %v258_v30, 0.0 }
  0x95   :  { %v233_v20 = vpop.f32.mrf.mxu2  ;;  %v306_v43 = vsel %vm274_vm1, %v258_v30, %v290_v36 }
  0x96   :  { %v89_v22 = vpop.f32.mrf.mxu0  ;;  %v248_v23 = vpop.f32.mrf.mxu3  ;;  %v322_v54 = vsel %vm71_vm0, %v306_v43, -inf }
  0x97   :  { %v220_v21 = vpop.f32.mrf.mxu1  ;;  %v90_v31 = vadd.f32 %v471_v24, %v89_v22  ;;  %v270_v32 = vadd.f32 %v248_v23, %v88_v27 }
  0x99   :  { %v259_v37 = vadd.f32 %v220_v21, %v90_v31  ;;  %v302_v38 = vmul.f32 0.2, %v270_v32  ;;  %vm286_vm2 = vcmp.gt.f32.partialorder %v270_v32, 0.0 }
  0x9b   :  { %v291_v44 = vmul.f32 0.2, %v259_v37  ;;  %v318_v45 = vsel %vm286_vm2, %v270_v32, %v302_v38  ;;  %vm275_vm3 = vcmp.gt.f32.partialorder %v259_v37, 0.0 }
  0x9c   :  { %v327_v55 = vsel %vm71_vm0, %v318_v45, -inf }
  0x9d   :  { %v235_v25 = vpop.f32.mrf.mxu2  ;;  %v307_v57 = vsel %vm275_vm3, %v259_v37, %v291_v44 }
  0x9e   :  { %v92_v28 = vpop.f32.mrf.mxu0  ;;  %v250_v29 = vpop.f32.mrf.mxu3  ;;  %v329_v3 = vsel %vm71_vm0, %v307_v57, -inf }
  0x9f   :  { %v223_v26 = vpop.f32.mrf.mxu1  ;;  %v93_v34 = vadd.f32 %v471_v24, %v92_v28  ;;  %v271_v56 = vadd.f32 %v250_v29, %v90_v31 }
  0xa1   :  { %v264_v39 = vadd.f32 %v233_v20, %v93_v34  ;;  %v260_v40 = vadd.f32 %v223_v26, %v93_v34  ;;  %vm287_vm9 = vcmp.gt.f32.partialorder %v271_v56, 0.0  ;;  %v303_v4 = vmul.f32 0.2, %v271_v56 }
  0xa3   :  { %v296_v48 = vmul.f32 0.2, %v264_v39  ;;  %v292_v49 = vmul.f32 0.2, %v260_v40  ;;  %vm276_vm4 = vcmp.gt.f32.partialorder %v260_v40, 0.0  ;;  %vm280_vm5 = vcmp.gt.f32.partialorder %v264_v39, 0.0 }
  0xa5   :  { %v238_v33 = vpop.f32.mrf.mxu2  ;;  %v308_v60 = vsel %vm276_vm4, %v260_v40, %v292_v49  ;;  %v312_v61 = vsel %vm280_vm5, %v264_v39, %v296_v48 }
  0xa6   :  { %v266_v41 = vadd.f32 %v238_v33, %v88_v27  ;;  %v94_v42 = vpop.f32.mrf.mxu0  ;;  %v253_v46 = vpop.f32.mrf.mxu3  ;;  %v336_v6 = vsel %vm71_vm0, %v308_v60, -inf  ;;  %v337_v7 = vsel %vm71_vm0, %v312_v61, -inf }
  0xa7   :  { %v225_v35 = vpop.f32.mrf.mxu1  ;;  %v569_v50 = vadd.f32 %v471_v24, %v94_v42  ;;  %v272_v58 = vadd.f32 %v253_v46, %v93_v34  ;;  %v338_v23 = vmax.f32 %v336_v6, %v337_v7 }
  0xa8   :  { %v298_v52 = vmul.f32 0.2, %v266_v41  ;;  %vm282_vm6 = vcmp.gt.f32.partialorder %v266_v41, 0.0 }
  0xa9   :  { %v265_v62 = vadd.f32 %v235_v25, %v569_v50  ;;  %v261_v0 = vadd.f32 %v225_v35, %v569_v50  ;;  %vm288_vm10 = vcmp.gt.f32.partialorder %v272_v58, 0.0  ;;  %v304_v12 = vmul.f32 0.2, %v272_v58 }
  0xaa   :  { %v314_v63 = vsel %vm282_vm6, %v266_v41, %v298_v52  ;;  %v319_v35 = vsel %vm287_vm9, %v271_v56, %v303_v4 }
  0xab   :  { %v325_v10 = vsel %vm71_vm0, %v314_v63, -inf  ;;  %v297_v11 = vmul.f32 0.2, %v265_v62  ;;  %vm277_vm11 = vcmp.gt.f32.partialorder %v261_v0, 0.0  ;;  %v293_v19 = vmul.f32 0.2, %v261_v0 }
  0xac   :  { %vm281_vm14 = vcmp.gt.f32.partialorder %v265_v62, 0.0  ;;  %v320_v24 = vsel %vm288_vm10, %v272_v58, %v304_v12  ;;  %v334_v46 = vsel %vm71_vm0, %v319_v35, -inf }
  0xad   :  { %v240_v47 = vpop.f32.mrf.mxu2  ;;  %v313_v32 = vsel %vm281_vm14, %v265_v62, %v297_v11  ;;  %v341_v36 = vsel %vm71_vm0, %v320_v24, -inf }
  0xae   :  { %v267_v1 = vadd.f32 %v240_v47, %v90_v31  ;;  %v255_v17 = vpop.f32.mrf.mxu3  ;;  %v344_v44 = vsel %vm71_vm0, %v313_v32, -inf }
  0xaf   :  { %v228_v51 = vpop.f32.mrf.mxu1  ;;  %v273_v25 = vadd.f32 %v255_v17, %v569_v50 }
  0xb0   :  { %v262_v53 = vadd.f32 %v228_v51, %v88_v27  ;;  %v299_v15 = vmul.f32 0.2, %v267_v1  ;;  %vm283_vm12 = vcmp.gt.f32.partialorder %v267_v1, 0.0 }
  0xb1   :  { %v305_v40 = vmul.f32 0.2, %v273_v25  ;;  %vm289_vm1 = vcmp.gt.f32.partialorder %v273_v25, 0.0 }
  0xb2   :  { %vm278_vm7 = vcmp.gt.f32.partialorder %v262_v53, 0.0  ;;  %v294_v59 = vmul.f32 0.2, %v262_v53  ;;  %v315_v27 = vsel %vm283_vm12, %v267_v1, %v299_v15 }
  0xb3   :  { %v332_v39 = vsel %vm71_vm0, %v315_v27, -inf  ;;  %v321_v52 = vsel %vm289_vm1, %v273_v25, %v305_v40 }
  0xb4   :  { %v310_v2 = vsel %vm278_vm7, %v262_v53, %v294_v59  ;;  %v348_v56 = vsel %vm71_vm0, %v321_v52, -inf }
  0xb5   :  { %v323_v5 = vsel %vm71_vm0, %v310_v2, -inf  ;;  %v243_v9 = vpop.f32.mrf.mxu2 }
  0xb6   :  { %v324_v8 = vmax.f32 %v322_v54, %v323_v5  ;;  %v268_v13 = vadd.f32 %v243_v9, %v93_v34 }
  0xb7   :  { %v230_v14 = vpop.f32.mrf.mxu1 }
  0xb8   :  { %v326_v16 = vmax.f32 %v324_v8, %v325_v10  ;;  %v263_v18 = vadd.f32 %v230_v14, %v90_v31  ;;  %vm284_vm13 = vcmp.gt.f32.partialorder %v268_v13, 0.0  ;;  %v300_v20 = vmul.f32 0.2, %v268_v13 }
  0xb9   :  { %v309_v31 = vsel %vm277_vm11, %v261_v0, %v293_v19 }
  0xba   :  { %v328_v21 = vmax.f32 %v326_v16, %v327_v55  ;;  %vm279_vm15 = vcmp.gt.f32.partialorder %v263_v18, 0.0  ;;  %v295_v22 = vmul.f32 0.2, %v263_v18  ;;  %v316_v26 = vsel %vm284_vm13, %v268_v13, %v300_v20 }
  0xbb   :  { %v339_v29 = vsel %vm71_vm0, %v316_v26, -inf  ;;  %v343_v43 = vsel %vm71_vm0, %v309_v31, -inf }
  0xbc   :  { %v350_v28 = vpack.c.bf16 %v328_v21, %v328_v21  ;;  %v311_v30 = vsel %vm279_vm15, %v263_v18, %v295_v22  ;;  %v340_v33 = vmax.f32 %v338_v23, %v339_v29  ;;  %v345_v51 = vmax.f32 %v343_v43, %v344_v44 }
  0xbd   :  { %v330_v34 = vsel %vm71_vm0, %v311_v30, -inf  ;;  %v245_v38 = vpop.f32.mrf.mxu2 }
  0xbe   :  { %355 = vst.msk [vmem:[%s615_s5] sm:$0xf] %vm354_vm8, %v350_v28  ;;  %v331_v37 = vmax.f32 %v329_v3, %v330_v34  ;;  %v342_v41 = vmax.f32 %v340_v33, %v341_v36  ;;  %v269_v42 = vadd.f32 %v245_v38, %v569_v50 }
  0xc0   :  { %v333_v45 = vmax.f32 %v331_v37, %v332_v39  ;;  %v352_v47 = vpack.c.bf16 %v342_v41, %v342_v41  ;;  %vm285_vm2 = vcmp.gt.f32.partialorder %v269_v42, 0.0  ;;  %v301_v48 = vmul.f32 0.2, %v269_v42 }
  0xc2   :  { %v335_v49 = vmax.f32 %v333_v45, %v334_v46  ;;  %357 = vst.msk [vmem:[%s615_s5 + $0x8] sm:$0xf] %vm354_vm8, %v352_v47  ;;  %v317_v50 = vsel %vm285_vm2, %v269_v42, %v301_v48 }
  0xc3   :  { %v346_v54 = vsel %vm71_vm0, %v317_v50, -inf }
  0xc4   :  { %v351_v53 = vpack.c.bf16 %v335_v49, %v335_v49  ;;  %v347_v55 = vmax.f32 %v345_v51, %v346_v54 }
  0xc6   :  { %356 = vst.msk [vmem:[%s615_s5 + $0x4] sm:$0xf] %vm354_vm8, %v351_v53  ;;  %v349_v57 = vmax.f32 %v347_v55, %v348_v56 }
  0xc8   :  { %v353_v58 = vpack.c.bf16 %v349_v57, %v349_v57 }
  0xca   :  { %358 = vst.msk [vmem:[%s615_s5 + $0xc] sm:$0xf] %vm354_vm8, %v353_v58 }

// kernel: _lambda_.9
= control target key start
LH: loop header
LB: loop body
LE: loop exit
PB: predicated region body
PF: predicated region fallthrough
CT: control target
= control target key end

     0   :  { %vm53_vm0 = vcmask 1040384   ;;  %vm54_vm1 = vcmask 1041408   ;;  %v627_v1 = vmov 65535   ;;  %vm46_vm2 = vcmask 23552   ;;  %s838_s3 = inlined_call_operand.vmem [shape: bf16[3,64], index: 3, kind: input, shape index: {}]   ;;  %s839_s2 = inlined_call_operand.vmem [shape: bf16[3,64], index: 2, kind: input, shape index: {}]   ;;  %s840_s1 = inlined_call_operand.vmem [shape: bf16[32,3], index: 1, kind: input, shape index: {}]   ;;  %s841_s0 = inlined_call_operand.vmem [shape: bf16[4,32,3], index: 0, kind: input, shape index: {}]   ;;  %s842_s4 = inlined_call_operand.vmem [shape: f32[1,64], index: 4, kind: input, shape index: {}, may-alias: {4,6}]   ;;  %s843_s6 = inlined_call_operand.vmem [shape: f32[1,64], index: 6, kind: input, shape index: {}, may-alias: {4,6}]   ;;  %s844_s5 = inlined_call_operand.vmem [shape: bf16[64,64], index: 5, kind: input, shape index: {}]   ;;  %s845_s7 = inlined_call_operand.vmem [shape: bf16[32,64], index: 7, kind: output, shape index: {}]  }
   0x1   :  { %v31_v0 = vld [vmem:[%s838_s3] sm:$0x3]  ;;  %v55_v2 = vsel %vm53_vm0, 4294967295, %v627_v1  ;;  %v610_v8 = vld [vmem:[%s841_s0 + $0x18] sm:$0xff]  ;;  %v606_v9 = vld [vmem:[%s840_s1 + $0x8] sm:$0xff]  ;;  %vm368_vm11 = vcmask 523264  }
   0x2   :  { %v95_v3 = vld [vmem:[%s839_s2] sm:$0x3]  ;;  %v56_v4 = vsel %vm54_vm1, %v55_v2, 0  ;;  %v612_v12 = vld [vmem:[%s841_s0 + $0x28] sm:$0xff]  ;;  %v613_v14 = vld [vmem:[%s841_s0 + $0x30] sm:$0xff] }
   0x3   :  { %v58_v5 = vand.u32 %v56_v4, %v31_v0  ;;  %v161_v6 = vand.u32 %v95_v3, %v56_v4  ;;  %v605_v7 = vld [vmem:[%s840_s1] sm:$0xff]  ;;  %v608_v13 = vld [vmem:[%s841_s0 + $0x8] sm:$0xff]  ;;  %v609_v15 = vld [vmem:[%s841_s0 + $0x10] sm:$0xff] }
   0x4   :  { %v611_v10 = vld [vmem:[%s841_s0 + $0x20] sm:$0xff]  ;;  %v614_v16 = vld [vmem:[%s841_s0 + $0x38] sm:$0xff]  ;;  %v617_v20 = vld [vmem:[%s844_s5 + $0x10] sm:$0xff] }
   0x5   :  { %67 = vmatpush.bf16.msra.mxu0 %v58_v5  ;;  %619 = vmatpush.bf16.msra.mxu1 %v161_v6  ;;  %v607_v11 = vld [vmem:[%s841_s0] sm:$0xff]  ;;  %v618_v19 = vld [vmem:[%s844_s5 + $0x18] sm:$0xff]  ;;  %v616_v24 = vld [vmem:[%s844_s5 + $0x8] sm:$0xff] }
   0x6   :  { %397 = vmatpush.bf16.msra.mxu2 %v618_v19  ;;  %620 = vmatpush.bf16.msra.mxu3 %v618_v19  ;;  %v625_v23 = vld [vmem:[%s842_s4] ss:$0 sm:$0xff] }
   0x7   :  { %v615_v26 = vld [vmem:[%s844_s5] sm:$0xff] }
   0x8   :  { %539 = vmatmul.msk.bf16.vlgmr.msra.gmra.mxu0 %vm46_vm2, %v605_v7  ;;  %576 = vmatmul.msk.bf16.vlgmr.msra.gmra.mxu1 %vm46_vm2, %v610_v8 }
   0x9   :  { %170 = vmatpush.bf16.msrb.mxu0 %v161_v6 }
   0xa   :  { %398 = vmatpush.bf16.msra.mxu2 %v617_v20  ;;  %621 = vmatpush.bf16.msra.mxu3 %v617_v20 }
   0xe   :  { %399 = vmatpush.bf16.msra.mxu2 %v616_v24  ;;  %622 = vmatpush.bf16.msra.mxu3 %v616_v24 }
  0x12   :  { %400 = vmatpush.bf16.msra.mxu2 %v615_v26  ;;  %623 = vmatpush.bf16.msra.mxu3 %v615_v26 }
  0x18   :  { %540 = vmatmul.msk.bf16.gmra.mxu0 %vm46_vm2, %v606_v9  ;;  %577 = vmatmul.msk.bf16.gmra.mxu1 %vm46_vm2, %v611_v10 }
  0x28   :  { %573 = vmatmul.msk.bf16.vlgmr.msrb.gmra.mxu0 %vm46_vm2, %v607_v11  ;;  %578 = vmatmul.msk.bf16.gmra.mxu1 %vm46_vm2, %v612_v12 }
  0x38   :  { %574 = vmatmul.msk.bf16.gmra.mxu0 %vm46_vm2, %v608_v13  ;;  %579 = vmatmul.msk.bf16.gmra.mxu1 %vm46_vm2, %v613_v14 }
  0x48   :  { %575 = vmatmul.msk.bf16.gmra.mxu0 %vm46_vm2, %v609_v15  ;;  %580 = vmatmul.msk.bf16.gmra.mxu1 %vm46_vm2, %v614_v16 }
  0x85   :  { %v69_v17 = vpop.f32.mrf.mxu0  ;;  %v187_v18 = vpop.f32.mrf.mxu1 }
  0x86   :  { %v726_v25 = vadd.f32 %v625_v23, %v69_v17 }
  0x8d   :  { %v71_v21 = vpop.f32.mrf.mxu0  ;;  %v189_v22 = vpop.f32.mrf.mxu1 }
  0x8e   :  { %v735_v33 = vadd.f32 %v625_v23, %v71_v21 }
  0x95   :  { %v74_v27 = vpop.f32.mrf.mxu0  ;;  %v192_v28 = vpop.f32.mrf.mxu1 }
  0x96   :  { %v731_v29 = vadd.f32 %v625_v23, %v74_v27  ;;  %v220_v30 = vadd.f32 %v192_v28, %v726_v25 }
  0x98   :  { %v218_v31 = vadd.f32 %v187_v18, %v731_v29  ;;  %v252_v32 = vmul.f32 0.2, %v220_v30  ;;  %vm236_vm3 = vcmp.gt.f32.partialorder %v220_v30, 0.0 }
  0x9a   :  { %v250_v34 = vmul.f32 0.2, %v218_v31  ;;  %vm234_vm4 = vcmp.gt.f32.partialorder %v218_v31, 0.0  ;;  %v268_v37 = vsel %vm236_vm3, %v220_v30, %v252_v32 }
  0x9b   :  { %v284_v43 = vpack.c.bf16 %v268_v37, %v268_v37 }
  0x9c   :  { %v266_v42 = vsel %vm234_vm4, %v218_v31, %v250_v34 }
  0x9d   :  { %v76_v35 = vpop.f32.mrf.mxu0  ;;  %v194_v36 = vpop.f32.mrf.mxu1  ;;  %v282_v47 = vpack.c.bf16 %v266_v42, %v266_v42  ;;  %v741_v49 = vunpack.c.l.b16 %v284_v43 }
  0x9e   :  { %v737_v38 = vadd.f32 %v625_v23, %v76_v35  ;;  %v221_v39 = vadd.f32 %v194_v36, %v735_v33 }
  0x9f   :  { %v747_v56 = vunpack.c.l.b16 %v282_v47 }
  0xa0   :  { %v219_v40 = vadd.f32 %v189_v22, %v737_v38  ;;  %vm237_vm5 = vcmp.gt.f32.partialorder %v221_v39, 0.0  ;;  %v253_v41 = vmul.f32 0.2, %v221_v39 }
  0xa2   :  { %v269_v44 = vsel %vm237_vm5, %v221_v39, %v253_v41  ;;  %vm235_vm6 = vcmp.gt.f32.partialorder %v219_v40, 0.0  ;;  %v251_v45 = vmul.f32 0.2, %v219_v40 }
  0xa3   :  { %v285_v46 = vpack.c.bf16 %v269_v44, %v269_v44 }
  0xa4   :  { %v267_v48 = vsel %vm235_vm6, %v219_v40, %v251_v45 }
  0xa5   :  { %v743_v50 = vunpack.c.l.b16 %v285_v46  ;;  %v172_v51 = vpop.f32.mrf.mxu0  ;;  %v197_v52 = vpop.f32.mrf.mxu1  ;;  %v283_v53 = vpack.c.bf16 %v267_v48, %v267_v48 }
  0xa6   :  { %v212_v54 = vadd.f32 %v172_v51, %v726_v25  ;;  %v222_v55 = vadd.f32 %v197_v52, %v731_v29 }
  0xa7   :  { %v749_v57 = vunpack.c.l.b16 %v283_v53  ;;  %v340_v58 = vpack.c.b16 %v743_v50, %v741_v49 }
  0xa8   :  { %v244_v60 = vmul.f32 0.2, %v212_v54  ;;  %v254_v61 = vmul.f32 0.2, %v222_v55  ;;  %vm228_vm7 = vcmp.gt.f32.partialorder %v212_v54, 0.0  ;;  %vm238_vm8 = vcmp.gt.f32.partialorder %v222_v55, 0.0 }
  0xa9   :  { %v339_v59 = vpack.c.b16 %v749_v57, %v747_v56  ;;  %v786_v56 = vld [vmem:[%s843_s6] ss:$0 sm:$0xff] }
  0xaa   :  { %v260_v0 = vsel %vm228_vm7, %v212_v54, %v244_v60  ;;  %v270_v1 = vsel %vm238_vm8, %v222_v55, %v254_v61 }
  0xab   :  { %v276_v6 = vpack.c.bf16 %v260_v0, %v260_v0  ;;  %v286_v7 = vpack.c.bf16 %v270_v1, %v270_v1 }
  0xad   :  { %v174_v62 = vpop.f32.mrf.mxu0  ;;  %v199_v63 = vpop.f32.mrf.mxu1  ;;  %v320_v12 = vunpack.c.l.b16 %v276_v6  ;;  %v330_v13 = vunpack.c.l.b16 %v286_v7 }
  0xae   :  { %v213_v2 = vadd.f32 %v174_v62, %v735_v33  ;;  %v223_v3 = vadd.f32 %v199_v63, %v737_v38 }
  0xb0   :  { %vm229_vm9 = vcmp.gt.f32.partialorder %v213_v2, 0.0  ;;  %v245_v4 = vmul.f32 0.2, %v213_v2  ;;  %vm239_vm10 = vcmp.gt.f32.partialorder %v223_v3, 0.0  ;;  %v255_v5 = vmul.f32 0.2, %v223_v3 }
  0xb2   :  { %v261_v8 = vsel %vm229_vm9, %v213_v2, %v245_v4  ;;  %v271_v9 = vsel %vm239_vm10, %v223_v3, %v255_v5 }
  0xb3   :  { %v277_v10 = vpack.c.bf16 %v261_v8, %v261_v8  ;;  %v287_v11 = vpack.c.bf16 %v271_v9, %v271_v9 }
  0xb5   :  { %v321_v14 = vunpack.c.l.b16 %v277_v10  ;;  %v331_v15 = vunpack.c.l.b16 %v287_v11  ;;  %v177_v16 = vpop.f32.mrf.mxu0  ;;  %v202_v17 = vpop.f32.mrf.mxu1 }
  0xb6   :  { %v214_v18 = vadd.f32 %v177_v16, %v731_v29  ;;  %v224_v19 = vadd.f32 %v202_v17, %v726_v25 }
  0xb7   :  { %v336_v20 = vpack.c.b16 %v321_v14, %v320_v12  ;;  %v341_v21 = vpack.c.b16 %v331_v15, %v330_v13 }
  0xb8   :  { %v246_v22 = vmul.f32 0.2, %v214_v18  ;;  %v256_v23 = vmul.f32 0.2, %v224_v19  ;;  %vm230_vm12 = vcmp.gt.f32.partialorder %v214_v18, 0.0  ;;  %vm240_vm13 = vcmp.gt.f32.partialorder %v224_v19, 0.0 }
  0xb9   :  { %597 = vmatmul.msk.bf16.vlgmr.msra.gmra.mxu2 %vm368_vm11, %v336_v20  ;;  %602 = vmatmul.msk.bf16.vlgmr.msra.gmra.mxu3 %vm368_vm11, %v341_v21 }
  0xba   :  { %v262_v27 = vsel %vm230_vm12, %v214_v18, %v246_v22  ;;  %v272_v28 = vsel %vm240_vm13, %v224_v19, %v256_v23 }
  0xbb   :  { %v278_v35 = vpack.c.bf16 %v262_v27, %v262_v27  ;;  %v288_v36 = vpack.c.bf16 %v272_v28, %v272_v28 }
  0xbd   :  { %v179_v24 = vpop.f32.mrf.mxu0  ;;  %v204_v26 = vpop.f32.mrf.mxu1  ;;  %v322_v42 = vunpack.c.l.b16 %v278_v35  ;;  %v332_v43 = vunpack.c.l.b16 %v288_v36 }
  0xbe   :  { %v215_v30 = vadd.f32 %v179_v24, %v737_v38  ;;  %v225_v31 = vadd.f32 %v204_v26, %v735_v33 }
  0xc0   :  { %vm231_vm14 = vcmp.gt.f32.partialorder %v215_v30, 0.0  ;;  %v247_v32 = vmul.f32 0.2, %v215_v30  ;;  %vm241_vm15 = vcmp.gt.f32.partialorder %v225_v31, 0.0  ;;  %v257_v34 = vmul.f32 0.2, %v225_v31 }
  0xc2   :  { %v263_v37 = vsel %vm231_vm14, %v215_v30, %v247_v32  ;;  %v273_v39 = vsel %vm241_vm15, %v225_v31, %v257_v34  ;;  %vm522_vm14 = vcmask 519168  }
  0xc3   :  { %v279_v40 = vpack.c.bf16 %v263_v37, %v263_v37  ;;  %v289_v41 = vpack.c.bf16 %v273_v39, %v273_v39 }
  0xc5   :  { %v323_v44 = vunpack.c.l.b16 %v279_v40  ;;  %v333_v45 = vunpack.c.l.b16 %v289_v41  ;;  %v182_v46 = vpop.f32.mrf.mxu0  ;;  %v207_v47 = vpop.f32.mrf.mxu1 }
  0xc6   :  { %v216_v48 = vadd.f32 %v182_v46, %v726_v25  ;;  %v226_v51 = vadd.f32 %v207_v47, %v731_v29 }
  0xc7   :  { %v337_v52 = vpack.c.b16 %v323_v44, %v322_v42  ;;  %v342_v53 = vpack.c.b16 %v333_v45, %v332_v43 }
  0xc8   :  { %v248_v54 = vmul.f32 0.2, %v216_v48  ;;  %v258_v55 = vmul.f32 0.2, %v226_v51  ;;  %vm232_vm0 = vcmp.gt.f32.partialorder %v216_v48, 0.0  ;;  %vm242_vm1 = vcmp.gt.f32.partialorder %v226_v51, 0.0 }
  0xc9   :  { %598 = vmatmul.msk.bf16.gmra.mxu2 %vm368_vm11, %v337_v52  ;;  %603 = vmatmul.msk.bf16.gmra.mxu3 %vm368_vm11, %v342_v53 }
  0xca   :  { %v264_v62 = vsel %vm232_vm0, %v216_v48, %v248_v54  ;;  %v274_v63 = vsel %vm242_vm1, %v226_v51, %v258_v55 }
  0xcb   :  { %v280_v2 = vpack.c.bf16 %v264_v62, %v264_v62  ;;  %v290_v3 = vpack.c.bf16 %v274_v63, %v274_v63 }
  0xcd   :  { %v184_v60 = vpop.f32.mrf.mxu0  ;;  %v209_v61 = vpop.f32.mrf.mxu1  ;;  %v324_v8 = vunpack.c.l.b16 %v280_v2  ;;  %v334_v9 = vunpack.c.l.b16 %v290_v3 }
  0xce   :  { %v217_v0 = vadd.f32 %v184_v60, %v735_v33  ;;  %v227_v25 = vadd.f32 %v209_v61, %v737_v38 }
  0xd0   :  { %vm233_vm2 = vcmp.gt.f32.partialorder %v217_v0, 0.0  ;;  %v249_v29 = vmul.f32 0.2, %v217_v0  ;;  %vm243_vm3 = vcmp.gt.f32.partialorder %v227_v25, 0.0  ;;  %v259_v1 = vmul.f32 0.2, %v227_v25 }
  0xd2   :  { %v265_v4 = vsel %vm233_vm2, %v217_v0, %v249_v29  ;;  %v275_v5 = vsel %vm243_vm3, %v227_v25, %v259_v1 }
  0xd3   :  { %v281_v6 = vpack.c.bf16 %v265_v4, %v265_v4  ;;  %v291_v7 = vpack.c.bf16 %v275_v5, %v275_v5 }
  0xd5   :  { %v325_v10 = vunpack.c.l.b16 %v281_v6  ;;  %v335_v11 = vunpack.c.l.b16 %v291_v7 }
  0xd7   :  { %v338_v12 = vpack.c.b16 %v325_v10, %v324_v8  ;;  %v343_v13 = vpack.c.b16 %v335_v11, %v334_v9 }
  0xd9   :  { %599 = vmatmul.msk.bf16.gmra.mxu2 %vm368_vm11, %v338_v12  ;;  %604 = vmatmul.msk.bf16.gmra.mxu3 %vm368_vm11, %v343_v13 }
  0xe9   :  { %600 = vmatmul.msk.bf16.gmra.mxu2 %vm368_vm11, %v339_v59 }
  0xf9   :  { %601 = vmatmul.msk.bf16.gmra.mxu2 %vm368_vm11, %v340_v58 }
 0x13c   :  { %v402_v33 = vpop.f32.mrf.mxu2  ;;  %v427_v38 = vpop.f32.mrf.mxu3 }
 0x13d   :  { %v428_v57 = vadd.f32 %v786_v56, %v427_v38  ;;  %v403_v46 = vadd.f32 %v786_v56, %v402_v33 }
 0x13f   :  { %v468_v23 = vmul.f32 0.2, %v428_v57  ;;  %vm452_vm5 = vcmp.gt.f32.partialorder %v428_v57, 0.0  ;;  %v458_v63 = vmul.f32 0.2, %v403_v46  ;;  %vm442_vm15 = vcmp.gt.f32.partialorder %v403_v46, 0.0 }
 0x141   :  { %v484_v32 = vsel %vm452_vm5, %v428_v57, %v468_v23  ;;  %v474_v11 = vsel %vm442_vm15, %v403_v46, %v458_v63 }
 0x142   :  { %v507_v44 = vsel %vm368_vm11, %v484_v32, -inf }
 0x144   :  { %v779_v14 = vpop.f32.mrf.mxu2  ;;  %v429_v15 = vpop.f32.mrf.mxu3 }
 0x145   :  { %v430_v34 = vadd.f32 %v786_v56, %v429_v15  ;;  %v405_v7 = vadd.f32 %v786_v56, %v779_v14 }
 0x147   :  { %v469_v47 = vmul.f32 0.2, %v430_v34  ;;  %vm453_vm9 = vcmp.gt.f32.partialorder %v430_v34, 0.0  ;;  %v459_v14 = vmul.f32 0.2, %v405_v7  ;;  %vm443_vm3 = vcmp.gt.f32.partialorder %v405_v7, 0.0 }
 0x149   :  { %v485_v0 = vsel %vm453_vm9, %v430_v34, %v469_v47 }
 0x14a   :  { %v514_v8 = vsel %vm368_vm11, %v485_v0, -inf }
 0x14c   :  { %v407_v16 = vpop.f32.mrf.mxu2  ;;  %v432_v17 = vpop.f32.mrf.mxu3 }
 0x14d   :  { %v408_v50 = vadd.f32 %v786_v56, %v407_v16  ;;  %v433_v62 = vadd.f32 %v786_v56, %v432_v17 }
 0x14f   :  { %v460_v58 = vmul.f32 0.2, %v408_v50  ;;  %vm444_vm4 = vcmp.gt.f32.partialorder %v408_v50, 0.0  ;;  %v470_v9 = vmul.f32 0.2, %v433_v62  ;;  %vm454_vm0 = vcmp.gt.f32.partialorder %v433_v62, 0.0 }
 0x151   :  { %v476_v27 = vsel %vm444_vm4, %v408_v50, %v460_v58 }
 0x152   :  { %v504_v36 = vsel %vm368_vm11, %v476_v27, -inf }
 0x154   :  { %v409_v18 = vpop.f32.mrf.mxu2  ;;  %v781_v19 = vpop.f32.mrf.mxu3 }
 0x155   :  { %v410_v26 = vadd.f32 %v786_v56, %v409_v18  ;;  %v490_v18 = vsel %vm368_vm11, %v474_v11, -inf }
 0x157   :  { %v461_v37 = vmul.f32 0.2, %v410_v26  ;;  %vm445_vm8 = vcmp.gt.f32.partialorder %v410_v26, 0.0 }
 0x159   :  { %v477_v52 = vsel %vm445_vm8, %v410_v26, %v461_v37  ;;  %v475_v26 = vsel %vm443_vm3, %v405_v7, %v459_v14 }
 0x15a   :  { %v511_v1 = vsel %vm368_vm11, %v477_v52, -inf  ;;  %v497_v34 = vsel %vm368_vm11, %v475_v26, -inf }
 0x15c   :  { %v412_v20 = vpop.f32.mrf.mxu2  ;;  %v437_v49 = vpop.f32.mrf.mxu3 }
 0x15d   :  { %v438_v59 = vadd.f32 %v786_v56, %v437_v49  ;;  %v413_v39 = vadd.f32 %v786_v56, %v412_v20  ;;  %v486_v20 = vsel %vm454_vm0, %v433_v62, %v470_v9 }
 0x15e   :  { %v495_v23 = vsel %vm368_vm11, %v486_v20, -inf }
 0x15f   :  { %v472_v28 = vmul.f32 0.2, %v438_v59  ;;  %vm456_vm7 = vcmp.gt.f32.partialorder %v438_v59, 0.0  ;;  %v462_v53 = vmul.f32 0.2, %v413_v39  ;;  %vm446_vm12 = vcmp.gt.f32.partialorder %v413_v39, 0.0 }
 0x161   :  { %v488_v41 = vsel %vm456_vm7, %v438_v59, %v472_v28  ;;  %v478_v3 = vsel %vm446_vm12, %v413_v39, %v462_v53 }
 0x162   :  { %v509_v54 = vsel %vm368_vm11, %v488_v41, -inf  ;;  %v491_v33 = vsel %vm368_vm11, %v478_v3, -inf }
 0x163   :  { %v492_v49 = vmax.f32 %v490_v18, %v491_v33 }
 0x164   :  { %v414_v21 = vpop.f32.mrf.mxu2  ;;  %v439_v31 = vpop.f32.mrf.mxu3 }
 0x165   :  { %v440_v42 = vadd.f32 %v786_v56, %v439_v31  ;;  %v415_v4 = vadd.f32 %v786_v56, %v414_v21  ;;  %v435_v21 = vadd.f32 %v786_v56, %v781_v19 }
 0x167   :  { %v473_v55 = vmul.f32 0.2, %v440_v42  ;;  %vm457_vm13 = vcmp.gt.f32.partialorder %v440_v42, 0.0  ;;  %v463_v15 = vmul.f32 0.2, %v415_v4  ;;  %vm447_vm2 = vcmp.gt.f32.partialorder %v415_v4, 0.0 }
 0x168   :  { %v471_v27 = vmul.f32 0.2, %v435_v21  ;;  %vm455_vm4 = vcmp.gt.f32.partialorder %v435_v21, 0.0 }
 0x169   :  { %v489_v5 = vsel %vm457_vm13, %v440_v42, %v473_v55  ;;  %v479_v59 = vsel %vm447_vm2, %v415_v4, %v463_v15 }
 0x16a   :  { %v516_v38 = vsel %vm368_vm11, %v489_v5, -inf }
 0x16c   :  { %v417_v22 = vpop.f32.mrf.mxu2 }
 0x16d   :  { %v418_v24 = vadd.f32 %v786_v56, %v417_v22 }
 0x16f   :  { %vm448_vm6 = vcmp.gt.f32.partialorder %v418_v24, 0.0  ;;  %v464_v30 = vmul.f32 0.2, %v418_v24 }
 0x171   :  { %v480_v35 = vsel %vm448_vm6, %v418_v24, %v464_v30  ;;  %v498_v30 = vsel %vm368_vm11, %v479_v59, -inf }
 0x172   :  { %v505_v40 = vsel %vm368_vm11, %v480_v35, -inf  ;;  %v487_v35 = vsel %vm455_vm4, %v435_v21, %v471_v27 }
 0x173   :  { %v506_v43 = vmax.f32 %v504_v36, %v505_v40  ;;  %v499_v36 = vmax.f32 %v497_v34, %v498_v30 }
 0x174   :  { %v419_v45 = vpop.f32.mrf.mxu2 }
 0x175   :  { %v508_v48 = vmax.f32 %v506_v43, %v507_v44  ;;  %v420_v51 = vadd.f32 %v786_v56, %v419_v45 }
 0x177   :  { %v510_v60 = vmax.f32 %v508_v48, %v509_v54  ;;  %vm449_vm10 = vcmp.gt.f32.partialorder %v420_v51, 0.0  ;;  %v465_v61 = vmul.f32 0.2, %v420_v51 }
 0x179   :  { %v520_v25 = vpack.c.bf16 %v510_v60, %v510_v60  ;;  %v481_v29 = vsel %vm449_vm10, %v420_v51, %v465_v61 }
 0x17a   :  { %v512_v2 = vsel %vm368_vm11, %v481_v29, -inf }
 0x17b   :  { %525 = vst.msk [vmem:[%s845_s7 + $0x8] sm:$0xf] %vm522_vm14, %v520_v25  ;;  %v513_v6 = vmax.f32 %v511_v1, %v512_v2 }
 0x17c   :  { %v422_v10 = vpop.f32.mrf.mxu2 }
 0x17d   :  { %v515_v12 = vmax.f32 %v513_v6, %v514_v8  ;;  %v423_v13 = vadd.f32 %v786_v56, %v422_v10 }
 0x17f   :  { %v517_v16 = vmax.f32 %v515_v12, %v516_v38  ;;  %vm450_vm1 = vcmp.gt.f32.partialorder %v423_v13, 0.0  ;;  %v466_v17 = vmul.f32 0.2, %v423_v13 }
 0x181   :  { %v521_v50 = vpack.c.bf16 %v517_v16, %v517_v16  ;;  %v482_v57 = vsel %vm450_vm1, %v423_v13, %v466_v17 }
 0x182   :  { %v493_v58 = vsel %vm368_vm11, %v482_v57, -inf }
 0x183   :  { %526 = vst.msk [vmem:[%s845_s7 + $0xc] sm:$0xf] %vm522_vm14, %v521_v50  ;;  %v494_v22 = vmax.f32 %v492_v49, %v493_v58 }
 0x184   :  { %v424_v24 = vpop.f32.mrf.mxu2 }
 0x185   :  { %v496_v28 = vmax.f32 %v494_v22, %v495_v23  ;;  %v425_v19 = vadd.f32 %v786_v56, %v424_v24  ;;  %v502_v56 = vsel %vm368_vm11, %v487_v35, -inf }
 0x187   :  { %v518_v31 = vpack.c.bf16 %v496_v28, %v496_v28  ;;  %vm451_vm5 = vcmp.gt.f32.partialorder %v425_v19, 0.0  ;;  %v467_v32 = vmul.f32 0.2, %v425_v19 }
 0x189   :  { %523 = vst.msk [vmem:[%s845_s7] sm:$0xf] %vm522_vm14, %v518_v31  ;;  %v483_v37 = vsel %vm451_vm5, %v425_v19, %v467_v32 }
 0x18a   :  { %v500_v39 = vsel %vm368_vm11, %v483_v37, -inf }
 0x18b   :  { %v501_v40 = vmax.f32 %v499_v36, %v500_v39 }
 0x18d   :  { %v503_v41 = vmax.f32 %v501_v40, %v502_v56 }
 0x18f   :  { %v519_v42 = vpack.c.bf16 %v503_v41, %v503_v41 }
 0x191   :  { %524 = vst.msk [vmem:[%s845_s7 + $0x4] sm:$0xf] %vm522_vm14, %v519_v42 }

// kernel: _lambda_.10
= control target key start
LH: loop header
LB: loop body
LE: loop exit
PB: predicated region body
PF: predicated region fallthrough
CT: control target
= control target key end

     0   :  { %vm77_vm0 = vcmask 523264   ;;  %s943_s3 = inlined_call_operand.vmem [shape: bf16[64,64], index: 3, kind: input, shape index: {}]   ;;  %s944_s2 = inlined_call_operand.vmem [shape: bf16[64,64], index: 2, kind: input, shape index: {}]   ;;  %s945_s4 = inlined_call_operand.vmem [shape: f32[1,64], index: 4, kind: input, shape index: {}, may-alias: {4,6}]   ;;  %s946_s1 = inlined_call_operand.vmem [shape: bf16[32,64], index: 1, kind: input, shape index: {}]   ;;  %s947_s0 = inlined_call_operand.vmem [shape: bf16[4,32,64], index: 0, kind: input, shape index: {}]   ;;  %s948_s5 = inlined_call_operand.vmem [shape: bf16[64,64], index: 5, kind: input, shape index: {}]   ;;  %s949_s6 = inlined_call_operand.vmem [shape: f32[1,64], index: 6, kind: input, shape index: {}, may-alias: {4,6}]   ;;  %s950_s7 = inlined_call_operand.vmem [shape: bf16[32,64], index: 7, kind: output, shape index: {}]  }
   0x1   :  { %v693_v0 = vld [vmem:[%s943_s3 + $0x18] sm:$0xff]  ;;  %v692_v2 = vld [vmem:[%s943_s3 + $0x10] sm:$0xff]  ;;  %v691_v4 = vld [vmem:[%s943_s3 + $0x8] sm:$0xff] }
   0x2   :  { %v705_v1 = vld [vmem:[%s944_s2 + $0x18] sm:$0xff]  ;;  %88 = vmatpush.bf16.msra.mxu0 %v693_v0  ;;  %710 = vmatpush.bf16.msra.mxu3 %v693_v0  ;;  %v704_v3 = vld [vmem:[%s944_s2 + $0x10] sm:$0xff]  ;;  %v703_v5 = vld [vmem:[%s944_s2 + $0x8] sm:$0xff] }
   0x3   :  { %219 = vmatpush.bf16.msra.mxu1 %v705_v1  ;;  %v690_v6 = vld [vmem:[%s943_s3] sm:$0xff]  ;;  %v689_v9 = vld [vmem:[%s946_s1 + $0x8] sm:$0xff]  ;;  %v700_v13 = vld [vmem:[%s947_s0 + $0x30] sm:$0xff] }
   0x4   :  { %v702_v7 = vld [vmem:[%s944_s2] sm:$0xff]  ;;  %v699_v11 = vld [vmem:[%s947_s0 + $0x28] sm:$0xff]  ;;  %v696_v14 = vld [vmem:[%s947_s0 + $0x10] sm:$0xff] }
   0x5   :  { %v688_v8 = vld [vmem:[%s946_s1] sm:$0xff]  ;;  %v695_v12 = vld [vmem:[%s947_s0 + $0x8] sm:$0xff]  ;;  %v701_v15 = vld [vmem:[%s947_s0 + $0x38] sm:$0xff] }
   0x6   :  { %89 = vmatpush.bf16.msra.mxu0 %v692_v2  ;;  %711 = vmatpush.bf16.msra.mxu3 %v692_v2  ;;  %v694_v10 = vld [vmem:[%s947_s0] sm:$0xff]  ;;  %v697_v16 = vld [vmem:[%s947_s0 + $0x18] sm:$0xff]  ;;  %v708_v19 = vld [vmem:[%s948_s5 + $0x10] sm:$0xff] }
   0x7   :  { %220 = vmatpush.bf16.msra.mxu1 %v704_v3  ;;  %v698_v17 = vld [vmem:[%s947_s0 + $0x20] sm:$0xff]  ;;  %v709_v18 = vld [vmem:[%s948_s5 + $0x18] sm:$0xff]  ;;  %v707_v20 = vld [vmem:[%s948_s5 + $0x8] sm:$0xff] }
   0x8   :  { %718 = vmatpush.bf16.msra.mxu2 %v709_v18  ;;  %v706_v21 = vld [vmem:[%s948_s5] sm:$0xff] }
   0x9   :  { %v722_v22 = vld [vmem:[%s945_s4] ss:$0 sm:$0xff] }
   0xa   :  { %90 = vmatpush.bf16.msra.mxu0 %v691_v4  ;;  %712 = vmatpush.bf16.msra.mxu3 %v691_v4 }
   0xb   :  { %221 = vmatpush.bf16.msra.mxu1 %v703_v5 }
   0xc   :  { %719 = vmatpush.bf16.msra.mxu2 %v708_v19 }
   0xe   :  { %91 = vmatpush.bf16.msra.mxu0 %v690_v6  ;;  %713 = vmatpush.bf16.msra.mxu3 %v690_v6 }
   0xf   :  { %222 = vmatpush.bf16.msra.mxu1 %v702_v7 }
  0x10   :  { %720 = vmatpush.bf16.msra.mxu2 %v707_v20 }
  0x11   :  { %606 = vmatmul.msk.bf16.vlgmr.msra.gmra.mxu0 %vm77_vm0, %v688_v8  ;;  %607 = vmatmul.msk.bf16.vlgmr.msra.gmra.mxu3 %vm77_vm0, %v689_v9 }
  0x12   :  { %714 = vmatpush.bf16.msrb.mxu3 %v705_v1  ;;  %656 = vmatmul.msk.bf16.vlgmr.msra.gmra.mxu1 %vm77_vm0, %v694_v10 }
  0x13   :  { %448 = vmatpush.bf16.msrb.mxu0 %v709_v18 }
  0x14   :  { %721 = vmatpush.bf16.msra.mxu2 %v706_v21 }
  0x16   :  { %715 = vmatpush.bf16.msrb.mxu3 %v704_v3 }
  0x17   :  { %449 = vmatpush.bf16.msrb.mxu0 %v708_v19 }
  0x1a   :  { %716 = vmatpush.bf16.msrb.mxu3 %v703_v5 }
  0x1b   :  { %450 = vmatpush.bf16.msrb.mxu0 %v707_v20 }
  0x1e   :  { %717 = vmatpush.bf16.msrb.mxu3 %v702_v7 }
  0x1f   :  { %451 = vmatpush.bf16.msrb.mxu0 %v706_v21 }
  0x21   :  { %661 = vmatmul.msk.bf16.vlgmr.msrb.gmra.mxu3 %vm77_vm0, %v699_v11 }
  0x22   :  { %657 = vmatmul.msk.bf16.gmra.mxu1 %vm77_vm0, %v695_v12 }
  0x31   :  { %662 = vmatmul.msk.bf16.gmra.mxu3 %vm77_vm0, %v700_v13 }
  0x32   :  { %658 = vmatmul.msk.bf16.gmra.mxu1 %vm77_vm0, %v696_v14 }
  0x41   :  { %663 = vmatmul.msk.bf16.gmra.mxu3 %vm77_vm0, %v701_v15 }
  0x42   :  { %659 = vmatmul.msk.bf16.gmra.mxu1 %vm77_vm0, %v697_v16 }
  0x52   :  { %660 = vmatmul.msk.bf16.gmra.mxu1 %vm77_vm0, %v698_v17 }
  0x8e   :  { %v93_v23 = vpop.f32.mrf.mxu0 }
  0x8f   :  { %v843_v24 = vadd.f32 %v722_v22, %v93_v23  ;;  %v224_v25 = vpop.f32.mrf.mxu1 }
  0x91   :  { %v264_v26 = vadd.f32 %v224_v25, %v843_v24 }
  0x93   :  { %v296_v28 = vmul.f32 0.2, %v264_v26  ;;  %vm280_vm1 = vcmp.gt.f32.partialorder %v264_v26, 0.0 }
  0x94   :  { %v98_v27 = vpop.f32.mrf.mxu3 }
  0x95   :  { %v312_v32 = vsel %vm280_vm1, %v264_v26, %v296_v28  ;;  %v849_v37 = vadd.f32 %v722_v22, %v98_v27 }
  0x96   :  { %v95_v29 = vpop.f32.mrf.mxu0  ;;  %v328_v35 = vpack.c.bf16 %v312_v32, %v312_v32 }
  0x97   :  { %v846_v30 = vadd.f32 %v722_v22, %v95_v29  ;;  %v226_v31 = vpop.f32.mrf.mxu1 }
  0x98   :  { %v372_v41 = vunpack.c.l.b16 %v328_v35 }
  0x99   :  { %v265_v33 = vadd.f32 %v226_v31, %v846_v30 }
  0x9b   :  { %vm281_vm2 = vcmp.gt.f32.partialorder %v265_v33, 0.0  ;;  %v297_v34 = vmul.f32 0.2, %v265_v33 }
  0x9c   :  { %v100_v36 = vpop.f32.mrf.mxu3 }
  0x9d   :  { %v313_v38 = vsel %vm281_vm2, %v265_v33, %v297_v34  ;;  %v852_v45 = vadd.f32 %v722_v22, %v100_v36 }
  0x9e   :  { %v329_v39 = vpack.c.bf16 %v313_v38, %v313_v38 }
  0x9f   :  { %v229_v40 = vpop.f32.mrf.mxu1 }
  0xa0   :  { %v373_v42 = vunpack.c.l.b16 %v329_v39  ;;  %v266_v43 = vadd.f32 %v229_v40, %v849_v37 }
  0xa2   :  { %v388_v44 = vpack.c.b16 %v373_v42, %v372_v41  ;;  %v298_v47 = vmul.f32 0.2, %v266_v43  ;;  %vm282_vm3 = vcmp.gt.f32.partialorder %v266_v43, 0.0 }
  0xa4   :  { %v249_v46 = vpop.f32.mrf.mxu3  ;;  %680 = vmatmul.msk.bf16.vlgmr.msrb.gmra.mxu0 %vm77_vm0, %v388_v44  ;;  %v314_v52 = vsel %vm282_vm3, %v266_v43, %v298_v47 }
  0xa5   :  { %v274_v48 = vadd.f32 %v249_v46, %v849_v37  ;;  %v330_v55 = vpack.c.bf16 %v314_v52, %v314_v52 }
  0xa7   :  { %v306_v49 = vmul.f32 0.2, %v274_v48  ;;  %v231_v50 = vpop.f32.mrf.mxu1  ;;  %vm290_vm4 = vcmp.gt.f32.partialorder %v274_v48, 0.0  ;;  %v374_v0 = vunpack.c.l.b16 %v330_v55 }
  0xa8   :  { %v267_v51 = vadd.f32 %v231_v50, %v852_v45 }
  0xa9   :  { %v322_v54 = vsel %vm290_vm4, %v274_v48, %v306_v49 }
  0xaa   :  { %vm283_vm5 = vcmp.gt.f32.partialorder %v267_v51, 0.0  ;;  %v299_v53 = vmul.f32 0.2, %v267_v51  ;;  %v338_v60 = vpack.c.bf16 %v322_v54, %v322_v54 }
  0xac   :  { %v315_v56 = vsel %vm283_vm5, %v267_v51, %v299_v53  ;;  %v251_v57 = vpop.f32.mrf.mxu3  ;;  %v859_v3 = vunpack.c.l.b16 %v338_v60 }
  0xad   :  { %v331_v58 = vpack.c.bf16 %v315_v56, %v315_v56  ;;  %v275_v59 = vadd.f32 %v251_v57, %v852_v45 }
  0xaf   :  { %v375_v61 = vunpack.c.l.b16 %v331_v58  ;;  %vm291_vm6 = vcmp.gt.f32.partialorder %v275_v59, 0.0  ;;  %v307_v62 = vmul.f32 0.2, %v275_v59  ;;  %v234_v63 = vpop.f32.mrf.mxu1 }
  0xb0   :  { %v268_v2 = vadd.f32 %v234_v63, %v843_v24 }
  0xb1   :  { %v323_v1 = vsel %vm291_vm6, %v275_v59, %v307_v62  ;;  %v389_v5 = vpack.c.b16 %v375_v61, %v374_v0 }
  0xb2   :  { %v339_v4 = vpack.c.bf16 %v323_v1, %v323_v1  ;;  %v300_v8 = vmul.f32 0.2, %v268_v2  ;;  %vm284_vm7 = vcmp.gt.f32.partialorder %v268_v2, 0.0 }
  0xb4   :  { %v861_v6 = vunpack.c.l.b16 %v339_v4  ;;  %v254_v7 = vpop.f32.mrf.mxu3  ;;  %681 = vmatmul.msk.bf16.gmra.mxu0 %vm77_vm0, %v389_v5  ;;  %v316_v14 = vsel %vm284_vm7, %v268_v2, %v300_v8 }
  0xb5   :  { %v276_v9 = vadd.f32 %v254_v7, %v843_v24  ;;  %v332_v17 = vpack.c.bf16 %v316_v14, %v316_v14 }
  0xb6   :  { %v393_v10 = vpack.c.b16 %v861_v6, %v859_v3  ;;  %v891_v3 = vld [vmem:[%s949_s6] ss:$0 sm:$0xff] }
  0xb7   :  { %v308_v11 = vmul.f32 0.2, %v276_v9  ;;  %v236_v12 = vpop.f32.mrf.mxu1  ;;  %vm292_vm8 = vcmp.gt.f32.partialorder %v276_v9, 0.0  ;;  %v376_v27 = vunpack.c.l.b16 %v332_v17 }
  0xb8   :  { %v269_v13 = vadd.f32 %v236_v12, %v846_v30 }
  0xb9   :  { %v324_v16 = vsel %vm292_vm8, %v276_v9, %v308_v11 }
  0xba   :  { %vm285_vm9 = vcmp.gt.f32.partialorder %v269_v13, 0.0  ;;  %v301_v15 = vmul.f32 0.2, %v269_v13  ;;  %v340_v22 = vpack.c.bf16 %v324_v16, %v324_v16 }
  0xbc   :  { %v317_v18 = vsel %vm285_vm9, %v269_v13, %v301_v15  ;;  %v256_v19 = vpop.f32.mrf.mxu3  ;;  %v384_v31 = vunpack.c.l.b16 %v340_v22  ;;  %vm573_vm9 = vcmask 519168  }
  0xbd   :  { %v333_v20 = vpack.c.bf16 %v317_v18, %v317_v18  ;;  %v277_v21 = vadd.f32 %v256_v19, %v846_v30 }
  0xbf   :  { %v377_v23 = vunpack.c.l.b16 %v333_v20  ;;  %vm293_vm10 = vcmp.gt.f32.partialorder %v277_v21, 0.0  ;;  %v309_v25 = vmul.f32 0.2, %v277_v21  ;;  %v239_v26 = vpop.f32.mrf.mxu1 }
  0xc0   :  { %v270_v28 = vadd.f32 %v239_v26, %v849_v37 }
  0xc1   :  { %v325_v29 = vsel %vm293_vm10, %v277_v21, %v309_v25  ;;  %v390_v33 = vpack.c.b16 %v377_v23, %v376_v27 }
  0xc2   :  { %v341_v32 = vpack.c.bf16 %v325_v29, %v325_v29  ;;  %v302_v35 = vmul.f32 0.2, %v270_v28  ;;  %vm286_vm11 = vcmp.gt.f32.partialorder %v270_v28, 0.0 }
  0xc4   :  { %v385_v34 = vunpack.c.l.b16 %v341_v32  ;;  %v259_v36 = vpop.f32.mrf.mxu3  ;;  %682 = vmatmul.msk.bf16.gmra.mxu0 %vm77_vm0, %v390_v33  ;;  %v318_v41 = vsel %vm286_vm11, %v270_v28, %v302_v35 }
  0xc5   :  { %v278_v38 = vadd.f32 %v259_v36, %v849_v37  ;;  %v334_v46 = vpack.c.bf16 %v318_v41, %v318_v41 }
  0xc6   :  { %v394_v39 = vpack.c.b16 %v385_v34, %v384_v31 }
  0xc7   :  { %v241_v40 = vpop.f32.mrf.mxu1  ;;  %v310_v43 = vmul.f32 0.2, %v278_v38  ;;  %vm294_vm12 = vcmp.gt.f32.partialorder %v278_v38, 0.0  ;;  %v378_v52 = vunpack.c.l.b16 %v334_v46 }
  0xc8   :  { %v271_v42 = vadd.f32 %v241_v40, %v852_v45 }
  0xc9   :  { %v326_v49 = vsel %vm294_vm12, %v278_v38, %v310_v43 }
  0xca   :  { %vm287_vm13 = vcmp.gt.f32.partialorder %v271_v42, 0.0  ;;  %v303_v44 = vmul.f32 0.2, %v271_v42  ;;  %v342_v55 = vpack.c.bf16 %v326_v49, %v326_v49 }
  0xcc   :  { %v319_v47 = vsel %vm287_vm13, %v271_v42, %v303_v44  ;;  %v261_v48 = vpop.f32.mrf.mxu3  ;;  %v386_v60 = vunpack.c.l.b16 %v342_v55 }
  0xcd   :  { %v335_v50 = vpack.c.bf16 %v319_v47, %v319_v47  ;;  %v279_v51 = vadd.f32 %v261_v48, %v852_v45 }
  0xcf   :  { %v379_v53 = vunpack.c.l.b16 %v335_v50  ;;  %vm295_vm14 = vcmp.gt.f32.partialorder %v279_v51, 0.0  ;;  %v311_v37 = vmul.f32 0.2, %v279_v51  ;;  %v244_v54 = vpop.f32.mrf.mxu1 }
  0xd0   :  { %v272_v56 = vadd.f32 %v244_v54, %v843_v24 }
  0xd1   :  { %v327_v57 = vsel %vm295_vm14, %v279_v51, %v311_v37  ;;  %v391_v58 = vpack.c.b16 %v379_v53, %v378_v52 }
  0xd2   :  { %v343_v59 = vpack.c.bf16 %v327_v57, %v327_v57  ;;  %v304_v62 = vmul.f32 0.2, %v272_v56  ;;  %vm288_vm15 = vcmp.gt.f32.partialorder %v272_v56, 0.0 }
  0xd3   :  { %683 = vmatmul.msk.bf16.vlgmr.msra.gmra.mxu2 %vm77_vm0, %v391_v58 }
  0xd4   :  { %v387_v61 = vunpack.c.l.b16 %v343_v59  ;;  %v320_v45 = vsel %vm288_vm15, %v272_v56, %v304_v62 }
  0xd5   :  { %v336_v4 = vpack.c.bf16 %v320_v45, %v320_v45 }
  0xd6   :  { %v395_v63 = vpack.c.b16 %v387_v61, %v386_v60 }
  0xd7   :  { %v246_v0 = vpop.f32.mrf.mxu1  ;;  %v380_v24 = vunpack.c.l.b16 %v336_v4 }
  0xd8   :  { %v273_v1 = vadd.f32 %v246_v0, %v846_v30 }
  0xda   :  { %vm289_vm1 = vcmp.gt.f32.partialorder %v273_v1, 0.0  ;;  %v305_v2 = vmul.f32 0.2, %v273_v1 }
  0xdc   :  { %v321_v5 = vsel %vm289_vm1, %v273_v1, %v305_v2 }
  0xdd   :  { %v337_v7 = vpack.c.bf16 %v321_v5, %v321_v5 }
  0xdf   :  { %v381_v8 = vunpack.c.l.b16 %v337_v7 }
  0xe1   :  { %v392_v9 = vpack.c.b16 %v381_v8, %v380_v24 }
  0xe3   :  { %684 = vmatmul.msk.bf16.gmra.mxu2 %vm77_vm0, %v392_v9 }
  0xf3   :  { %685 = vmatmul.msk.bf16.gmra.mxu2 %vm77_vm0, %v393_v10 }
 0x103   :  { %686 = vmatmul.msk.bf16.gmra.mxu2 %vm77_vm0, %v394_v39 }
 0x113   :  { %687 = vmatmul.msk.bf16.gmra.mxu2 %vm77_vm0, %v395_v63 }
 0x121   :  { %v453_v30 = vpop.f32.mrf.mxu0 }
 0x122   :  { %v454_v10 = vadd.f32 %v891_v3, %v453_v30 }
 0x124   :  { %v509_v23 = vmul.f32 0.2, %v454_v10  ;;  %vm493_vm3 = vcmp.gt.f32.partialorder %v454_v10, 0.0 }
 0x126   :  { %v525_v29 = vsel %vm493_vm3, %v454_v10, %v509_v23 }
 0x127   :  { %v541_v36 = vsel %vm77_vm0, %v525_v29, -inf }
 0x129   :  { %v455_v12 = vpop.f32.mrf.mxu0 }
 0x12a   :  { %v456_v31 = vadd.f32 %v891_v3, %v455_v12 }
 0x12c   :  { %vm494_vm5 = vcmp.gt.f32.partialorder %v456_v31, 0.0  ;;  %v510_v40 = vmul.f32 0.2, %v456_v31 }
 0x12e   :  { %v526_v50 = vsel %vm494_vm5, %v456_v31, %v510_v40 }
 0x12f   :  { %v548_v57 = vsel %vm77_vm0, %v526_v50, -inf }
 0x131   :  { %v458_v14 = vpop.f32.mrf.mxu0 }
 0x132   :  { %v459_v51 = vadd.f32 %v891_v3, %v458_v14 }
 0x134   :  { %v511_v61 = vmul.f32 0.2, %v459_v51  ;;  %vm495_vm11 = vcmp.gt.f32.partialorder %v459_v51, 0.0 }
 0x136   :  { %v527_v7 = vsel %vm495_vm11, %v459_v51, %v511_v61 }
 0x139   :  { %v886_v16 = vpop.f32.mrf.mxu0 }
 0x13a   :  { %v461_v24 = vadd.f32 %v891_v3, %v886_v16 }
 0x13c   :  { %vm496_vm1 = vcmp.gt.f32.partialorder %v461_v24, 0.0 }
 0x141   :  { %v463_v18 = vpop.f32.mrf.mxu0 }
 0x142   :  { %v464_v6 = vadd.f32 %v891_v3, %v463_v18 }
 0x144   :  { %v513_v22 = vmul.f32 0.2, %v464_v6  ;;  %vm497_vm2 = vcmp.gt.f32.partialorder %v464_v6, 0.0 }
 0x146   :  { %v529_v27 = vsel %vm497_vm2, %v464_v6, %v513_v22 }
 0x147   :  { %v542_v34 = vsel %vm77_vm0, %v529_v27, -inf }
 0x148   :  { %v543_v42 = vmax.f32 %v541_v36, %v542_v34 }
 0x149   :  { %v465_v25 = vpop.f32.mrf.mxu0 }
 0x14a   :  { %v466_v28 = vadd.f32 %v891_v3, %v465_v25 }
 0x14c   :  { %v514_v38 = vmul.f32 0.2, %v466_v28  ;;  %vm498_vm6 = vcmp.gt.f32.partialorder %v466_v28, 0.0 }
 0x14e   :  { %v530_v46 = vsel %vm498_vm6, %v466_v28, %v514_v38 }
 0x14f   :  { %v549_v55 = vsel %vm77_vm0, %v530_v46, -inf }
 0x150   :  { %v550_v0 = vmax.f32 %v548_v57, %v549_v55 }
 0x156   :  { %v468_v11 = vpop.f32.mrf.mxu2 }
 0x157   :  { %v469_v47 = vadd.f32 %v891_v3, %v468_v11 }
 0x159   :  { %v515_v58 = vmul.f32 0.2, %v469_v47  ;;  %vm499_vm10 = vcmp.gt.f32.partialorder %v469_v47, 0.0 }
 0x15b   :  { %v531_v1 = vsel %vm499_vm10, %v469_v47, %v515_v58 }
 0x15c   :  { %v556_v12 = vsel %vm77_vm0, %v531_v1, -inf }
 0x15e   :  { %v884_v13 = vpop.f32.mrf.mxu2 }
 0x15f   :  { %v471_v2 = vadd.f32 %v891_v3, %v884_v13 }
 0x161   :  { %vm500_vm14 = vcmp.gt.f32.partialorder %v471_v2, 0.0 }
 0x166   :  { %v473_v15 = vpop.f32.mrf.mxu2 }
 0x167   :  { %v474_v20 = vadd.f32 %v891_v3, %v473_v15  ;;  %v555_v15 = vsel %vm77_vm0, %v527_v7, -inf }
 0x168   :  { %v557_v10 = vmax.f32 %v555_v15, %v556_v12 }
 0x169   :  { %v517_v26 = vmul.f32 0.2, %v474_v20  ;;  %vm501_vm4 = vcmp.gt.f32.partialorder %v474_v20, 0.0 }
 0x16b   :  { %v533_v32 = vsel %vm501_vm4, %v474_v20, %v517_v26 }
 0x16c   :  { %v544_v41 = vsel %vm77_vm0, %v533_v32, -inf }
 0x16d   :  { %v545_v48 = vmax.f32 %v543_v42, %v544_v41 }
 0x16e   :  { %v475_v17 = vpop.f32.mrf.mxu2 }
 0x16f   :  { %v476_v33 = vadd.f32 %v891_v3, %v475_v17  ;;  %v516_v17 = vmul.f32 0.2, %v471_v2 }
 0x171   :  { %v518_v43 = vmul.f32 0.2, %v476_v33  ;;  %vm502_vm8 = vcmp.gt.f32.partialorder %v476_v33, 0.0 }
 0x173   :  { %v534_v37 = vsel %vm502_vm8, %v476_v33, %v518_v43 }
 0x174   :  { %v551_v62 = vsel %vm77_vm0, %v534_v37, -inf }
 0x175   :  { %v552_v4 = vmax.f32 %v550_v0, %v551_v62 }
 0x176   :  { %v478_v19 = vpop.f32.mrf.mxu2 }
 0x177   :  { %v479_v52 = vadd.f32 %v891_v3, %v478_v19  ;;  %v512_v19 = vmul.f32 0.2, %v461_v24 }
 0x179   :  { %v519_v63 = vmul.f32 0.2, %v479_v52  ;;  %vm503_vm13 = vcmp.gt.f32.partialorder %v479_v52, 0.0  ;;  %v528_v26 = vsel %vm496_vm1, %v461_v24, %v512_v19 }
 0x17a   :  { %v562_v34 = vsel %vm77_vm0, %v528_v26, -inf }
 0x17b   :  { %v535_v30 = vsel %vm503_vm13, %v479_v52, %v519_v63 }
 0x17c   :  { %v558_v6 = vsel %vm77_vm0, %v535_v30, -inf }
 0x17d   :  { %v559_v22 = vmax.f32 %v557_v10, %v558_v6 }
 0x17e   :  { %v480_v21 = vpop.f32.mrf.mxu2 }
 0x17f   :  { %v481_v8 = vadd.f32 %v891_v3, %v480_v21  ;;  %v532_v21 = vsel %vm500_vm14, %v471_v2, %v516_v17 }
 0x180   :  { %v563_v29 = vsel %vm77_vm0, %v532_v21, -inf }
 0x181   :  { %v520_v16 = vmul.f32 0.2, %v481_v8  ;;  %vm504_vm2 = vcmp.gt.f32.partialorder %v481_v8, 0.0  ;;  %v564_v36 = vmax.f32 %v562_v34, %v563_v29 }
 0x183   :  { %v536_v27 = vsel %vm504_vm2, %v481_v8, %v520_v16 }
 0x186   :  { %v483_v35 = vpop.f32.mrf.mxu2 }
 0x187   :  { %v484_v39 = vadd.f32 %v891_v3, %v483_v35  ;;  %v565_v35 = vsel %vm77_vm0, %v536_v27, -inf }
 0x189   :  { %vm505_vm7 = vcmp.gt.f32.partialorder %v484_v39, 0.0  ;;  %v521_v44 = vmul.f32 0.2, %v484_v39 }
 0x18b   :  { %v537_v49 = vsel %vm505_vm7, %v484_v39, %v521_v44  ;;  %v566_v39 = vmax.f32 %v564_v36, %v565_v35 }
 0x18c   :  { %v546_v53 = vsel %vm77_vm0, %v537_v49, -inf }
 0x18d   :  { %v547_v54 = vmax.f32 %v545_v48, %v546_v53 }
 0x18e   :  { %v485_v56 = vpop.f32.mrf.mxu2 }
 0x18f   :  { %v569_v59 = vpack.c.bf16 %v547_v54, %v547_v54  ;;  %v486_v60 = vadd.f32 %v891_v3, %v485_v56 }
 0x191   :  { %574 = vst.msk [vmem:[%s950_s7] sm:$0xf] %vm573_vm9, %v569_v59  ;;  %vm506_vm12 = vcmp.gt.f32.partialorder %v486_v60, 0.0  ;;  %v522_v45 = vmul.f32 0.2, %v486_v60 }
 0x193   :  { %v538_v5 = vsel %vm506_vm12, %v486_v60, %v522_v45 }
 0x194   :  { %v553_v9 = vsel %vm77_vm0, %v538_v5, -inf }
 0x195   :  { %v554_v11 = vmax.f32 %v552_v4, %v553_v9 }
 0x196   :  { %v488_v14 = vpop.f32.mrf.mxu2 }
 0x197   :  { %v570_v18 = vpack.c.bf16 %v554_v11, %v554_v11  ;;  %v489_v13 = vadd.f32 %v891_v3, %v488_v14 }
 0x199   :  { %575 = vst.msk [vmem:[%s950_s7 + $0x4] sm:$0xf] %vm573_vm9, %v570_v18  ;;  %vm507_vm15 = vcmp.gt.f32.partialorder %v489_v13, 0.0  ;;  %v523_v20 = vmul.f32 0.2, %v489_v13 }
 0x19b   :  { %v539_v23 = vsel %vm507_vm15, %v489_v13, %v523_v20 }
 0x19c   :  { %v560_v25 = vsel %vm77_vm0, %v539_v23, -inf }
 0x19d   :  { %v561_v28 = vmax.f32 %v559_v22, %v560_v25 }
 0x19e   :  { %v490_v31 = vpop.f32.mrf.mxu2 }
 0x19f   :  { %v571_v32 = vpack.c.bf16 %v561_v28, %v561_v28  ;;  %v491_v33 = vadd.f32 %v891_v3, %v490_v31 }
 0x1a1   :  { %576 = vst.msk [vmem:[%s950_s7 + $0x8] sm:$0xf] %vm573_vm9, %v571_v32  ;;  %vm508_vm3 = vcmp.gt.f32.partialorder %v491_v33, 0.0  ;;  %v524_v38 = vmul.f32 0.2, %v491_v33 }
 0x1a3   :  { %v540_v40 = vsel %vm508_vm3, %v491_v33, %v524_v38 }
 0x1a4   :  { %v567_v41 = vsel %vm77_vm0, %v540_v40, -inf }
 0x1a5   :  { %v568_v42 = vmax.f32 %v566_v39, %v567_v41 }
 0x1a7   :  { %v572_v43 = vpack.c.bf16 %v568_v42, %v568_v42 }
 0x1a9   :  { %577 = vst.msk [vmem:[%s950_s7 + $0xc] sm:$0xf] %vm573_vm9, %v572_v43 }

// kernel: _lambda_.12
= control target key start
LH: loop header
LB: loop body
LE: loop exit
PB: predicated region body
PF: predicated region fallthrough
CT: control target
= control target key end

     0   :  { %s2341_s24 = smov 0   ;;  %s2343_s25 = smov 0   ;;  %s3070_s0 = inlined_call_operand.vmem [shape: bf16[2,16,64], index: 0, kind: input, shape index: {}]   ;;  %s3071_s1 = inlined_call_operand.vmem [shape: bf16[2,16,64], index: 1, kind: input, shape index: {}]   ;;  %s3072_s2 = inlined_call_operand.vmem [shape: bf16[2,16,64], index: 2, kind: input, shape index: {}]   ;;  %s3073_s3 = inlined_call_operand.vmem [shape: bf16[64,1024], index: 3, kind: input, shape index: {}]   ;;  %s3074_s4 = inlined_call_operand.vmem [shape: bf16[64,1024], index: 4, kind: input, shape index: {}]   ;;  %s3075_s5 = inlined_call_operand.vmem [shape: bf16[64,1024], index: 5, kind: input, shape index: {}]   ;;  %s3076_s6 = inlined_call_operand.vmem [shape: f32[1,1024], index: 6, kind: input, shape index: {}]   ;;  %s3077_s7 = inlined_call_operand.vmem [shape: f32[2,1,1,1024], index: 7, kind: output, shape index: {}]  }
   0x1   :  { %s2345_s26 = smov 0  }
   0x2 LB: > { %s36_s27 = sadd.s32 1, %s2295_s25  ;;  %p1721_p0 = scmp.ge.s32.totalorder %s2299_s26, 1  ;;  %s2299_s26 = sphi %s2345_s26, %s17_s26   ;;  %s2295_s25 = sphi %s2343_s25, %s3079_s25   ;;  %s2291_s24 = sphi %s2341_s24, %s3078_s24  }
   0x3   : > { %p38_p1 = scmp.ge.s32.totalorder %s36_s27, 2  ;;  %p311_p2 = scmp.lt.s32.totalorder %s2299_s26, 3 }
   0x5   : > { %s3081_s27 = smov (%p38_p1, %s36_s27), 0  ;;  %p312_p3 = pnand %p1721_p0, %p311_p2 }
   0x6   : > { %p373_p4 = scmp.lt.s32.totalorder (!%p312_p3), %s2291_s24, 1 }
   0x7   : > { %315 = sbr.rel (%p312_p3) target bundleno = 282 (0x11a), region = 48 }
   0xc   : > { %v1831_v0 = vld [vmem:[%s3074_s4 + $0xc0] sm:$0xf]  ;;  %v2212_v2 = vld [vmem:[%s3074_s4 + $0xc4] sm:$0xf]  ;;  %v1839_v5 = vld [vmem:[%s3074_s4 + $0xc8] sm:$0xf] }
   0xd   : > { %v2216_v1 = vld [vmem:[%s3074_s4 + $0xdc] sm:$0xf0]  ;;  %v1833_v4 = vld [vmem:[%s3074_s4 + $0xe0] sm:$0xf0]  ;;  %v2217_v6 = vld [vmem:[%s3074_s4 + $0xe4] sm:$0xf0] }
   0xe   : > { %v1832_v3 = vor.u32 %v2216_v1, %v1831_v0  ;;  %v1836_v7 = vor.u32 %v2212_v2, %v1833_v4  ;;  %v1840_v8 = vor.u32 %v2217_v6, %v1839_v5  ;;  %v2213_v9 = vld [vmem:[%s3074_s4 + $0xcc] sm:$0xf]  ;;  %v1799_v11 = vld [vmem:[%s3074_s4 + $0x80] sm:$0xf]  ;;  %v2204_v14 = vld [vmem:[%s3074_s4 + $0x84] sm:$0xf] }
   0xf   : > { %v1841_v10 = vld [vmem:[%s3074_s4 + $0xe8] sm:$0xf0]  ;;  %v2208_v13 = vld [vmem:[%s3074_s4 + $0x9c] sm:$0xf0]  ;;  %v1801_v15 = vld [vmem:[%s3074_s4 + $0xa0] sm:$0xf0] }
  0x10   : > { %657 = vmatpush.bf16.msra.mxu0 %v1832_v3  ;;  %v1844_v12 = vor.u32 %v2213_v9, %v1841_v10  ;;  %671 = vmatpush.bf16.msra.mxu1 %v1836_v7  ;;  %v1800_v16 = vor.u32 %v2208_v13, %v1799_v11  ;;  %v1804_v17 = vor.u32 %v2204_v14, %v1801_v15  ;;  %v1807_v18 = vld [vmem:[%s3074_s4 + $0x88] sm:$0xf]  ;;  %v2205_v20 = vld [vmem:[%s3074_s4 + $0x8c] sm:$0xf]  ;;  %v1767_v23 = vld [vmem:[%s3074_s4 + $0x40] sm:$0xf] }
  0x11   : > { %685 = vmatpush.bf16.msra.mxu2 %v1840_v8  ;;  %v2209_v19 = vld [vmem:[%s3074_s4 + $0xa4] sm:$0xf0]  ;;  %v1809_v22 = vld [vmem:[%s3074_s4 + $0xa8] sm:$0xf0]  ;;  %v2200_v24 = vld [vmem:[%s3074_s4 + $0x5c] sm:$0xf0] }
  0x12   : > { %699 = vmatpush.bf16.msra.mxu3 %v1844_v12  ;;  %v1808_v21 = vor.u32 %v2209_v19, %v1807_v18  ;;  %v1812_v25 = vor.u32 %v2205_v20, %v1809_v22  ;;  %v2196_v26 = vld [vmem:[%s3074_s4 + $0x44] sm:$0xf]  ;;  %v1775_v28 = vld [vmem:[%s3074_s4 + $0x48] sm:$0xf]  ;;  %v1768_v29 = vor.u32 %v2200_v24, %v1767_v23  ;;  %v2197_v31 = vld [vmem:[%s3074_s4 + $0x4c] sm:$0xf] }
  0x13   : > { %v1769_v27 = vld [vmem:[%s3074_s4 + $0x60] sm:$0xf0]  ;;  %v2201_v30 = vld [vmem:[%s3074_s4 + $0x64] sm:$0xf0]  ;;  %v1777_v32 = vld [vmem:[%s3074_s4 + $0x68] sm:$0xf0] }
  0x14   : > { %658 = vmatpush.bf16.msra.mxu0 %v1800_v16  ;;  %672 = vmatpush.bf16.msra.mxu1 %v1804_v17  ;;  %v1772_v33 = vor.u32 %v2196_v26, %v1769_v27  ;;  %v1776_v34 = vor.u32 %v2201_v30, %v1775_v28  ;;  %v1735_v35 = vld [vmem:[%s3074_s4] sm:$0xf]  ;;  %v2188_v37 = vld [vmem:[%s3074_s4 + $0x4] sm:$0xf]  ;;  %v1780_v38 = vor.u32 %v2197_v31, %v1777_v32  ;;  %v1743_v40 = vld [vmem:[%s3074_s4 + $0x8] sm:$0xf] }
  0x15   : > { %686 = vmatpush.bf16.msra.mxu2 %v1808_v21  ;;  %v2192_v36 = vld [vmem:[%s3074_s4 + $0x1c] sm:$0xf0]  ;;  %v1737_v39 = vld [vmem:[%s3074_s4 + $0x20] sm:$0xf0]  ;;  %v2193_v41 = vld [vmem:[%s3074_s4 + $0x24] sm:$0xf0] }
  0x16   : > { %700 = vmatpush.bf16.msra.mxu3 %v1812_v25  ;;  %v2189_v42 = vld [vmem:[%s3074_s4 + $0xc] sm:$0xf]  ;;  %v1736_v44 = vor.u32 %v2192_v36, %v1735_v35  ;;  %v1855_v45 = vld [vmem:[%s3074_s4 + $0xd8] sm:$0xf]  ;;  %v2215_v47 = vld [vmem:[%s3074_s4 + $0xdc] sm:$0xf]  ;;  %v1740_v48 = vor.u32 %v2188_v37, %v1737_v39  ;;  %v1744_v49 = vor.u32 %v2193_v41, %v1743_v40 }
  0x17   : > { %v1745_v43 = vld [vmem:[%s3074_s4 + $0x28] sm:$0xf0]  ;;  %v2219_v46 = vld [vmem:[%s3074_s4 + $0xf4] sm:$0xf0]  ;;  %s3083_s24 = smov (!%p373_p4, %s2291_s24), 1  ;;  %vm649_vm0 = vcmask 523264  }
  0x18   : > { %659 = vmatpush.bf16.msra.mxu0 %v1768_v29  ;;  %673 = vmatpush.bf16.msra.mxu1 %v1772_v33  ;;  %v1857_v50 = vld [vmem:[%s3074_s4 + $0xf8] sm:$0xf0]  ;;  %v1847_v51 = vld [vmem:[%s3074_s4 + $0xd0] sm:$0xf]  ;;  %v1748_v52 = vor.u32 %v2189_v42, %v1745_v43  ;;  %v1856_v53 = vor.u32 %v2219_v46, %v1855_v45  ;;  %v2214_v55 = vld [vmem:[%s3074_s4 + $0xd4] sm:$0xf] }
  0x19   : > { %687 = vmatpush.bf16.msra.mxu2 %v1776_v34  ;;  %v2218_v54 = vld [vmem:[%s3074_s4 + $0xec] sm:$0xf0]  ;;  %v1849_v56 = vld [vmem:[%s3074_s4 + $0xf0] sm:$0xf0]  ;;  %s2483_s9 = sshll.u32 %s3083_s24, 3  ;;  %v1860_v57 = vor.u32 %v2215_v47, %v1857_v50  ;;  %vm1579_vm9 = vcmask 1040384  }
  0x1a   : > { %701 = vmatpush.bf16.msra.mxu3 %v1780_v38  ;;  %v1823_v58 = vld [vmem:[%s3074_s4 + $0x98] sm:$0xf]  ;;  %s392_s16 = scalar_lea.vmem %s3071_s1, %s2483_s9  ;;  %v2207_v60 = vld [vmem:[%s3074_s4 + $0x9c] sm:$0xf]  ;;  %v1848_v63 = vor.u32 %v2218_v54, %v1847_v51  ;;  %v1852_v0 = vor.u32 %v2214_v55, %v1849_v56  ;;  %v1815_v2 = vld [vmem:[%s3074_s4 + $0x90] sm:$0xf]  ;;  %s380_s14 = scalar_lea.vmem %s3070_s0, %s2483_s9 }
  0x1b   : > { %v2211_v59 = vld [vmem:[%s3074_s4 + $0xb4] sm:$0xf0]  ;;  %v1825_v61 = vld [vmem:[%s3074_s4 + $0xb8] sm:$0xf0]  ;;  %v2501_v62 = vld [vmem:[%s392_s16] sm:$0xff]  ;;  %s404_s23 = scalar_lea.vmem %s3072_s2, %s2483_s9  ;;  %vm1581_vm11 = vcmask 1042434   ;;  %s414_s22 = scalar_lea.vmem %s3077_s7, %s2483_s9 }
  0x1c   : > { %660 = vmatpush.bf16.msra.mxu0 %v1736_v44  ;;  %674 = vmatpush.bf16.msra.mxu1 %v1740_v48  ;;  %v1824_v1 = vor.u32 %v2211_v59, %v1823_v58  ;;  %v2210_v3 = vld [vmem:[%s3074_s4 + $0xac] sm:$0xf0]  ;;  %v2206_v4 = vld [vmem:[%s3074_s4 + $0x94] sm:$0xf]  ;;  %v1828_v5 = vor.u32 %v2207_v60, %v1825_v61  ;;  %v1791_v7 = vld [vmem:[%s3074_s4 + $0x58] sm:$0xf] }
  0x1d   : > { %688 = vmatpush.bf16.msra.mxu2 %v1744_v49  ;;  %v1817_v6 = vld [vmem:[%s3074_s4 + $0xb0] sm:$0xf0]  ;;  %v2203_v8 = vld [vmem:[%s3074_s4 + $0x74] sm:$0xf0]  ;;  %v2199_v9 = vld [vmem:[%s3074_s4 + $0x5c] sm:$0xf]  ;;  %v1816_v11 = vor.u32 %v2210_v3, %v1815_v2 }
  0x1e   : > { %702 = vmatpush.bf16.msra.mxu3 %v1748_v52  ;;  %v1793_v10 = vld [vmem:[%s3074_s4 + $0x78] sm:$0xf0]  ;;  %v1783_v12 = vld [vmem:[%s3074_s4 + $0x50] sm:$0xf]  ;;  %v1820_v13 = vor.u32 %v2206_v4, %v1817_v6  ;;  %v1792_v14 = vor.u32 %v2203_v8, %v1791_v7  ;;  %v2198_v16 = vld [vmem:[%s3074_s4 + $0x54] sm:$0xf] }
  0x1f   : > { %1861 = vmatmul.msk.bf16.vlgmr.msra.gmra.mxu0 %vm649_vm0, %v2501_v62  ;;  %1862 = vmatmul.msk.bf16.vlgmr.msra.gmra.mxu1 %vm649_vm0, %v2501_v62  ;;  %v2202_v15 = vld [vmem:[%s3074_s4 + $0x6c] sm:$0xf0]  ;;  %v1785_v17 = vld [vmem:[%s3074_s4 + $0x70] sm:$0xf0]  ;;  %v1796_v18 = vor.u32 %v2199_v9, %v1793_v10  ;;  %v1759_v19 = vld [vmem:[%s3074_s4 + $0x18] sm:$0xf] }
  0x20   : > { %1863 = vmatmul.msk.bf16.vlgmr.msra.gmra.mxu2 %vm649_vm0, %v2501_v62  ;;  %713 = vmatpush.bf16.msrb.mxu0 %v1848_v63  ;;  %v2195_v20 = vld [vmem:[%s3074_s4 + $0x34] sm:$0xf0]  ;;  %v2191_v21 = vld [vmem:[%s3074_s4 + $0x1c] sm:$0xf]  ;;  %v1979_v23 = vld [vmem:[%s3073_s3 + $0xc8] sm:$0xf]  ;;  %v1784_v25 = vor.u32 %v2202_v15, %v1783_v12  ;;  %v1788_v29 = vor.u32 %v2198_v16, %v1785_v17 }
  0x21   : > { %741 = vmatpush.bf16.msrb.mxu2 %v1856_v53  ;;  %1864 = vmatmul.msk.bf16.vlgmr.msra.gmra.mxu3 %vm649_vm0, %v2501_v62  ;;  %v1761_v22 = vld [vmem:[%s3074_s4 + $0x38] sm:$0xf0]  ;;  %v2184_v24 = vld [vmem:[%s3073_s3 + $0xe4] sm:$0xf0]  ;;  %v1751_v26 = vld [vmem:[%s3074_s4 + $0x10] sm:$0xf]  ;;  %v1760_v30 = vor.u32 %v2195_v20, %v1759_v19 }
  0x22   : > { %755 = vmatpush.bf16.msrb.mxu3 %v1860_v57  ;;  %727 = vmatpush.bf16.msrb.mxu1 %v1852_v0  ;;  %v2180_v27 = vld [vmem:[%s3073_s3 + $0xcc] sm:$0xf]  ;;  %v2194_v31 = vld [vmem:[%s3074_s4 + $0x2c] sm:$0xf0]  ;;  %v2190_v32 = vld [vmem:[%s3074_s4 + $0x14] sm:$0xf]  ;;  %v1764_v34 = vor.u32 %v2191_v21, %v1761_v22  ;;  %v1980_v35 = vor.u32 %v2184_v24, %v1979_v23 }
  0x23   : > { %v1981_v28 = vld [vmem:[%s3073_s3 + $0xe8] sm:$0xf0]  ;;  %v1753_v33 = vld [vmem:[%s3074_s4 + $0x30] sm:$0xf0]  ;;  %v1971_v36 = vld [vmem:[%s3073_s3 + $0xc0] sm:$0xf]  ;;  %v1752_v43 = vor.u32 %v2194_v31, %v1751_v26 }
  0x24   : > { %714 = vmatpush.bf16.msrb.mxu0 %v1816_v11  ;;  %v2183_v37 = vld [vmem:[%s3073_s3 + $0xdc] sm:$0xf0]  ;;  %v2179_v38 = vld [vmem:[%s3073_s3 + $0xc4] sm:$0xf]  ;;  %v1984_v39 = vor.u32 %v2180_v27, %v1981_v28  ;;  %v1947_v41 = vld [vmem:[%s3073_s3 + $0x88] sm:$0xf]  ;;  %v1756_v44 = vor.u32 %v2190_v32, %v1753_v33 }
  0x25   : > { %742 = vmatpush.bf16.msrb.mxu2 %v1824_v1  ;;  %v1973_v40 = vld [vmem:[%s3073_s3 + $0xe0] sm:$0xf0]  ;;  %v2176_v42 = vld [vmem:[%s3073_s3 + $0xa4] sm:$0xf0]  ;;  %v1972_v45 = vor.u32 %v2183_v37, %v1971_v36  ;;  %v2172_v46 = vld [vmem:[%s3073_s3 + $0x8c] sm:$0xf] }
  0x26   : > { %756 = vmatpush.bf16.msrb.mxu3 %v1828_v5  ;;  %728 = vmatpush.bf16.msrb.mxu1 %v1820_v13  ;;  %v1949_v47 = vld [vmem:[%s3073_s3 + $0xa8] sm:$0xf0]  ;;  %v1976_v48 = vor.u32 %v2179_v38, %v1973_v40  ;;  %v1948_v49 = vor.u32 %v2176_v42, %v1947_v41  ;;  %v1939_v50 = vld [vmem:[%s3073_s3 + $0x80] sm:$0xf]  ;;  %v2171_v52 = vld [vmem:[%s3073_s3 + $0x84] sm:$0xf] }
  0x27   : > { %v2175_v51 = vld [vmem:[%s3073_s3 + $0x9c] sm:$0xf0]  ;;  %v1941_v53 = vld [vmem:[%s3073_s3 + $0xa0] sm:$0xf0]  ;;  %v1915_v54 = vld [vmem:[%s3073_s3 + $0x48] sm:$0xf]  ;;  %v1952_v56 = vor.u32 %v2172_v46, %v1949_v47 }
  0x28   : > { %715 = vmatpush.bf16.msrb.mxu0 %v1784_v25  ;;  %v2168_v55 = vld [vmem:[%s3073_s3 + $0x64] sm:$0xf0]  ;;  %v1940_v57 = vor.u32 %v2175_v51, %v1939_v50  ;;  %v2164_v58 = vld [vmem:[%s3073_s3 + $0x4c] sm:$0xf]  ;;  %v1944_v60 = vor.u32 %v2171_v52, %v1941_v53  ;;  %v1907_v63 = vld [vmem:[%s3073_s3 + $0x40] sm:$0xf] }
  0x29   : > { %743 = vmatpush.bf16.msrb.mxu2 %v1792_v14  ;;  %v1917_v59 = vld [vmem:[%s3073_s3 + $0x68] sm:$0xf0]  ;;  %v1916_v61 = vor.u32 %v2168_v55, %v1915_v54  ;;  %v2167_v0 = vld [vmem:[%s3073_s3 + $0x5c] sm:$0xf0]  ;;  %v2163_v1 = vld [vmem:[%s3073_s3 + $0x44] sm:$0xf] }
  0x2a   : > { %757 = vmatpush.bf16.msrb.mxu3 %v1796_v18  ;;  %729 = vmatpush.bf16.msrb.mxu1 %v1788_v29  ;;  %v1909_v2 = vld [vmem:[%s3073_s3 + $0x60] sm:$0xf0]  ;;  %v1883_v3 = vld [vmem:[%s3073_s3 + $0x8] sm:$0xf]  ;;  %v1995_v5 = vld [vmem:[%s3073_s3 + $0xd8] sm:$0xf]  ;;  %v1920_v7 = vor.u32 %v2164_v58, %v1917_v59  ;;  %v1908_v8 = vor.u32 %v2167_v0, %v1907_v63 }
  0x2b   : > { %v2160_v4 = vld [vmem:[%s3073_s3 + $0x24] sm:$0xf0]  ;;  %v2186_v6 = vld [vmem:[%s3073_s3 + $0xf4] sm:$0xf0]  ;;  %v2156_v9 = vld [vmem:[%s3073_s3 + $0xc] sm:$0xf]  ;;  %v1912_v11 = vor.u32 %v2163_v1, %v1909_v2 }
  0x2c   : > { %716 = vmatpush.bf16.msrb.mxu0 %v1752_v43  ;;  %v1875_v10 = vld [vmem:[%s3073_s3] sm:$0xf]  ;;  %v1884_v12 = vor.u32 %v2160_v4, %v1883_v3  ;;  %v2155_v14 = vld [vmem:[%s3073_s3 + $0x4] sm:$0xf]  ;;  %v1996_v16 = vor.u32 %v2186_v6, %v1995_v5  ;;  %v2182_v17 = vld [vmem:[%s3073_s3 + $0xdc] sm:$0xf] }
  0x2d   : > { %744 = vmatpush.bf16.msrb.mxu2 %v1760_v30  ;;  %v2159_v13 = vld [vmem:[%s3073_s3 + $0x1c] sm:$0xf0]  ;;  %v1877_v15 = vld [vmem:[%s3073_s3 + $0x20] sm:$0xf0]  ;;  %v1997_v18 = vld [vmem:[%s3073_s3 + $0xf8] sm:$0xf0] }
  0x2e   : > { %758 = vmatpush.bf16.msrb.mxu3 %v1764_v34  ;;  %730 = vmatpush.bf16.msrb.mxu1 %v1756_v44  ;;  %v1987_v19 = vld [vmem:[%s3073_s3 + $0xd0] sm:$0xf]  ;;  %v2181_v21 = vld [vmem:[%s3073_s3 + $0xd4] sm:$0xf]  ;;  %v1876_v24 = vor.u32 %v2159_v13, %v1875_v10  ;;  %v1963_v25 = vld [vmem:[%s3073_s3 + $0x98] sm:$0xf]  ;;  %v1880_v27 = vor.u32 %v2155_v14, %v1877_v15  ;;  %v2000_v28 = vor.u32 %v2182_v17, %v1997_v18 }
  0x2f   : > { %1865 = vmatmul.msk.bf16.vlgmr.msrb.gmra.mxu0 %vm649_vm0, %v2501_v62  ;;  %v2185_v20 = vld [vmem:[%s3073_s3 + $0xec] sm:$0xf0]  ;;  %v1989_v22 = vld [vmem:[%s3073_s3 + $0xf0] sm:$0xf0]  ;;  %v2178_v26 = vld [vmem:[%s3073_s3 + $0xb4] sm:$0xf0] }
  0x30   : > { %937 = vmatpush.bf16.msra.mxu0 %v1972_v45  ;;  %1867 = vmatmul.msk.bf16.vlgmr.msrb.gmra.mxu2 %vm649_vm0, %v2501_v62  ;;  %v1988_v29 = vor.u32 %v2185_v20, %v1987_v19  ;;  %v1992_v30 = vor.u32 %v2181_v21, %v1989_v22  ;;  %v2174_v31 = vld [vmem:[%s3073_s3 + $0x9c] sm:$0xf]  ;;  %v1964_v33 = vor.u32 %v2178_v26, %v1963_v25  ;;  %v2715_v34 = vld [vmem:[%s380_s14] sm:$0xff]  ;;  %v2177_v36 = vld [vmem:[%s3073_s3 + $0xac] sm:$0xf0]  ;;  %vm1583_vm13 = vcmask 1041408  }
  0x31   : > { %965 = vmatpush.bf16.msra.mxu2 %v1980_v35  ;;  %1866 = vmatmul.msk.bf16.vlgmr.msrb.gmra.mxu1 %vm649_vm0, %v2501_v62  ;;  %v1965_v32 = vld [vmem:[%s3073_s3 + $0xb8] sm:$0xf0]  ;;  %v1955_v35 = vld [vmem:[%s3073_s3 + $0x90] sm:$0xf]  ;;  %v2173_v38 = vld [vmem:[%s3073_s3 + $0x94] sm:$0xf] }
  0x32   : > { %979 = vmatpush.bf16.msra.mxu3 %v1984_v39  ;;  %951 = vmatpush.bf16.msra.mxu1 %v1976_v48  ;;  %v1968_v37 = vor.u32 %v2174_v31, %v1965_v32  ;;  %v1957_v39 = vld [vmem:[%s3073_s3 + $0xb0] sm:$0xf0]  ;;  %v1931_v40 = vld [vmem:[%s3073_s3 + $0x58] sm:$0xf]  ;;  %v2166_v42 = vld [vmem:[%s3073_s3 + $0x5c] sm:$0xf]  ;;  %v1956_v44 = vor.u32 %v2177_v36, %v1955_v35 }
  0x33   : > { %1868 = vmatmul.msk.bf16.vlgmr.msrb.gmra.mxu3 %vm649_vm0, %v2501_v62  ;;  %v1885_v62 = vld [vmem:[%s3073_s3 + $0x28] sm:$0xf0]  ;;  %v2170_v41 = vld [vmem:[%s3073_s3 + $0x74] sm:$0xf0]  ;;  %v1933_v43 = vld [vmem:[%s3073_s3 + $0x78] sm:$0xf0]  ;;  %v1960_v45 = vor.u32 %v2173_v38, %v1957_v39 }
  0x34   : > { %938 = vmatpush.bf16.msra.mxu0 %v1940_v57  ;;  %v1888_v23 = vor.u32 %v2156_v9, %v1885_v62  ;;  %v1923_v46 = vld [vmem:[%s3073_s3 + $0x50] sm:$0xf]  ;;  %v2165_v48 = vld [vmem:[%s3073_s3 + $0x54] sm:$0xf]  ;;  %v1936_v50 = vor.u32 %v2166_v42, %v1933_v43  ;;  %v1899_v52 = vld [vmem:[%s3073_s3 + $0x18] sm:$0xf] }
  0x35   : > { %966 = vmatpush.bf16.msra.mxu2 %v1948_v49  ;;  %v2169_v47 = vld [vmem:[%s3073_s3 + $0x6c] sm:$0xf0]  ;;  %v1932_v49 = vor.u32 %v2170_v41, %v1931_v40  ;;  %v1925_v51 = vld [vmem:[%s3073_s3 + $0x70] sm:$0xf0]  ;;  %v2162_v53 = vld [vmem:[%s3073_s3 + $0x34] sm:$0xf0] }
  0x36   : > { %980 = vmatpush.bf16.msra.mxu3 %v1952_v56  ;;  %952 = vmatpush.bf16.msra.mxu1 %v1944_v60  ;;  %v2158_v54 = vld [vmem:[%s3073_s3 + $0x1c] sm:$0xf]  ;;  %v2119_v56 = vld [vmem:[%s3075_s5 + $0xc8] sm:$0xf]  ;;  %v2246_v58 = vld [vmem:[%s3075_s5 + $0xcc] sm:$0xf]  ;;  %v1924_v60 = vor.u32 %v2169_v47, %v1923_v46  ;;  %v1900_v2 = vor.u32 %v2162_v53, %v1899_v52 }
  0x37   : > { %v1901_v55 = vld [vmem:[%s3073_s3 + $0x38] sm:$0xf0]  ;;  %v2250_v57 = vld [vmem:[%s3075_s5 + $0xe4] sm:$0xf0]  ;;  %v2121_v59 = vld [vmem:[%s3075_s5 + $0xe8] sm:$0xf0] }
  0x38   : > { %939 = vmatpush.bf16.msra.mxu0 %v1908_v8  ;;  %v1891_v63 = vld [vmem:[%s3073_s3 + $0x10] sm:$0xf]  ;;  %v2157_v1 = vld [vmem:[%s3073_s3 + $0x14] sm:$0xf]  ;;  %v1904_v3 = vor.u32 %v2158_v54, %v1901_v55  ;;  %v2111_v5 = vld [vmem:[%s3075_s5 + $0xc0] sm:$0xf]  ;;  %v2124_v8 = vor.u32 %v2246_v58, %v2121_v59 }
  0x39   : > { %967 = vmatpush.bf16.msra.mxu2 %v1916_v61  ;;  %v1928_v61 = vor.u32 %v2165_v48, %v1925_v51  ;;  %v2161_v0 = vld [vmem:[%s3073_s3 + $0x2c] sm:$0xf0]  ;;  %v1893_v4 = vld [vmem:[%s3073_s3 + $0x30] sm:$0xf0]  ;;  %v2249_v6 = vld [vmem:[%s3075_s5 + $0xdc] sm:$0xf0] }
  0x3a   : > { %981 = vmatpush.bf16.msra.mxu3 %v1920_v7  ;;  %953 = vmatpush.bf16.msra.mxu1 %v1912_v11  ;;  %v2120_v7 = vor.u32 %v2250_v57, %v2119_v56  ;;  %v2245_v9 = vld [vmem:[%s3075_s5 + $0xc4] sm:$0xf]  ;;  %v2087_v10 = vld [vmem:[%s3075_s5 + $0x88] sm:$0xf]  ;;  %v2089_v13 = vld [vmem:[%s3075_s5 + $0xa8] sm:$0xf0]  ;;  %v1892_v14 = vor.u32 %v2161_v0, %v1891_v63  ;;  %v1896_v15 = vor.u32 %v2157_v1, %v1893_v4 }
  0x3b   : > { %v2113_v62 = vld [vmem:[%s3075_s5 + $0xe0] sm:$0xf0]  ;;  %v2242_v11 = vld [vmem:[%s3075_s5 + $0xa4] sm:$0xf0]  ;;  %v2079_v18 = vld [vmem:[%s3075_s5 + $0x80] sm:$0xf] }
  0x3c   : > { %940 = vmatpush.bf16.msra.mxu0 %v1876_v24  ;;  %v2116_v17 = vor.u32 %v2245_v9, %v2113_v62  ;;  %v2088_v19 = vor.u32 %v2242_v11, %v2087_v10  ;;  %v2241_v21 = vld [vmem:[%s3075_s5 + $0x9c] sm:$0xf0]  ;;  %v2237_v22 = vld [vmem:[%s3075_s5 + $0x84] sm:$0xf]  ;;  %v2055_v24 = vld [vmem:[%s3075_s5 + $0x48] sm:$0xf] }
  0x3d   : > { %968 = vmatpush.bf16.msra.mxu2 %v1884_v12  ;;  %v2238_v12 = vld [vmem:[%s3075_s5 + $0x8c] sm:$0xf]  ;;  %v2234_v25 = vld [vmem:[%s3075_s5 + $0x64] sm:$0xf0]  ;;  %v2080_v26 = vor.u32 %v2241_v21, %v2079_v18  ;;  %v2233_v31 = vld [vmem:[%s3075_s5 + $0x5c] sm:$0xf0] }
  0x3e   : > { %982 = vmatpush.bf16.msra.mxu3 %v1888_v23  ;;  %954 = vmatpush.bf16.msra.mxu1 %v1880_v27  ;;  %v2092_v20 = vor.u32 %v2238_v12, %v2089_v13  ;;  %v2081_v23 = vld [vmem:[%s3075_s5 + $0xa0] sm:$0xf0]  ;;  %v2023_v35 = vld [vmem:[%s3075_s5 + $0x8] sm:$0xf]  ;;  %v2056_v36 = vor.u32 %v2234_v25, %v2055_v24  ;;  %v2222_v39 = vld [vmem:[%s3075_s5 + $0xc] sm:$0xf] }
  0x3f   : > { %2001 = vmatmul.msk.bf16.vlgmr.msra.gmra.mxu0 %vm649_vm0, %v2715_v34  ;;  %v2084_v27 = vor.u32 %v2237_v22, %v2081_v23  ;;  %v2229_v32 = vld [vmem:[%s3075_s5 + $0x44] sm:$0xf]  ;;  %v2226_v38 = vld [vmem:[%s3075_s5 + $0x24] sm:$0xf0]  ;;  %v2025_v40 = vld [vmem:[%s3075_s5 + $0x28] sm:$0xf0] }
  0x40   : > { %993 = vmatpush.bf16.msrb.mxu0 %v1988_v29  ;;  %2003 = vmatmul.msk.bf16.vlgmr.msra.gmra.mxu2 %vm649_vm0, %v2715_v34  ;;  %v2057_v29 = vld [vmem:[%s3075_s5 + $0x68] sm:$0xf0]  ;;  %v2015_v43 = vld [vmem:[%s3075_s5] sm:$0xf]  ;;  %v2017_v46 = vld [vmem:[%s3075_s5 + $0x20] sm:$0xf0]  ;;  %v2024_v52 = vor.u32 %v2226_v38, %v2023_v35  ;;  %v2028_v53 = vor.u32 %v2222_v39, %v2025_v40 }
  0x41   : > { %1021 = vmatpush.bf16.msrb.mxu2 %v1996_v16  ;;  %2002 = vmatmul.msk.bf16.vlgmr.msra.gmra.mxu1 %vm649_vm0, %v2715_v34  ;;  %v2112_v16 = vor.u32 %v2249_v6, %v2111_v5  ;;  %v2135_v47 = vld [vmem:[%s3075_s5 + $0xd8] sm:$0xf]  ;;  %v2127_v51 = vld [vmem:[%s3075_s5 + $0xd0] sm:$0xf]  ;;  %v2247_v54 = vld [vmem:[%s3075_s5 + $0xd4] sm:$0xf] }
  0x42   : > { %1035 = vmatpush.bf16.msrb.mxu3 %v2000_v28  ;;  %1007 = vmatpush.bf16.msrb.mxu1 %v1992_v30  ;;  %v2230_v28 = vld [vmem:[%s3075_s5 + $0x4c] sm:$0xf]  ;;  %v2047_v30 = vld [vmem:[%s3075_s5 + $0x40] sm:$0xf]  ;;  %v2252_v48 = vld [vmem:[%s3075_s5 + $0xf4] sm:$0xf0] }
  0x43   : > { %2004 = vmatmul.msk.bf16.vlgmr.msra.gmra.mxu3 %vm649_vm0, %v2715_v34  ;;  %v2048_v41 = vor.u32 %v2233_v31, %v2047_v30  ;;  %v2129_v55 = vld [vmem:[%s3075_s5 + $0xf0] sm:$0xf0]  ;;  %v2136_v58 = vor.u32 %v2252_v48, %v2135_v47  ;;  %v2240_v1 = vld [vmem:[%s3075_s5 + $0x9c] sm:$0xf]  ;;  %v2243_v4 = vld [vmem:[%s3075_s5 + $0xac] sm:$0xf0] }
  0x44   : > { %994 = vmatpush.bf16.msrb.mxu0 %v1956_v44  ;;  %v2225_v44 = vld [vmem:[%s3075_s5 + $0x1c] sm:$0xf0]  ;;  %v2132_v0 = vor.u32 %v2247_v54, %v2129_v55  ;;  %v2239_v5 = vld [vmem:[%s3075_s5 + $0x94] sm:$0xf]  ;;  %v2071_v11 = vld [vmem:[%s3075_s5 + $0x58] sm:$0xf] }
  0x45   : > { %1022 = vmatpush.bf16.msrb.mxu2 %v1964_v33  ;;  %v2049_v33 = vld [vmem:[%s3075_s5 + $0x60] sm:$0xf0]  ;;  %v2016_v56 = vor.u32 %v2225_v44, %v2015_v43  ;;  %v2097_v6 = vld [vmem:[%s3075_s5 + $0xb0] sm:$0xf0]  ;;  %v2236_v12 = vld [vmem:[%s3075_s5 + $0x74] sm:$0xf0] }
  0x46   : > { %1036 = vmatpush.bf16.msrb.mxu3 %v1968_v37  ;;  %1008 = vmatpush.bf16.msrb.mxu1 %v1960_v45  ;;  %v2060_v37 = vor.u32 %v2230_v28, %v2057_v29  ;;  %v2052_v42 = vor.u32 %v2229_v32, %v2049_v33  ;;  %v2221_v45 = vld [vmem:[%s3075_s5 + $0x4] sm:$0xf]  ;;  %v2100_v62 = vor.u32 %v2239_v5, %v2097_v6  ;;  %v2232_v13 = vld [vmem:[%s3075_s5 + $0x5c] sm:$0xf]  ;;  %v2065_v18 = vld [vmem:[%s3075_s5 + $0x70] sm:$0xf0] }
  0x47   : > { %v2020_v57 = vor.u32 %v2221_v45, %v2017_v46  ;;  %v2220_v10 = vld [vmem:[%s404_s23] sm:$0xff]  ;;  %v2039_v21 = vld [vmem:[%s3075_s5 + $0x18] sm:$0xf]  ;;  %v2224_v25 = vld [vmem:[%s3075_s5 + $0x1c] sm:$0xf] }
  0x48   : > { %995 = vmatpush.bf16.msrb.mxu0 %v1924_v60  ;;  %v2103_v60 = vld [vmem:[%s3075_s5 + $0x98] sm:$0xf]  ;;  %v2227_v28 = vld [vmem:[%s3075_s5 + $0x2c] sm:$0xf0]  ;;  %v2223_v29 = vld [vmem:[%s3075_s5 + $0x14] sm:$0xf] }
  0x49   : > { %1023 = vmatpush.bf16.msrb.mxu2 %v1932_v49  ;;  %v2248_v49 = vld [vmem:[%s3075_s5 + $0xdc] sm:$0xf]  ;;  %v2228_v22 = vld [vmem:[%s3075_s5 + $0x34] sm:$0xf0]  ;;  %v2033_v30 = vld [vmem:[%s3075_s5 + $0x30] sm:$0xf0] }
  0x4a   : > { %1037 = vmatpush.bf16.msrb.mxu3 %v1936_v50  ;;  %1009 = vmatpush.bf16.msrb.mxu1 %v1928_v61  ;;  %v2137_v50 = vld [vmem:[%s3075_s5 + $0xf8] sm:$0xf0]  ;;  %v2244_v61 = vld [vmem:[%s3075_s5 + $0xb4] sm:$0xf0]  ;;  %v2040_v31 = vor.u32 %v2228_v22, %v2039_v21  ;;  %v2036_v35 = vor.u32 %v2223_v29, %v2033_v30  ;;  %v3008_v5 = vld [vmem:[%s3076_s6] sm:$0xff] }
  0x4b   : > { %v2140_v59 = vor.u32 %v2248_v49, %v2137_v50  ;;  %v1381_v30 = vperm.slane %v3008_v5, 4 }
  0x4c   : > { %996 = vmatpush.bf16.msrb.mxu0 %v1892_v14  ;;  %v2073_v14 = vld [vmem:[%s3075_s5 + $0x78] sm:$0xf0] }
  0x4d   : > { %1024 = vmatpush.bf16.msrb.mxu2 %v1900_v2  ;;  %v2105_v2 = vld [vmem:[%s3075_s5 + $0xb8] sm:$0xf0] }
  0x4e   : > { %1038 = vmatpush.bf16.msrb.mxu3 %v1904_v3  ;;  %1010 = vmatpush.bf16.msrb.mxu1 %v1896_v15  ;;  %v2095_v3 = vld [vmem:[%s3075_s5 + $0x90] sm:$0xf] }
  0x4f   : > { %2005 = vmatmul.msk.bf16.vlgmr.msrb.gmra.mxu0 %vm649_vm0, %v2715_v34  ;;  %v2096_v9 = vor.u32 %v2243_v4, %v2095_v3  ;;  %v2063_v15 = vld [vmem:[%s3075_s5 + $0x50] sm:$0xf] }
  0x50   : > { %1251 = vmatpush.bf16.msra.mxu0 %v2112_v16  ;;  %2007 = vmatmul.msk.bf16.vlgmr.msrb.gmra.mxu2 %vm649_vm0, %v2715_v34  ;;  %v2235_v16 = vld [vmem:[%s3075_s5 + $0x6c] sm:$0xf0] }
  0x51   : > { %1279 = vmatpush.bf16.msra.mxu2 %v2120_v7  ;;  %2006 = vmatmul.msk.bf16.vlgmr.msrb.gmra.mxu1 %vm649_vm0, %v2715_v34  ;;  %v2104_v7 = vor.u32 %v2244_v61, %v2103_v60  ;;  %v2064_v23 = vor.u32 %v2235_v16, %v2063_v15  ;;  %v1379_v15 = vperm.slane %v3008_v5, 2  ;;  %v1380_v16 = vperm.slane %v3008_v5, 3 }
  0x52   : > { %1293 = vmatpush.bf16.msra.mxu3 %v2124_v8  ;;  %1265 = vmatpush.bf16.msra.mxu1 %v2116_v17  ;;  %v2108_v8 = vor.u32 %v2240_v1, %v2105_v2  ;;  %v2231_v17 = vld [vmem:[%s3075_s5 + $0x54] sm:$0xf] }
  0x53   : > { %2008 = vmatmul.msk.bf16.vlgmr.msrb.gmra.mxu3 %vm649_vm0, %v2715_v34  ;;  %v2251_v34 = vld [vmem:[%s3075_s5 + $0xec] sm:$0xf0]  ;;  %v2068_v24 = vor.u32 %v2231_v17, %v2065_v18 }
  0x54   : > { %1252 = vmatpush.bf16.msra.mxu0 %v2080_v26  ;;  %v2128_v63 = vor.u32 %v2251_v34, %v2127_v51  ;;  %v2041_v26 = vld [vmem:[%s3075_s5 + $0x38] sm:$0xf0] }
  0x55   : > { %1280 = vmatpush.bf16.msra.mxu2 %v2088_v19  ;;  %v2072_v19 = vor.u32 %v2236_v12, %v2071_v11  ;;  %v2044_v32 = vor.u32 %v2224_v25, %v2041_v26  ;;  %v1378_v11 = vperm.slane %v3008_v5, 1 }
  0x56   : > { %1294 = vmatpush.bf16.msra.mxu3 %v2092_v20  ;;  %1266 = vmatpush.bf16.msra.mxu1 %v2084_v27  ;;  %v2076_v20 = vor.u32 %v2232_v13, %v2073_v14  ;;  %v2031_v27 = vld [vmem:[%s3075_s5 + $0x10] sm:$0xf] }
  0x57   : > { %v2032_v33 = vor.u32 %v2227_v28, %v2031_v27 }
  0x58   : > { %1253 = vmatpush.bf16.msra.mxu0 %v2048_v41 }
  0x59   : > { %1281 = vmatpush.bf16.msra.mxu2 %v2056_v36 }
  0x5a   : > { %1295 = vmatpush.bf16.msra.mxu3 %v2060_v37  ;;  %1267 = vmatpush.bf16.msra.mxu1 %v2052_v42 }
  0x5c   : > { %1254 = vmatpush.bf16.msra.mxu0 %v2016_v56 }
  0x5d   : > { %1282 = vmatpush.bf16.msra.mxu2 %v2024_v52 }
  0x5e   : > { %1296 = vmatpush.bf16.msra.mxu3 %v2028_v53  ;;  %1268 = vmatpush.bf16.msra.mxu1 %v2020_v57 }
  0x5f   : > { %2141 = vmatmul.msk.bf16.vlgmr.msra.gmra.mxu0 %vm649_vm0, %v2220_v10 }
  0x60   : > { %1307 = vmatpush.bf16.msrb.mxu0 %v2128_v63  ;;  %2143 = vmatmul.msk.bf16.vlgmr.msra.gmra.mxu2 %vm649_vm0, %v2220_v10 }
  0x61   : > { %1335 = vmatpush.bf16.msrb.mxu2 %v2136_v58  ;;  %2142 = vmatmul.msk.bf16.vlgmr.msra.gmra.mxu1 %vm649_vm0, %v2220_v10 }
  0x62   : > { %1349 = vmatpush.bf16.msrb.mxu3 %v2140_v59  ;;  %1321 = vmatpush.bf16.msrb.mxu1 %v2132_v0 }
  0x63   : > { %2144 = vmatmul.msk.bf16.vlgmr.msra.gmra.mxu3 %vm649_vm0, %v2220_v10 }
  0x64   : > { %1308 = vmatpush.bf16.msrb.mxu0 %v2096_v9 }
  0x65   : > { %1336 = vmatpush.bf16.msrb.mxu2 %v2104_v7 }
  0x66   : > { %1350 = vmatpush.bf16.msrb.mxu3 %v2108_v8  ;;  %1322 = vmatpush.bf16.msrb.mxu1 %v2100_v62  ;;  %v1377_v62 = vperm.slane %v3008_v5, 0 }
  0x68   : > { %1309 = vmatpush.bf16.msrb.mxu0 %v2064_v23 }
  0x69   : > { %1337 = vmatpush.bf16.msrb.mxu2 %v2072_v19 }
  0x6a   : > { %1351 = vmatpush.bf16.msrb.mxu3 %v2076_v20  ;;  %1323 = vmatpush.bf16.msrb.mxu1 %v2068_v24 }
  0x6c   : > { %1310 = vmatpush.bf16.msrb.mxu0 %v2032_v33 }
  0x6d   : > { %1338 = vmatpush.bf16.msrb.mxu2 %v2040_v31  ;;  %v1382_v31 = vperm.slane %v3008_v5, 5 }
  0x6e   : > { %1352 = vmatpush.bf16.msrb.mxu3 %v2044_v32  ;;  %1324 = vmatpush.bf16.msrb.mxu1 %v2036_v35 }
  0x6f   : > { %2145 = vmatmul.msk.bf16.vlgmr.msrb.gmra.mxu0 %vm649_vm0, %v2220_v10 }
  0x70   : > { %2147 = vmatmul.msk.bf16.vlgmr.msrb.gmra.mxu2 %vm649_vm0, %v2220_v10 }
  0x71   : > { %2146 = vmatmul.msk.bf16.vlgmr.msrb.gmra.mxu1 %vm649_vm0, %v2220_v10 }
  0x73   : > { %2148 = vmatmul.msk.bf16.vlgmr.msrb.gmra.mxu3 %vm649_vm0, %v2220_v10 }
  0x9c   : > { %v662_v36 = vpop.f32.mrf.mxu0  ;;  %v676_v37 = vpop.f32.mrf.mxu1 }
  0xa3   : > { %v690_v38 = vpop.f32.mrf.mxu2 }
  0xa4   : > { %v704_v39 = vpop.f32.mrf.mxu3  ;;  %v664_v40 = vpop.f32.mrf.mxu0 }
  0xa5   : > { %v678_v41 = vpop.f32.mrf.mxu1 }
  0xab   : > { %v692_v42 = vpop.f32.mrf.mxu2 }
  0xac   : > { %v706_v43 = vpop.f32.mrf.mxu3  ;;  %v718_v44 = vpop.f32.mrf.mxu0 }
  0xae   : > { %v732_v45 = vpop.f32.mrf.mxu1 }
  0xb3   : > { %v746_v46 = vpop.f32.mrf.mxu2 }
  0xb4   : > { %v720_v48 = vpop.f32.mrf.mxu0 }
  0xb6   : > { %v760_v47 = vpop.f32.mrf.mxu3  ;;  %v2997_v49 = vpop.f32.mrf.mxu1 }
  0xbb   : > { %v2999_v50 = vpop.f32.mrf.mxu2 }
  0xbc   : > { %v942_v52 = vpop.f32.mrf.mxu0 }
  0xbd   : > { %v943_v6 = vadd.f32 %v942_v52, %v662_v36 }
  0xbe   : > { %v3001_v51 = vpop.f32.mrf.mxu3  ;;  %v956_v53 = vpop.f32.mrf.mxu1 }
  0xbf   : > { %v957_v8 = vadd.f32 %v956_v53, %v676_v37 }
  0xc3   : > { %v970_v34 = vpop.f32.mrf.mxu2 }
  0xc4   : > { %v944_v55 = vpop.f32.mrf.mxu0  ;;  %v971_v12 = vadd.f32 %v970_v34, %v690_v38 }
  0xc5   : > { %v945_v17 = vadd.f32 %v944_v55, %v664_v40  ;;  %v1383_v40 = vperm.slane %v3008_v5, 6 }
  0xc6   : > { %v984_v54 = vpop.f32.mrf.mxu3  ;;  %v958_v56 = vpop.f32.mrf.mxu1 }
  0xc7   : > { %v985_v13 = vadd.f32 %v984_v54, %v704_v39  ;;  %v959_v18 = vadd.f32 %v958_v56, %v678_v41 }
  0xcb   : > { %v972_v57 = vpop.f32.mrf.mxu2 }
  0xcc   : > { %v998_v59 = vpop.f32.mrf.mxu0  ;;  %v973_v19 = vadd.f32 %v972_v57, %v692_v42 }
  0xcd   : > { %v999_v23 = vadd.f32 %v998_v59, %v718_v44 }
  0xce   : > { %v986_v58 = vpop.f32.mrf.mxu3  ;;  %v1012_v60 = vpop.f32.mrf.mxu1 }
  0xcf   : > { %v987_v22 = vadd.f32 %v986_v58, %v706_v43  ;;  %v1013_v24 = vadd.f32 %v1012_v60, %v732_v45  ;;  %v1384_v43 = vperm.slane %v3008_v5, 7 }
  0xd3   : > { %v1026_v61 = vpop.f32.mrf.mxu2 }
  0xd4   : > { %v1000_v0 = vpop.f32.mrf.mxu0  ;;  %v3016_v32 = vadd.f32 %v1026_v61, %v746_v46 }
  0xd5   : > { %v3020_v37 = vadd.f32 %v1000_v0, %v720_v48 }
  0xd6   : > { %v1040_v63 = vpop.f32.mrf.mxu3  ;;  %v1014_v1 = vpop.f32.mrf.mxu1 }
  0xd7   : > { %v3018_v33 = vadd.f32 %v1040_v63, %v760_v47  ;;  %v3025_v46 = vadd.f32 %v1014_v1, %v2997_v49 }
  0xdb   : > { %v1028_v2 = vpop.f32.mrf.mxu2 }
  0xdc   : > { %v1256_v4 = vpop.f32.mrf.mxu0  ;;  %v3028_v53 = vadd.f32 %v1028_v2, %v2999_v50 }
  0xdd   : > { %v1359_v9 = vadd.f32 %v1256_v4, %v943_v6 }
  0xde   : > { %v3003_v3 = vpop.f32.mrf.mxu3  ;;  %v1270_v7 = vpop.f32.mrf.mxu1 }
  0xdf   : > { %v1360_v10 = vadd.f32 %v1270_v7, %v957_v8  ;;  %v1393_v20 = vadd.f32 %v1377_v62, %v1359_v9 }
  0xe1   : > { %v1394_v25 = vadd.f32 %v1378_v11, %v1360_v10  ;;  %v1425_v38 = vmul.f32 0.2, %v1393_v20  ;;  %vm1409_vm1 = vcmp.gt.f32.partialorder %v1393_v20, 0.0 }
  0xe3   : > { %v1284_v14 = vpop.f32.mrf.mxu2  ;;  %v1426_v41 = vmul.f32 0.2, %v1394_v25  ;;  %vm1410_vm2 = vcmp.gt.f32.partialorder %v1394_v25, 0.0  ;;  %v1441_v34 = vsel %vm1409_vm1, %v1393_v20, %v1425_v38 }
  0xe4   : > { %v1258_v26 = vpop.f32.mrf.mxu0  ;;  %v1361_v27 = vadd.f32 %v1284_v14, %v971_v12 }
  0xe5   : > { %v1367_v28 = vadd.f32 %v1258_v26, %v945_v17  ;;  %v1442_v57 = vsel %vm1410_vm2, %v1394_v25, %v1426_v41 }
  0xe6   : > { %v1298_v21 = vpop.f32.mrf.mxu3  ;;  %v1272_v29 = vpop.f32.mrf.mxu1  ;;  %v1395_v44 = vadd.f32 %v1379_v15, %v1361_v27 }
  0xe7   : > { %v1362_v35 = vadd.f32 %v1298_v21, %v985_v13  ;;  %v1368_v36 = vadd.f32 %v1272_v29, %v959_v18  ;;  %v1401_v39 = vadd.f32 %v1377_v62, %v1367_v28 }
  0xe8   : > { %v1427_v63 = vmul.f32 0.2, %v1395_v44  ;;  %vm1411_vm5 = vcmp.gt.f32.partialorder %v1395_v44, 0.0 }
  0xe9   : > { %v1402_v42 = vadd.f32 %v1378_v11, %v1368_v36  ;;  %vm1417_vm3 = vcmp.gt.f32.partialorder %v1401_v39, 0.0  ;;  %v1433_v45 = vmul.f32 0.2, %v1401_v39  ;;  %v1396_v47 = vadd.f32 %v1380_v16, %v1362_v35 }
  0xea   : > { %v1443_v11 = vsel %vm1411_vm5, %v1395_v44, %v1427_v63  ;;  %vm1587_vm5 = vcmask 1046534  }
  0xeb   : > { %vm1418_vm4 = vcmp.gt.f32.partialorder %v1402_v42, 0.0  ;;  %v1434_v48 = vmul.f32 0.2, %v1402_v42  ;;  %v1286_v52 = vpop.f32.mrf.mxu2  ;;  %v1449_v54 = vsel %vm1417_vm3, %v1401_v39, %v1433_v45  ;;  %v1428_v6 = vmul.f32 0.2, %v1396_v47 }
  0xec   : > { %v1369_v55 = vadd.f32 %v1286_v52, %v973_v19  ;;  %v1457_v58 = vmax.f32 %v1441_v34, %v1449_v54  ;;  %v1312_v61 = vpop.f32.mrf.mxu0  ;;  %vm1412_vm6 = vcmp.gt.f32.partialorder %v1396_v47, 0.0 }
  0xed   : > { %v1450_v59 = vsel %vm1418_vm4, %v1402_v42, %v1434_v48  ;;  %v1363_v1 = vadd.f32 %v1312_v61, %v999_v23  ;;  %vm1585_vm4 = vcmask 1044484  }
  0xee   : > { %v1300_v56 = vpop.f32.mrf.mxu3  ;;  %v1458_v0 = vmax.f32 %v1442_v57, %v1450_v59  ;;  %v1403_v49 = vadd.f32 %v1379_v15, %v1369_v55  ;;  %v1326_v4 = vpop.f32.mrf.mxu1  ;;  %v1516_v7 = vrot.slane %v1457_v58, 4  ;;  %v1444_v15 = vsel %vm1412_vm6, %v1396_v47, %v1428_v6 }
  0xef   : > { %v1370_v60 = vadd.f32 %v1300_v56, %v987_v22  ;;  %v1364_v10 = vadd.f32 %v1326_v4, %v1013_v24  ;;  %v1397_v14 = vadd.f32 %v1381_v30, %v1363_v1  ;;  %vm1589_vm6 = vcmask 1045508  }
  0xf0   : > { %v1522_v50 = vrot.slane %v1458_v0, 4  ;;  %vm1419_vm7 = vcmp.gt.f32.partialorder %v1403_v49, 0.0  ;;  %v1435_v2 = vmul.f32 0.2, %v1403_v49  ;;  %v1517_v9 = vmax.f32 %v1457_v58, %v1516_v7 }
  0xf1   : > { %v1404_v8 = vadd.f32 %v1380_v16, %v1370_v60  ;;  %v1043_v16 = vadd.f32 %v3003_v3, %v3001_v51  ;;  %v1398_v26 = vadd.f32 %v1382_v31, %v1364_v10  ;;  %v1429_v36 = vmul.f32 0.2, %v1397_v14 }
  0xf2   : > { %v1523_v12 = vmax.f32 %v1458_v0, %v1522_v50  ;;  %v1451_v13 = vsel %vm1419_vm7, %v1403_v49, %v1435_v2  ;;  %v1518_v17 = vrot.slane %v1517_v9, 2  ;;  %vm1413_vm10 = vcmp.gt.f32.partialorder %v1397_v14, 0.0 }
  0xf3   : > { %vm1420_vm8 = vcmp.gt.f32.partialorder %v1404_v8, 0.0  ;;  %v1436_v62 = vmul.f32 0.2, %v1404_v8  ;;  %v1459_v18 = vmax.f32 %v1443_v11, %v1451_v13  ;;  %v1340_v20 = vpop.f32.mrf.mxu2  ;;  %vm1414_vm12 = vcmp.gt.f32.partialorder %v1398_v26, 0.0 }
  0xf4   : > { %v1524_v21 = vrot.slane %v1523_v12, 2  ;;  %v1519_v25 = vmax.f32 %v1517_v9, %v1518_v17  ;;  %v1365_v27 = vadd.f32 %v1340_v20, %v3016_v32  ;;  %v1314_v28 = vpop.f32.mrf.mxu0  ;;  %v1445_v34 = vsel %vm1413_vm10, %v1397_v14, %v1429_v36 }
  0xf5   : > { %v1452_v19 = vsel %vm1420_vm8, %v1404_v8, %v1436_v62  ;;  %v1528_v24 = vrot.slane %v1459_v18, 4  ;;  %v1371_v38 = vadd.f32 %v1314_v28, %v3020_v37  ;;  %v1430_v54 = vmul.f32 0.2, %v1398_v26 }
  0xf6   : > { %v1460_v22 = vmax.f32 %v1444_v15, %v1452_v19  ;;  %v1354_v23 = vpop.f32.mrf.mxu3  ;;  %v1525_v29 = vmax.f32 %v1523_v12, %v1524_v21  ;;  %v1328_v39 = vpop.f32.mrf.mxu1  ;;  %v1520_v41 = vrot.slane %v1519_v25, 1  ;;  %v1399_v48 = vadd.f32 %v1383_v40, %v1365_v27 }
  0xf7   : > { %v1529_v51 = vmax.f32 %v1459_v18, %v1528_v24  ;;  %v1366_v3 = vadd.f32 %v1354_v23, %v3018_v33  ;;  %v1405_v45 = vadd.f32 %v1381_v30, %v1371_v38  ;;  %v1372_v47 = vadd.f32 %v1328_v39, %v3025_v46 }
  0xf8   : > { %v1534_v35 = vrot.slane %v1460_v22, 4  ;;  %v1526_v42 = vrot.slane %v1525_v29, 1  ;;  %v1521_v57 = vmax.f32 %v1519_v25, %v1520_v41  ;;  %v1431_v63 = vmul.f32 0.2, %v1399_v48 }
  0xf9   : > { %v1530_v32 = vrot.slane %v1529_v51, 2  ;;  %v1400_v33 = vadd.f32 %v1384_v43, %v1366_v3  ;;  %vm1421_vm14 = vcmp.gt.f32.partialorder %v1405_v45, 0.0  ;;  %v1437_v56 = vmul.f32 0.2, %v1405_v45 }
  0xfa   : > { %v1535_v44 = vmax.f32 %v1460_v22, %v1534_v35  ;;  %v1527_v37 = vmax.f32 %v1525_v29, %v1526_v42  ;;  %v1406_v59 = vadd.f32 %v1382_v31, %v1372_v47  ;;  %v1446_v31 = vsel %vm1414_vm12, %v1398_v26, %v1430_v54 }
  0xfb   : > { %v1531_v55 = vmax.f32 %v1529_v51, %v1530_v32  ;;  %v1342_v30 = vpop.f32.mrf.mxu2  ;;  %v1453_v0 = vsel %vm1421_vm14, %v1405_v45, %v1437_v56  ;;  %vm1415_vm0 = vcmp.gt.f32.partialorder %v1399_v48, 0.0  ;;  %vm1416_vm2 = vcmp.gt.f32.partialorder %v1400_v33, 0.0 }
  0xfc   : > { %v1536_v52 = vrot.slane %v1535_v44, 2  ;;  %v1572_v46 = vrot.slane %v1527_v37, 7  ;;  %v1373_v49 = vadd.f32 %v1342_v30, %v3028_v53  ;;  %v1461_v6 = vmax.f32 %v1445_v34, %v1453_v0 }
  0xfd   : > { %v1532_v61 = vrot.slane %v1531_v55, 1  ;;  %vm1422_vm15 = vcmp.gt.f32.partialorder %v1406_v59, 0.0  ;;  %v1438_v8 = vmul.f32 0.2, %v1406_v59  ;;  %v1447_v17 = vsel %vm1415_vm0, %v1399_v48, %v1431_v63 }
  0xfe   : > { %v1537_v58 = vmax.f32 %v1535_v44, %v1536_v52  ;;  %v1356_v60 = vpop.f32.mrf.mxu3  ;;  %v1580_v1 = vsel %vm1579_vm9, %v1521_v57, %v1572_v46  ;;  %v1407_v50 = vadd.f32 %v1383_v40, %v1373_v49  ;;  %v1540_v62 = vrot.slane %v1461_v6, 4 }
  0xff   : > { %v1533_v7 = vmax.f32 %v1531_v55, %v1532_v61  ;;  %v1374_v2 = vadd.f32 %v1356_v60, %v1043_v16  ;;  %v1454_v11 = vsel %vm1422_vm15, %v1406_v59, %v1438_v8  ;;  %v1432_v18 = vmul.f32 0.2, %v1400_v33 }
 0x100   : > { %v1538_v4 = vrot.slane %v1537_v58, 1  ;;  %vm1423_vm1 = vcmp.gt.f32.partialorder %v1407_v50, 0.0  ;;  %v1439_v53 = vmul.f32 0.2, %v1407_v50  ;;  %v1541_v13 = vmax.f32 %v1461_v6, %v1540_v62 }
 0x101   : > { %v1573_v10 = vrot.slane %v1533_v7, 6  ;;  %v1462_v14 = vmax.f32 %v1446_v31, %v1454_v11  ;;  %v1408_v15 = vadd.f32 %v1384_v43, %v1374_v2  ;;  %v1448_v27 = vsel %vm1416_vm2, %v1400_v33, %v1432_v18 }
 0x102   : > { %v1539_v9 = vmax.f32 %v1537_v58, %v1538_v4  ;;  %v1455_v40 = vsel %vm1423_vm1, %v1407_v50, %v1439_v53  ;;  %v1542_v20 = vrot.slane %v1541_v13, 2  ;;  %vm1591_vm7 = vcmask 1043456  }
 0x103   : > { %v1546_v16 = vrot.slane %v1462_v14, 4  ;;  %v1463_v21 = vmax.f32 %v1447_v17, %v1455_v40  ;;  %vm1424_vm3 = vcmp.gt.f32.partialorder %v1408_v15, 0.0  ;;  %v1440_v23 = vmul.f32 0.2, %v1408_v15 }
 0x104   : > { %v1574_v12 = vrot.slane %v1539_v9, 5  ;;  %v1543_v25 = vmax.f32 %v1541_v13, %v1542_v20 }
 0x105   : > { %v1547_v24 = vmax.f32 %v1462_v14, %v1546_v16  ;;  %v1552_v26 = vrot.slane %v1463_v21, 4  ;;  %v1456_v28 = vsel %vm1424_vm3, %v1408_v15, %v1440_v23 }
 0x106   : > { %v1582_v19 = vsel %vm1581_vm11, %v1573_v10, %v1574_v12  ;;  %v1544_v5 = vrot.slane %v1543_v25, 1  ;;  %v1464_v35 = vmax.f32 %v1448_v27, %v1456_v28 }
 0x107   : > { %v1584_v22 = vsel %vm1583_vm13, %v1580_v1, %v1582_v19  ;;  %v1548_v43 = vrot.slane %v1547_v24, 2  ;;  %v1553_v29 = vmax.f32 %v1463_v21, %v1552_v26 }
 0x108   : > { %v1545_v36 = vmax.f32 %v1543_v25, %v1544_v5  ;;  %v1558_v41 = vrot.slane %v1464_v35, 4 }
 0x109   : > { %v1549_v38 = vmax.f32 %v1547_v24, %v1548_v43  ;;  %v1554_v39 = vrot.slane %v1553_v29, 2 }
 0x10a   : > { %v1559_v42 = vmax.f32 %v1464_v35, %v1558_v41  ;;  %v1575_v44 = vrot.slane %v1545_v36, 4 }
 0x10b   : > { %v1550_v51 = vrot.slane %v1549_v38, 1  ;;  %v1555_v3 = vmax.f32 %v1553_v29, %v1554_v39 }
 0x10c   : > { %v1560_v32 = vrot.slane %v1559_v42, 2 }
 0x10d   : > { %v1551_v45 = vmax.f32 %v1549_v38, %v1550_v51  ;;  %v1556_v47 = vrot.slane %v1555_v3, 1 }
 0x10e   : > { %v1561_v52 = vmax.f32 %v1559_v42, %v1560_v32 }
 0x10f   : > { %v1576_v48 = vrot.slane %v1551_v45, 3  ;;  %v1557_v37 = vmax.f32 %v1555_v3, %v1556_v47 }
 0x110   : > { %v1562_v54 = vrot.slane %v1561_v52, 1 }
 0x111   : > { %v1586_v34 = vsel %vm1585_vm4, %v1575_v44, %v1576_v48  ;;  %v1577_v55 = vrot.slane %v1557_v37, 2 }
 0x112   : > { %v1563_v33 = vmax.f32 %v1561_v52, %v1562_v54 }
 0x114   : > { %v1578_v56 = vrot.slane %v1563_v33, 1 }
 0x116   : > { %v1588_v30 = vsel %vm1587_vm5, %v1577_v55, %v1578_v56 }
 0x117   : > { %v1590_v57 = vsel %vm1589_vm6, %v1586_v34, %v1588_v30 }
 0x118   : > { %v1592_v46 = vsel %vm1591_vm7, %v1584_v22, %v1590_v57 }
 0x119   : > { %1594 = vst [vmem:[%s414_s22] sm:$0xff] %v1592_v46 }
 0x11a PF: > { %s17_s26 = sadd.s32 1, %s2299_s26   ;;  %s3078_s24 = smov %s2295_s25 }
 0x11b   : > { %p14_p5 = scmp.ge.s32.totalorder %s17_s26, 4   ;;  %s3079_s25 = smov %s3081_s27 }
 0x11d   :  { %16 = sbr.rel (!%p14_p5) target bundleno = 2 (0x2), region = 96 }

// kernel: _lambda_.13
= control target key start
LH: loop header
LB: loop body
LE: loop exit
PB: predicated region body
PF: predicated region fallthrough
CT: control target
= control target key end

     0   :  { %s2570_s0 = inlined_call_operand.vmem [shape: bf16[2,16,64], index: 0, kind: input, shape index: {}]   ;;  %s2571_s1 = inlined_call_operand.vmem [shape: bf16[2,16,64], index: 1, kind: input, shape index: {}]   ;;  %s2572_s2 = inlined_call_operand.vmem [shape: bf16[2,16,64], index: 2, kind: input, shape index: {}]   ;;  %s2573_s3 = inlined_call_operand.vmem [shape: f32[2,1,256], index: 3, kind: input, shape index: {}]   ;;  %s2574_s4 = inlined_call_operand.vmem [shape: bf16[64,256], index: 4, kind: input, shape index: {}]   ;;  %s2575_s5 = inlined_call_operand.vmem [shape: bf16[64,256], index: 5, kind: input, shape index: {}]   ;;  %s2576_s6 = inlined_call_operand.vmem [shape: bf16[64,256], index: 6, kind: input, shape index: {}]   ;;  %s2577_s7 = inlined_call_operand.vmem [shape: f32[1,256], index: 7, kind: input, shape index: {}, may-alias: {7,9}]   ;;  %s2578_s8 = inlined_call_operand.vmem [shape: bf16[256,256], index: 8, kind: input, shape index: {}]   ;;  %s2579_s9 = inlined_call_operand.vmem [shape: f32[1,256], index: 9, kind: input, shape index: {}, may-alias: {7,9}]   ;;  %s2580_s10 = inlined_call_operand.vmem [shape: bf16[256,128], index: 10, kind: input, shape index: {}]   ;;  %s2581_s11 = inlined_call_operand.vmem [shape: f32[1,128], index: 11, kind: input, shape index: {}]   ;;  %s2582_s12 = inlined_call_operand.vmem [shape: bf16[8,128], index: 12, kind: input, shape index: {}]   ;;  %s2583_s13 = inlined_call_operand.hbm [shape: f32[2,8,16], index: 13, kind: output, shape index: {}]  }
   0x1   :  { %2588 = sst [smem:[#allocation10_spill]] %s2574_s4 }
   0x2   :  { %2589 = sst [smem:[#allocation11_spill]] %s2575_s5 }
   0x3   :  { %18 = vsyncpa [#allocation3], 0 }
   0x4   :  { %20 = vsyncpa [#allocation3 + $0x1], 0  ;;  %s2053_s25 = smov 0   ;;  %s2055_s26 = smov 0  }
   0x5   :  { %s2057_s27 = smov 0   ;;  %s2059_s28 = smov 0  }
   0x6   :  { %s2061_s29 = smov 0   ;;  %s2063_s30 = smov 0  }
   0x7 LB: > { %2590 = sst [smem:[#allocation5_spill]] %s1969_s27  ;;  %s1446_s14 = sadd.s32 4294967295, %s1981_s30   ;;  %s1981_s30 = sphi %s2063_s30, %s26_s30   ;;  %s1977_s29 = sphi %s2061_s29, %s2603_s29   ;;  %s1973_s28 = sphi %s2059_s28, %s2602_s28   ;;  %s1969_s27 = sphi %s2057_s27, %s2601_s27   ;;  %s1965_s26 = sphi %s2055_s26, %s2605_s26   ;;  %s1961_s25 = sphi %s2053_s25, %s2604_s25  }
   0x8   : > { %2591 = sst [smem:[#allocation6_spill]] %s1977_s29  ;;  %s1447_s15 = sadd.s32 4294967294, %s1981_s30  }
   0x9   : > { %s38_s16 = sadd.s32 1, %s1977_s29  ;;  %s346_s17 = sadd.s32 1, %s1969_s27 }
   0xa   : > { %p40_p0 = scmp.ge.s32.totalorder %s38_s16, 2  ;;  %p356_p1 = scmp.ne.s32.totalorder %s1969_s27, %s1965_s26 }
   0xb   : > { %p357_p2 = scmp.eq.s32.totalorder %s1446_s14, 1  ;;  %p362_p3 = scmp.ne.s32.totalorder %s1965_s26, %s1961_s25 }
   0xc   : > { %s2607_s16 = smov (%p40_p0, %s38_s16), 0  ;;  %p363_p5 = scmp.eq.s32.totalorder %s1447_s15, 1 }
   0xd   : > { %2592 = sst [smem:[#allocation7_spill]] %s2607_s16  ;;  %p2093_p4 = por %p357_p2, %p356_p1 }
   0xe   : > { %s341_s19 = ssub.s32 %s1977_s29, %s2607_s16  ;;  %p1450_p6 = scmp.ge.s32.totalorder %s1981_s30, 1 }
   0xf   : > { %p344_p7 = scmp.eq.s32.totalorder %s341_s19, 0  ;;  %p2100_p8 = por %p363_p5, %p362_p3 }
  0x10   : > { %p454_p9 = scmp.lt.s32.totalorder %s1981_s30, 3 }
  0x11   : > { %s2594_s20 = scalar_select %p2100_p8, 1, 0 }
  0x12   : > { %s2106_s21 = scalar_select %p344_p7, %s1969_s27, %s346_s17  }
  0x13   : > { %2595 = sst [smem:[#allocation8_spill]] %s2594_s20  ;;  %p455_p10 = pnand %p1450_p6, %p454_p9 }
  0x14   : > { %2596 = sst [smem:[#allocation9_spill]] %s2106_s21  ;;  %p525_p11 = scmp.lt.s32.totalorder (!%p455_p10), %s1973_s28, 1 }
  0x15   : > { %458 = sbr.rel (%p455_p10) target bundleno = 645 (0x285), region = 72  ;;  %s2597_s5 = sld [smem:[#allocation11_spill]] (!%p455_p10) }
  0x16   : > { %s2598_s4 = sld [smem:[#allocation10_spill]] (!%p455_p10)  ;;  %s1766_s29 = sshll.u32 (!%p455_p10), %s1973_s28, 3 }
  0x17   : > { %s1319_s17 = scalar_lea.hbm (!%p455_p10), %s2583_s13, %s1766_s29 }
  0x1a   : > { %v1565_v45 = vld [vmem:[%s2576_s6 + $0x30] sm:$0xf]  ;;  %v1798_v46 = vld [vmem:[%s2576_s6 + $0x34] sm:$0xf0]  ;;  %v1797_v47 = vld [vmem:[%s2576_s6 + $0x34] sm:$0xf] }
  0x1b   : > { %v1489_v0 = vld [vmem:[%s2597_s5 + $0x30] sm:$0xf]  ;;  %v1789_v1 = vld [vmem:[%s2597_s5 + $0x34] sm:$0xf0]  ;;  %v1788_v2 = vld [vmem:[%s2597_s5 + $0x34] sm:$0xf]  ;;  %v1566_v52 = vor.u32 %v1798_v46, %v1565_v45 }
  0x1c   : > { %v1490_v3 = vor.u32 %v1789_v1, %v1489_v0  ;;  %v1491_v4 = vld [vmem:[%s2597_s5 + $0x38] sm:$0xf0]  ;;  %v1527_v5 = vld [vmem:[%s2598_s4 + $0x30] sm:$0xf]  ;;  %v1780_v6 = vld [vmem:[%s2598_s4 + $0x34] sm:$0xf0] }
  0x1d   : > { %v1494_v7 = vor.u32 %v1788_v2, %v1491_v4  ;;  %v1528_v8 = vor.u32 %v1780_v6, %v1527_v5  ;;  %v1779_v9 = vld [vmem:[%s2598_s4 + $0x34] sm:$0xf]  ;;  %v1529_v10 = vld [vmem:[%s2598_s4 + $0x38] sm:$0xf0]  ;;  %v1481_v11 = vld [vmem:[%s2597_s5 + $0x20] sm:$0xf] }
  0x1e   : > { %632 = vmatpush.bf16.msra.mxu0 %v1490_v3  ;;  %v1532_v12 = vor.u32 %v1779_v9, %v1529_v10  ;;  %v1787_v13 = vld [vmem:[%s2597_s5 + $0x24] sm:$0xf0]  ;;  %v1786_v14 = vld [vmem:[%s2597_s5 + $0x24] sm:$0xf]  ;;  %v1483_v15 = vld [vmem:[%s2597_s5 + $0x28] sm:$0xf0] }
  0x1f   : > { %646 = vmatpush.bf16.msra.mxu1 %v1494_v7  ;;  %708 = vmatpush.bf16.msra.mxu2 %v1528_v8  ;;  %v1482_v16 = vor.u32 %v1787_v13, %v1481_v11  ;;  %v1486_v17 = vor.u32 %v1786_v14, %v1483_v15  ;;  %v1519_v18 = vld [vmem:[%s2598_s4 + $0x20] sm:$0xf]  ;;  %v1778_v19 = vld [vmem:[%s2598_s4 + $0x24] sm:$0xf0]  ;;  %v1777_v20 = vld [vmem:[%s2598_s4 + $0x24] sm:$0xf] }
  0x20   : > { %722 = vmatpush.bf16.msra.mxu3 %v1532_v12  ;;  %v1520_v21 = vor.u32 %v1778_v19, %v1519_v18  ;;  %v1521_v22 = vld [vmem:[%s2598_s4 + $0x28] sm:$0xf0]  ;;  %v1473_v23 = vld [vmem:[%s2597_s5 + $0x10] sm:$0xf]  ;;  %v1785_v24 = vld [vmem:[%s2597_s5 + $0x14] sm:$0xf0] }
  0x21   : > { %v1524_v25 = vor.u32 %v1777_v20, %v1521_v22  ;;  %v1784_v26 = vld [vmem:[%s2597_s5 + $0x14] sm:$0xf]  ;;  %v1475_v27 = vld [vmem:[%s2597_s5 + $0x18] sm:$0xf0]  ;;  %v1511_v28 = vld [vmem:[%s2598_s4 + $0x10] sm:$0xf]  ;;  %v1474_v29 = vor.u32 %v1785_v24, %v1473_v23 }
  0x22   : > { %633 = vmatpush.bf16.msra.mxu0 %v1482_v16  ;;  %v1776_v30 = vld [vmem:[%s2598_s4 + $0x14] sm:$0xf0]  ;;  %v1775_v31 = vld [vmem:[%s2598_s4 + $0x14] sm:$0xf]  ;;  %v1513_v32 = vld [vmem:[%s2598_s4 + $0x18] sm:$0xf0]  ;;  %v1478_v33 = vor.u32 %v1784_v26, %v1475_v27 }
  0x23   : > { %647 = vmatpush.bf16.msra.mxu1 %v1486_v17  ;;  %709 = vmatpush.bf16.msra.mxu2 %v1520_v21  ;;  %v1512_v34 = vor.u32 %v1776_v30, %v1511_v28  ;;  %v1465_v35 = vld [vmem:[%s2597_s5] sm:$0xf]  ;;  %v1783_v36 = vld [vmem:[%s2597_s5 + $0x4] sm:$0xf0]  ;;  %v1782_v37 = vld [vmem:[%s2597_s5 + $0x4] sm:$0xf]  ;;  %v1516_v38 = vor.u32 %v1775_v31, %v1513_v32 }
  0x24   : > { %723 = vmatpush.bf16.msra.mxu3 %v1524_v25  ;;  %v1467_v39 = vld [vmem:[%s2597_s5 + $0x8] sm:$0xf0]  ;;  %v1503_v40 = vld [vmem:[%s2598_s4] sm:$0xf]  ;;  %v1774_v41 = vld [vmem:[%s2598_s4 + $0x4] sm:$0xf0]  ;;  %v1466_v44 = vor.u32 %v1783_v36, %v1465_v35 }
  0x25   : > { %v1773_v42 = vld [vmem:[%s2598_s4 + $0x4] sm:$0xf]  ;;  %v1505_v43 = vld [vmem:[%s2598_s4 + $0x8] sm:$0xf0]  ;;  %v1470_v48 = vor.u32 %v1782_v37, %v1467_v39  ;;  %v1504_v49 = vor.u32 %v1774_v41, %v1503_v40  ;;  %s2215_s14 = scalar_select %p525_p11, %s1973_s28, 1  ;;  %vm624_vm0 = vcmask 523264  }
  0x26   : > { %634 = vmatpush.bf16.msra.mxu0 %v1474_v29  ;;  %v1567_v50 = vld [vmem:[%s2576_s6 + $0x38] sm:$0xf0]  ;;  %v1508_v51 = vor.u32 %v1773_v42, %v1505_v43  ;;  %v1557_v54 = vld [vmem:[%s2576_s6 + $0x20] sm:$0xf]  ;;  %v1796_v55 = vld [vmem:[%s2576_s6 + $0x24] sm:$0xf0] }
  0x27   : > { %648 = vmatpush.bf16.msra.mxu1 %v1478_v33  ;;  %710 = vmatpush.bf16.msra.mxu2 %v1512_v34  ;;  %s2221_s21 = sshll.u32 %s2215_s14, 3  ;;  %v1570_v53 = vor.u32 %v1797_v47, %v1567_v50  ;;  %v1795_v56 = vld [vmem:[%s2576_s6 + $0x24] sm:$0xf]  ;;  %v1559_v57 = vld [vmem:[%s2576_s6 + $0x28] sm:$0xf0]  ;;  %v1558_v60 = vor.u32 %v1796_v55, %v1557_v54  ;;  %s1323_s5 = sshll.u32 %s1319_s17, 4  ;;  %s1324_s5 = int_to_ptr.hbm [resolvable:$true] %s1323_s5 }
  0x28   : > { %724 = vmatpush.bf16.msra.mxu3 %v1516_v38  ;;  %s542_s16 = scalar_lea.vmem %s2571_s1, %s2221_s21  ;;  %s532_s4 = scalar_lea.vmem %s2570_s0, %s2221_s21  ;;  %v1562_v61 = vor.u32 %v1795_v56, %v1559_v57  ;;  %v1549_v62 = vld [vmem:[%s2576_s6 + $0x10] sm:$0xf]  ;;  %v1794_v63 = vld [vmem:[%s2576_s6 + $0x14] sm:$0xf0]  ;;  %v1793_v0 = vld [vmem:[%s2576_s6 + $0x14] sm:$0xf] }
  0x29   : > { %v1781_v58 = vld [vmem:[%s542_s16] sm:$0xff]  ;;  %v1551_v1 = vld [vmem:[%s2576_s6 + $0x18] sm:$0xf0]  ;;  %v1550_v2 = vor.u32 %v1794_v63, %v1549_v62  ;;  %v1792_v5 = vld [vmem:[%s2576_s6 + $0x4] sm:$0xf0]  ;;  %s552_s24 = scalar_lea.vmem %s2572_s2, %s2221_s21  ;;  %s1458_s21 = sshll.u32 %s2215_s14, 1 }
  0x2a   : > { %635 = vmatpush.bf16.msra.mxu0 %v1466_v44  ;;  %v1772_v59 = vld [vmem:[%s532_s4] sm:$0xff]  ;;  %v1554_v3 = vor.u32 %v1793_v0, %v1551_v1  ;;  %v1543_v7 = vld [vmem:[%s2576_s6 + $0x8] sm:$0xf0]  ;;  %v1631_v11 = vld [vmem:[%s2578_s8 + $0x70] sm:$0xf]  ;;  %s557_s20 = scalar_lea.vmem %s2573_s3, %s1458_s21  ;;  %s521_s14 = sand.u32 1, %s1965_s26  }
  0x2b   : > { %649 = vmatpush.bf16.msra.mxu1 %v1470_v48  ;;  %711 = vmatpush.bf16.msra.mxu2 %v1504_v49  ;;  %v1541_v4 = vld [vmem:[%s2576_s6] sm:$0xf]  ;;  %v1791_v6 = vld [vmem:[%s2576_s6 + $0x4] sm:$0xf]  ;;  %v1814_v12 = vld [vmem:[%s2578_s8 + $0x74] sm:$0xf0] }
  0x2c   : > { %725 = vmatpush.bf16.msra.mxu3 %v1508_v51  ;;  %v1542_v8 = vor.u32 %v1792_v5, %v1541_v4  ;;  %v1546_v9 = vor.u32 %v1791_v6, %v1543_v7  ;;  %v1790_v10 = vld [vmem:[%s552_s24] sm:$0xff]  ;;  %v1695_v13 = vld [vmem:[%s2578_s8 + $0xf0] sm:$0xf]  ;;  %v1632_v14 = vor.u32 %v1814_v12, %v1631_v11  ;;  %v1830_v15 = vld [vmem:[%s2578_s8 + $0xf4] sm:$0xf0]  ;;  %s1451_s15 = sshll.u32 %s521_s14, 3 }
  0x2d   : > { %1495 = vmatmul.msk.bf16.vlgmr.msra.gmra.mxu0 %vm624_vm0, %v1781_v58  ;;  %v1813_v16 = vld [vmem:[%s2578_s8 + $0x74] sm:$0xf]  ;;  %v1633_v17 = vld [vmem:[%s2578_s8 + $0x78] sm:$0xf0]  ;;  %v1696_v18 = vor.u32 %v1830_v15, %v1695_v13  ;;  %v1623_v23 = vld [vmem:[%s2578_s8 + $0x60] sm:$0xf] }
  0x2e   : > { %794 = vmatpush.bf16.msrb.mxu0 %v1566_v52  ;;  %1496 = vmatmul.msk.bf16.vlgmr.msra.gmra.mxu1 %vm624_vm0, %v1781_v58  ;;  %v1636_v19 = vor.u32 %v1813_v16, %v1633_v17  ;;  %v1829_v20 = vld [vmem:[%s2578_s8 + $0xf4] sm:$0xf]  ;;  %v1697_v21 = vld [vmem:[%s2578_s8 + $0xf8] sm:$0xf0]  ;;  %v1812_v24 = vld [vmem:[%s2578_s8 + $0x64] sm:$0xf0] }
  0x2f   : > { %808 = vmatpush.bf16.msrb.mxu1 %v1570_v53  ;;  %1533 = vmatmul.msk.bf16.vlgmr.msra.gmra.mxu2 %vm624_vm0, %v1772_v59  ;;  %v1700_v22 = vor.u32 %v1829_v20, %v1697_v21  ;;  %v1687_v25 = vld [vmem:[%s2578_s8 + $0xe0] sm:$0xf]  ;;  %v1624_v26 = vor.u32 %v1812_v24, %v1623_v23  ;;  %v1828_v27 = vld [vmem:[%s2578_s8 + $0xe4] sm:$0xf0]  ;;  %v1811_v28 = vld [vmem:[%s2578_s8 + $0x64] sm:$0xf] }
  0x30   : > { %1534 = vmatmul.msk.bf16.vlgmr.msra.gmra.mxu3 %vm624_vm0, %v1772_v59  ;;  %1054 = vmatpush.bf16.msrb.mxu2 %v1632_v14  ;;  %v1625_v29 = vld [vmem:[%s2578_s8 + $0x68] sm:$0xf0]  ;;  %v1688_v30 = vor.u32 %v1828_v27, %v1687_v25  ;;  %v1827_v32 = vld [vmem:[%s2578_s8 + $0xe4] sm:$0xf]  ;;  %v1615_v34 = vld [vmem:[%s2578_s8 + $0x50] sm:$0xf] }
  0x31   : > { %1068 = vmatpush.bf16.msrb.mxu3 %v1696_v18  ;;  %v1628_v31 = vor.u32 %v1811_v28, %v1625_v29  ;;  %v1689_v33 = vld [vmem:[%s2578_s8 + $0xe8] sm:$0xf0]  ;;  %v1810_v36 = vld [vmem:[%s2578_s8 + $0x54] sm:$0xf0]  ;;  %v1679_v37 = vld [vmem:[%s2578_s8 + $0xd0] sm:$0xf] }
  0x32   : > { %795 = vmatpush.bf16.msrb.mxu0 %v1558_v60  ;;  %v1692_v35 = vor.u32 %v1827_v32, %v1689_v33  ;;  %v1826_v38 = vld [vmem:[%s2578_s8 + $0xd4] sm:$0xf0]  ;;  %v1616_v39 = vor.u32 %v1810_v36, %v1615_v34  ;;  %v1809_v41 = vld [vmem:[%s2578_s8 + $0x54] sm:$0xf]  ;;  %v1617_v42 = vld [vmem:[%s2578_s8 + $0x58] sm:$0xf0] }
  0x33   : > { %809 = vmatpush.bf16.msrb.mxu1 %v1562_v61  ;;  %v1680_v40 = vor.u32 %v1826_v38, %v1679_v37  ;;  %v1825_v43 = vld [vmem:[%s2578_s8 + $0xd4] sm:$0xf]  ;;  %v1620_v44 = vor.u32 %v1809_v41, %v1617_v42  ;;  %v1681_v45 = vld [vmem:[%s2578_s8 + $0xd8] sm:$0xf0]  ;;  %v1607_v47 = vld [vmem:[%s2578_s8 + $0x40] sm:$0xf] }
  0x34   : > { %1055 = vmatpush.bf16.msrb.mxu2 %v1624_v26  ;;  %v1684_v46 = vor.u32 %v1825_v43, %v1681_v45  ;;  %v1808_v48 = vld [vmem:[%s2578_s8 + $0x44] sm:$0xf0]  ;;  %v1671_v49 = vld [vmem:[%s2578_s8 + $0xc0] sm:$0xf]  ;;  %v1807_v52 = vld [vmem:[%s2578_s8 + $0x44] sm:$0xf] }
  0x35   : > { %1069 = vmatpush.bf16.msrb.mxu3 %v1688_v30  ;;  %v1608_v50 = vor.u32 %v1808_v48, %v1607_v47  ;;  %v1824_v51 = vld [vmem:[%s2578_s8 + $0xc4] sm:$0xf0]  ;;  %v1609_v54 = vld [vmem:[%s2578_s8 + $0x48] sm:$0xf0]  ;;  %v1823_v55 = vld [vmem:[%s2578_s8 + $0xc4] sm:$0xf] }
  0x36   : > { %796 = vmatpush.bf16.msrb.mxu0 %v1550_v2  ;;  %v1672_v53 = vor.u32 %v1824_v51, %v1671_v49  ;;  %v1612_v56 = vor.u32 %v1807_v52, %v1609_v54  ;;  %v1673_v57 = vld [vmem:[%s2578_s8 + $0xc8] sm:$0xf0]  ;;  %v1599_v59 = vld [vmem:[%s2578_s8 + $0x30] sm:$0xf]  ;;  %v1806_v60 = vld [vmem:[%s2578_s8 + $0x34] sm:$0xf0] }
  0x37   : > { %810 = vmatpush.bf16.msrb.mxu1 %v1554_v3  ;;  %v1676_v58 = vor.u32 %v1823_v55, %v1673_v57  ;;  %v1600_v61 = vor.u32 %v1806_v60, %v1599_v59  ;;  %v1663_v62 = vld [vmem:[%s2578_s8 + $0xb0] sm:$0xf]  ;;  %v1822_v63 = vld [vmem:[%s2578_s8 + $0xb4] sm:$0xf0]  ;;  %v1805_v1 = vld [vmem:[%s2578_s8 + $0x34] sm:$0xf] }
  0x38   : > { %1056 = vmatpush.bf16.msrb.mxu2 %v1616_v39  ;;  %v1664_v0 = vor.u32 %v1822_v63, %v1663_v62  ;;  %v1601_v2 = vld [vmem:[%s2578_s8 + $0x38] sm:$0xf0]  ;;  %v1821_v3 = vld [vmem:[%s2578_s8 + $0xb4] sm:$0xf]  ;;  %v1591_v7 = vld [vmem:[%s2578_s8 + $0x20] sm:$0xf] }
  0x39   : > { %1070 = vmatpush.bf16.msrb.mxu3 %v1680_v40  ;;  %v1604_v4 = vor.u32 %v1805_v1, %v1601_v2  ;;  %v1665_v5 = vld [vmem:[%s2578_s8 + $0xb8] sm:$0xf0]  ;;  %v1820_v11 = vld [vmem:[%s2578_s8 + $0xa4] sm:$0xf0]  ;;  %v1803_v12 = vld [vmem:[%s2578_s8 + $0x24] sm:$0xf] }
  0x3a   : > { %797 = vmatpush.bf16.msrb.mxu0 %v1542_v8  ;;  %v1668_v6 = vor.u32 %v1821_v3, %v1665_v5  ;;  %v1804_v8 = vld [vmem:[%s2578_s8 + $0x24] sm:$0xf0]  ;;  %v1593_v13 = vld [vmem:[%s2578_s8 + $0x28] sm:$0xf0]  ;;  %v1819_v16 = vld [vmem:[%s2578_s8 + $0xa4] sm:$0xf] }
  0x3b   : > { %811 = vmatpush.bf16.msrb.mxu1 %v1546_v9  ;;  %v1655_v9 = vld [vmem:[%s2578_s8 + $0xa0] sm:$0xf]  ;;  %v1596_v15 = vor.u32 %v1803_v12, %v1593_v13  ;;  %v1657_v17 = vld [vmem:[%s2578_s8 + $0xa8] sm:$0xf0]  ;;  %v1802_v20 = vld [vmem:[%s2578_s8 + $0x14] sm:$0xf0] }
  0x3c   : > { %1057 = vmatpush.bf16.msrb.mxu2 %v1608_v50  ;;  %v1656_v14 = vor.u32 %v1820_v11, %v1655_v9  ;;  %v1660_v18 = vor.u32 %v1819_v16, %v1657_v17  ;;  %v1647_v21 = vld [vmem:[%s2578_s8 + $0x90] sm:$0xf]  ;;  %v1818_v23 = vld [vmem:[%s2578_s8 + $0x94] sm:$0xf0]  ;;  %v1801_v24 = vld [vmem:[%s2578_s8 + $0x14] sm:$0xf] }
  0x3d   : > { %1571 = vmatmul.msk.bf16.vlgmr.msrb.gmra.mxu0 %vm624_vm0, %v1790_v10  ;;  %1071 = vmatpush.bf16.msrb.mxu3 %v1672_v53  ;;  %v1585_v25 = vld [vmem:[%s2578_s8 + $0x18] sm:$0xf0]  ;;  %v1648_v26 = vor.u32 %v1818_v23, %v1647_v21  ;;  %v1817_v28 = vld [vmem:[%s2578_s8 + $0x94] sm:$0xf]  ;;  %v1575_v32 = vld [vmem:[%s2578_s8] sm:$0xf] }
  0x3e   : > { %1572 = vmatmul.msk.bf16.vlgmr.msrb.gmra.mxu1 %vm624_vm0, %v1790_v10  ;;  %1082 = vmatpush.bf16.msra.mxu0 %v1636_v19  ;;  %v1592_v10 = vor.u32 %v1804_v8, %v1591_v7  ;;  %v1583_v19 = vld [vmem:[%s2578_s8 + $0x10] sm:$0xf]  ;;  %v1588_v27 = vor.u32 %v1801_v24, %v1585_v25  ;;  %v1649_v29 = vld [vmem:[%s2578_s8 + $0x98] sm:$0xf0]  ;;  %v1800_v33 = vld [vmem:[%s2578_s8 + $0x4] sm:$0xf0] }
  0x3f   : > { %1096 = vmatpush.bf16.msra.mxu1 %v1700_v22  ;;  %v1584_v22 = vor.u32 %v1802_v20, %v1583_v19  ;;  %v1652_v30 = vor.u32 %v1817_v28, %v1649_v29  ;;  %v1639_v34 = vld [vmem:[%s2578_s8 + $0x80] sm:$0xf]  ;;  %v1576_v36 = vor.u32 %v1800_v33, %v1575_v32  ;;  %v1816_v37 = vld [vmem:[%s2578_s8 + $0x84] sm:$0xf0]  ;;  %v1799_v38 = vld [vmem:[%s2578_s8 + $0x4] sm:$0xf] }
  0x40   : > { %1058 = vmatpush.bf16.msrb.mxu2 %v1600_v61  ;;  %v1577_v39 = vld [vmem:[%s2578_s8 + $0x8] sm:$0xf0]  ;;  %v1640_v40 = vor.u32 %v1816_v37, %v1639_v34  ;;  %v1815_v42 = vld [vmem:[%s2578_s8 + $0x84] sm:$0xf]  ;;  %v1846_v45 = vld [vmem:[%s2580_s10 + $0x78] sm:$0xff]  ;;  %s523_s21 = scalar_lea.vmem [#allocation2], %s1451_s15 }
  0x41   : > { %1072 = vmatpush.bf16.msrb.mxu3 %v1664_v0  ;;  %v1580_v41 = vor.u32 %v1799_v38, %v1577_v39  ;;  %v1641_v43 = vld [vmem:[%s2578_s8 + $0x88] sm:$0xf0]  ;;  %v1845_v47 = vld [vmem:[%s2580_s10 + $0x70] sm:$0xff]  ;;  %v822_v54 = vld [vmem:[%s557_s20] sm:$0x3]  ;;  %s1321_s22 = sshll.u32 %s523_s21, 4  ;;  %s1322_s22 = int_to_ptr.vmem [resolvable:$true] %s1321_s22 }
  0x42   : > { %1083 = vmatpush.bf16.msra.mxu0 %v1628_v31  ;;  %v1837_v48 = vld [vmem:[%s2580_s10 + $0x30] sm:$0xff]  ;;  %v1844_v53 = vld [vmem:[%s2580_s10 + $0x68] sm:$0xff]  ;;  %v824_v60 = vperm.slane %v822_v54, 0  ;;  %v832_v62 = vld [vmem:[%s2577_s7] sm:$0x3]  ;;  %v825_v0 = vperm.slane %v822_v54, 1 }
  0x43   : > { %1097 = vmatpush.bf16.msra.mxu1 %v1692_v35  ;;  %v1836_v29 = vld [vmem:[%s2580_s10 + $0x28] sm:$0xff]  ;;  %v1841_v32 = vld [vmem:[%s2580_s10 + $0x50] sm:$0xff]  ;;  %v1834_v33 = vld [vmem:[%s2580_s10 + $0x18] sm:$0xff]  ;;  %vm1305_vm11 = vcmask 130048   ;;  %s1308_s20 = scalar_lea.sflag [#allocation3], %s521_s14  ;;  %s1917_s4 = sshra.s32 %s1324_s5, 4  ;;  %s1918_s4 = int_to_ptr.hbm [resolvable:$true] %s1917_s4 }
  0x44   : > { %1059 = vmatpush.bf16.msrb.mxu2 %v1592_v10  ;;  %v1840_v34 = vld [vmem:[%s2580_s10 + $0x48] sm:$0xff]  ;;  %v1831_v38 = vld [vmem:[%s2580_s10] sm:$0xff]  ;;  %s1919_s23 = scalar_lea.hbm %s1918_s4, 8  ;;  %s1923_s16 = scalar_lea.hbm %s2583_s13, 16 }
  0x45   : > { %1073 = vmatpush.bf16.msrb.mxu3 %v1656_v14  ;;  %v1832_v37 = vld [vmem:[%s2580_s10 + $0x8] sm:$0xff]  ;;  %v888_v39 = vld [vmem:[%s2579_s9] sm:$0x3]  ;;  %p1920_p12 = scmp.ne.s32.totalorder %s1918_s4, %s1919_s23  ;;  %p1924_p1 = scmp.lt.s32.totalorder %s1918_s4, %s2583_s13 }
  0x46   : > { %1084 = vmatpush.bf16.msra.mxu0 %v1620_v44  ;;  %v1644_v44 = vor.u32 %v1815_v42, %v1641_v43  ;;  %p1925_p2 = scmp.lt.s32.totalorder %s1923_s16, %s1919_s23 }
  0x47   : > { %1098 = vmatpush.bf16.msra.mxu1 %v1684_v46  ;;  %v1838_v46 = vld [vmem:[%s2580_s10 + $0x38] sm:$0xff]  ;;  %p1921_p13 = pnand %p1920_p12, %p2093_p4 }
  0x48   : > { %1060 = vmatpush.bf16.msrb.mxu2 %v1584_v22  ;;  %p1926_p3 = por %p1925_p2, %p1924_p1 }
  0x49   : > { %1074 = vmatpush.bf16.msrb.mxu3 %v1648_v26  ;;  %p1922_p0 = pneg %p1921_p13 }
  0x4a   : > { %1085 = vmatpush.bf16.msra.mxu0 %v1612_v56  ;;  %v1843_v56 = vld [vmem:[%s2580_s10 + $0x60] sm:$0xff] }
  0x4b   : > { %1099 = vmatpush.bf16.msra.mxu1 %v1676_v58  ;;  %p1927_p5 = pnand %p1926_p3, %p1922_p0 }
  0x4c   : > { %1061 = vmatpush.bf16.msrb.mxu2 %v1576_v36  ;;  %v1839_v36 = vld [vmem:[%s2580_s10 + $0x40] sm:$0xff] }
  0x4d   : > { %1075 = vmatpush.bf16.msrb.mxu3 %v1640_v40  ;;  %v891_v40 = vperm.slane %v888_v39, 1 }
  0x4e   : > { %1086 = vmatpush.bf16.msra.mxu0 %v1604_v4  ;;  %v834_v4 = vperm.slane %v832_v62, 0 }
  0x4f   : > { %1100 = vmatpush.bf16.msra.mxu1 %v1668_v6  ;;  %v835_v6 = vperm.slane %v832_v62, 1 }
  0x50   : > { %1256 = vmatpush.bf16.msra.mxu2 %v1838_v46 }
  0x51   : > { %1270 = vmatpush.bf16.msra.mxu3 %v1846_v45 }
  0x52   : > { %1087 = vmatpush.bf16.msra.mxu0 %v1596_v15 }
  0x53   : > { %1101 = vmatpush.bf16.msra.mxu1 %v1660_v18 }
  0x54   : > { %1257 = vmatpush.bf16.msra.mxu2 %v1837_v48 }
  0x55   : > { %1271 = vmatpush.bf16.msra.mxu3 %v1845_v47 }
  0x56   : > { %1088 = vmatpush.bf16.msra.mxu0 %v1588_v27 }
  0x57   : > { %1102 = vmatpush.bf16.msra.mxu1 %v1652_v30  ;;  %v1842_v30 = vld [vmem:[%s2580_s10 + $0x58] sm:$0xff] }
  0x58   : > { %1258 = vmatpush.bf16.msra.mxu2 %v1836_v29 }
  0x59   : > { %1272 = vmatpush.bf16.msra.mxu3 %v1844_v53 }
  0x5a   : > { %1089 = vmatpush.bf16.msra.mxu0 %v1580_v41 }
  0x5b   : > { %1103 = vmatpush.bf16.msra.mxu1 %v1644_v44  ;;  %v890_v44 = vperm.slane %v888_v39, 0 }
  0x5d   : > { %1273 = vmatpush.bf16.msra.mxu3 %v1843_v56 }
  0x61   : > { %1274 = vmatpush.bf16.msra.mxu3 %v1842_v30 }
  0x65   : > { %1275 = vmatpush.bf16.msra.mxu3 %v1841_v32 }
  0x69   : > { %1276 = vmatpush.bf16.msra.mxu3 %v1840_v34 }
  0x6d   : > { %1277 = vmatpush.bf16.msra.mxu3 %v1839_v36 }
  0xaa   : > { %v637_v31 = vpop.f32.mrf.mxu0 }
  0xab   : > { %v651_v35 = vpop.f32.mrf.mxu1 }
  0xb2   : > { %v639_v49 = vpop.f32.mrf.mxu0  ;;  %v713_v51 = vpop.f32.mrf.mxu2 }
  0xb3   : > { %v653_v50 = vpop.f32.mrf.mxu1  ;;  %v727_v52 = vpop.f32.mrf.mxu3  ;;  %v714_v55 = vadd.f32 %v713_v51, %v637_v31  ;;  %v1835_v31 = vld [vmem:[%s2580_s10 + $0x20] sm:$0xff] }
  0xb4   : > { %v728_v57 = vadd.f32 %v727_v52, %v651_v35  ;;  %1259 = vmatpush.bf16.msra.mxu2 %v1835_v31  ;;  %v1833_v35 = vld [vmem:[%s2580_s10 + $0x10] sm:$0xff] }
  0xb8   : > { %1260 = vmatpush.bf16.msra.mxu2 %v1834_v33 }
  0xba   : > { %v799_v58 = vpop.f32.mrf.mxu0  ;;  %v715_v1 = vpop.f32.mrf.mxu2 }
  0xbb   : > { %v818_v59 = vadd.f32 %v799_v58, %v714_v55  ;;  %v813_v61 = vpop.f32.mrf.mxu1  ;;  %v729_v2 = vpop.f32.mrf.mxu3  ;;  %v716_v7 = vadd.f32 %v715_v1, %v639_v49 }
  0xbc   : > { %v819_v63 = vadd.f32 %v813_v61, %v728_v57  ;;  %v730_v8 = vadd.f32 %v729_v2, %v653_v50  ;;  %1261 = vmatpush.bf16.msra.mxu2 %v1833_v35 }
  0xbd   : > { %v828_v3 = vadd.f32 %v824_v60, %v818_v59 }
  0xbe   : > { %v829_v5 = vadd.f32 %v825_v0, %v819_v63 }
  0xbf   : > { %v838_v10 = vadd.f32 %v834_v4, %v828_v3 }
  0xc0   : > { %v839_v13 = vadd.f32 %v835_v6, %v829_v5  ;;  %1262 = vmatpush.bf16.msra.mxu2 %v1832_v37 }
  0xc1   : > { %v846_v17 = vmul.f32 0.2, %v838_v10  ;;  %vm842_vm1 = vcmp.gt.f32.partialorder %v838_v10, 0.0 }
  0xc2   : > { %v801_v9 = vpop.f32.mrf.mxu0  ;;  %v847_v19 = vmul.f32 0.2, %v839_v13  ;;  %vm843_vm3 = vcmp.gt.f32.partialorder %v839_v13, 0.0 }
  0xc3   : > { %v820_v11 = vadd.f32 %v801_v9, %v716_v7  ;;  %v815_v12 = vpop.f32.mrf.mxu1  ;;  %v850_v23 = vsel %vm842_vm1, %v838_v10, %v846_v17 }
  0xc4   : > { %v821_v14 = vadd.f32 %v815_v12, %v730_v8  ;;  %v851_v26 = vsel %vm843_vm3, %v839_v13, %v847_v19  ;;  %1263 = vmatpush.bf16.msra.mxu2 %v1831_v38 }
  0xc5   : > { %v830_v15 = vadd.f32 %v824_v60, %v820_v11 }
  0xc6   : > { %v831_v16 = vadd.f32 %v825_v0, %v821_v14 }
  0xc7   : > { %v840_v18 = vadd.f32 %v834_v4, %v830_v15  ;;  %v1902_v4 = vld [vmem:[%s2581_s11] ss:$0 sm:$0xff] }
  0xc8   : > { %v841_v20 = vadd.f32 %v835_v6, %v831_v16 }
  0xc9   : > { %v848_v21 = vmul.f32 0.2, %v840_v18  ;;  %vm844_vm2 = vcmp.gt.f32.partialorder %v840_v18, 0.0 }
  0xca   : > { %v849_v22 = vmul.f32 0.2, %v841_v20  ;;  %vm845_vm4 = vcmp.gt.f32.partialorder %v841_v20, 0.0 }
  0xcb   : > { %v852_v24 = vsel %vm844_vm2, %v840_v18, %v848_v21  ;;  %v1291_v18 = vld [vmem:[%s2582_s12] sm:$0xf] }
  0xcc   : > { %v854_v25 = vpack.c.bf16 %v852_v24, %v850_v23  ;;  %v853_v27 = vsel %vm845_vm4, %v841_v20, %v849_v22 }
  0xcd   : > { %v855_v28 = vpack.c.bf16 %v853_v27, %v851_v26 }
  0xce   : > { %1062 = vmatmul.bf16.vlgmr.msrb.gmra.mxu2 %v854_v25  ;;  %1090 = vmatmul.bf16.vlgmr.msra.gmra.mxu0 %v854_v25 }
  0xcf   : > { %1076 = vmatmul.bf16.vlgmr.msrb.gmra.mxu3 %v855_v28  ;;  %1104 = vmatmul.bf16.vlgmr.msra.gmra.mxu1 %v855_v28 }
 0x14b   : > { %v1091_v41 = vpop.f32.mrf.mxu0 }
 0x14c   : > { %v1105_v42 = vpop.f32.mrf.mxu1  ;;  %v1092_v43 = vadd.f32 %v1091_v41, %v891_v40 }
 0x14e   : > { %v1106_v46 = vadd.f32 %v1105_v42, %v1092_v43 }
 0x150   : > { %v1115_v52 = vmul.f32 0.2, %v1106_v46  ;;  %vm1111_vm5 = vcmp.gt.f32.partialorder %v1106_v46, 0.0 }
 0x151   : > { %v1063_v45 = vpop.f32.mrf.mxu2 }
 0x152   : > { %v1077_v47 = vpop.f32.mrf.mxu3  ;;  %v1064_v49 = vadd.f32 %v1063_v45, %v890_v44  ;;  %v1119_v57 = vsel %vm1111_vm5, %v1106_v46, %v1115_v52 }
 0x153   : > { %v1093_v48 = vpop.f32.mrf.mxu0 }
 0x154   : > { %v1094_v50 = vadd.f32 %v1093_v48, %v891_v40  ;;  %v1107_v51 = vpop.f32.mrf.mxu1  ;;  %v1078_v54 = vadd.f32 %v1077_v47, %v1064_v49 }
 0x156   : > { %v1108_v53 = vadd.f32 %v1107_v51, %v1094_v50  ;;  %v1114_v62 = vmul.f32 0.2, %v1078_v54  ;;  %vm1110_vm7 = vcmp.gt.f32.partialorder %v1078_v54, 0.0 }
 0x158   : > { %vm1113_vm6 = vcmp.gt.f32.partialorder %v1108_v53, 0.0  ;;  %v1117_v55 = vmul.f32 0.2, %v1108_v53  ;;  %v1118_v1 = vsel %vm1110_vm7, %v1078_v54, %v1114_v62 }
 0x159   : > { %v1065_v56 = vpop.f32.mrf.mxu2 }
 0x15a   : > { %v1121_v58 = vsel %vm1113_vm6, %v1108_v53, %v1117_v55  ;;  %v1066_v59 = vadd.f32 %v1065_v56, %v890_v44  ;;  %v1079_v61 = vpop.f32.mrf.mxu3 }
 0x15b   : > { %v1123_v60 = vpack.c.bf16 %v1121_v58, %v1119_v57 }
 0x15c   : > { %v1080_v63 = vadd.f32 %v1079_v61, %v1066_v59 }
 0x15d   : > { %1278 = vmatmul.bf16.vlgmr.msra.gmra.mxu3 %v1123_v60 }
 0x15e   : > { %vm1112_vm8 = vcmp.gt.f32.partialorder %v1080_v63, 0.0  ;;  %v1116_v0 = vmul.f32 0.2, %v1080_v63 }
 0x160   : > { %v1120_v2 = vsel %vm1112_vm8, %v1080_v63, %v1116_v0 }
 0x161   : > { %v1122_v3 = vpack.c.bf16 %v1120_v2, %v1118_v1 }
 0x163   : > { %1264 = vmatmul.bf16.vlgmr.msra.gmra.mxu2 %v1122_v3 }
 0x1e0   : > { %v1279_v5 = vpop.f32.mrf.mxu3 }
 0x1e6   : > { %v1265_v6 = vpop.f32.mrf.mxu2 }
 0x1e7   : > { %v1266_v7 = vadd.f32 %v1902_v4, %v1265_v6 }
 0x1e8   : > { %v1281_v11 = vpop.f32.mrf.mxu3 }
 0x1e9   : > { %v1280_v8 = vadd.f32 %v1279_v5, %v1266_v7 }
 0x1eb   : > { %v1286_v12 = vmul.f32 0.2, %v1280_v8  ;;  %vm1284_vm9 = vcmp.gt.f32.partialorder %v1280_v8, 0.0 }
 0x1ed   : > { %v1288_v15 = vsel %vm1284_vm9, %v1280_v8, %v1286_v12 }
 0x1ee   : > { %v1267_v9 = vpop.f32.mrf.mxu2 }
 0x1ef   : > { %v1268_v10 = vadd.f32 %v1902_v4, %v1267_v9 }
 0x1f1   : > { %v1282_v13 = vadd.f32 %v1281_v11, %v1268_v10 }
 0x1f3   : > { %vm1285_vm10 = vcmp.gt.f32.partialorder %v1282_v13, 0.0  ;;  %v1287_v14 = vmul.f32 0.2, %v1282_v13 }
 0x1f5   : > { %v1289_v16 = vsel %vm1285_vm10, %v1282_v13, %v1287_v14 }
 0x1f6   : > { %v1290_v17 = vpack.c.bf16 %v1289_v16, %v1288_v15 }
 0x1f8   : > { %1299 = vmatpush.bf16.xpose.msrb.mxu0 %v1290_v17 }
 0x1ff   : > { %1300 = vmatmul.bf16.vlgmr.msrb.gmra.mxu0 %v1291_v18 }
 0x27c   : > { %v1301_v19 = vpop.f32.mrf.mxu0 }
 0x27d   : > { %1306 = vst.msk [vmem:[%s523_s21] sm:$0xff] %vm1305_vm11, %v1301_v19 }
 0x27e   : > { %1930 = shalt.err (!%p1927_p5)
}
 0x27f   : > { %1847 = dma.vmem_to_hbm [thread:$0]  (%p2093_p4), %s1322_s22, 128, %s1324_s5, %s1308_s20  }
 0x284   : > { %v1303_v20 = vpop.f32.mrf.mxu0 }
 0x285 PF: > { %p1853_p6 = scmp.ge.s32.totalorder %s1981_s30, 2  ;;  %s1335_s19 = sand.u32 1, %s1961_s25  }
 0x286   : > { %s1336_s27 = scalar_lea.sflag [#allocation3], %s1335_s19 }
 0x287   : > { %p1850_p7 = pnand %p1853_p6, %p2100_p8 }
 0x289   : > { %p1851_p9 = pneg %p1850_p7 }
 0x28b   : > { %1956 = dma.done.wait (%p1851_p9), %s1336_s27, 128  }
 0x28c   : > { %1958 = vsyncadd (%p1851_p9), %s1336_s27, 4294967168  ;;  %s26_s30 = sadd.s32 1, %s1981_s30   ;;  %s2600_s17 = sld [smem:[#allocation5_spill]] }
 0x28d   : > { %p23_p10 = scmp.ge.s32.totalorder %s26_s30, 4   ;;  %s2601_s27 = sld [smem:[#allocation9_spill]] }
 0x28e   : > { %s2602_s28 = sld [smem:[#allocation6_spill]]  ;;  %s2604_s25 = smov %s1965_s26 }
 0x28f   : > { %s2603_s29 = sld [smem:[#allocation7_spill]]  ;;  %25 = sbr.rel (!%p23_p10) target bundleno = 7 (0x7), region = 116 }
 0x292   : > { %s2605_s26 = smov %s2600_s17 }
 0x294   :  { %1342 = vsyncpa [#allocation3], 1 }
 0x295   :  { %1344 = vsyncpa [#allocation3 + $0x1], 1 }

</bundles_post_ra>
